<compile_context>
chip_gen: v5e
topology: v5e:2x2
jax: 0.10.0
libtpu: 0.0.40
codegen_flags: <defaults>
</compile_context>

<pallas_src>
import functools

import jax
import jax.numpy as jnp
import numpy as np
from jax import lax
from jax.experimental import pallas as pl
from jax.experimental.pallas import tpu as pltpu


def _pooled_feature_kernel(x_ref, w_ref, b_ref, mask_ref, out_ref, *,
                           cin, n_frames, frame_stride, wp, n_taps):
    """grid = (B,).  One invocation handles ALL frames of one batch element.

    x_ref   : (1, Cin, L_total)   zero-padded, per-frame flattened frames
                                  (frame f occupies lanes [f*PP, f*PP+Hp*Wp))
    w_ref   : (Cout, 9*Cin)       conv weight in im2col tap-major layout
    b_ref   : (Cout, 1)           conv bias
    mask_ref: (1, frame_stride)   1/(H*W) at valid spatial positions, else 0
    out_ref : (1, 1, Cout)        pooled features for this batch element
    """
    fl = n_frames * frame_stride
    xb = x_ref[0]                      # (Cin, L_total)
    w = w_ref[...]                     # (Cout, 9*Cin)

    # 3x3 SAME conv over all frames at once: 9 accumulated MXU matmuls over
    # statically shifted lane views (in-register im2col, nothing hits HBM).
    feat = None
    for t in range(n_taps):
        dh, dw = t // 3, t % 3
        off = dh * wp + dw
        xs = xb[:, off:off + fl]                               # (Cin, F*PP)
        wt = w[:, t * cin:(t + 1) * cin]                       # (Cout, Cin)
        d = jnp.dot(wt, xs, preferred_element_type=jnp.float32)
        feat = d if feat is None else feat + d
    feat = jnp.maximum(feat + b_ref[...], 0.0)                 # bias + ReLU

    # MaxPool3d(kernel=(n_frames,1,1)): elementwise max of 128-aligned frame
    # slabs, kept in vregs (no scratch round-trips).
    m = feat[:, 0:frame_stride]
    for f in range(1, n_frames):
        m = jnp.maximum(m, feat[:, f * frame_stride:(f + 1) * frame_stride])

    # AdaptiveAvgPool2d(1) as a masked lane-contraction on the MXU; the mask
    # already carries the 1/(H*W) scale (garbage lanes from padding / frame
    # boundary spill have mask == 0 and never reach the result).
    pooled = lax.dot_general(mask_ref[...], m,
                             dimension_numbers=(((1,), (1,)), ((), ())),
                             preferred_element_type=jnp.float32)  # (1, Cout)
    out_ref[0] = pooled


@jax.jit
def pretrained_model_forward(x, wconv, bconv, wfc, bfc):
    """x: (B, n_frames, Cin, H, W) float32. Returns logits (B, n_classes)."""
    B, F, Cin, H, W = x.shape
    Cout = wconv.shape[0]
    Hp, Wp = H + 2, W + 2
    P = Hp * Wp                                   # flattened padded frame
    PP = -(-P // 128) * 128                       # frame stride (lane aligned)
    FL = F * PP                                   # all frames along lanes
    off_max = 2 * Wp + 2                          # largest tap shift
    L_total = -(-(FL + off_max) // 128) * 128     # tail so shifts never OOB

    # --- glue (cheap, ~1.6x input bytes; no 9x im2col blow-up) --------------
    x_pad = jnp.pad(x, ((0, 0), (0, 0), (0, 0), (1, 1), (1, 1)))
    x_flat = x_pad.reshape(B, F, Cin, P)
    x_flat = jnp.pad(x_flat, ((0, 0), (0, 0), (0, 0), (0, PP - P)))
    x_flat = x_flat.transpose(0, 2, 1, 3).reshape(B, Cin, FL)
    x_flat = jnp.pad(x_flat, ((0, 0), (0, 0), (0, L_total - FL)))

    # Conv weight rearranged to im2col tap-major layout: [o, (dh*3+dw)*Cin + c]
    w_im2col = wconv.transpose(0, 2, 3, 1).reshape(Cout, 9 * Cin)
    bconv2d = bconv.reshape(Cout, 1)

    # Valid-position mask with the global-average 1/(H*W) scale folded in.
    p_idx = jnp.arange(PP)
    valid = (p_idx // Wp < H) & (p_idx % Wp < W)
    mask = (valid.astype(jnp.float32) / float(H * W)).reshape(1, PP)

    kernel = functools.partial(_pooled_feature_kernel, cin=Cin, n_frames=F,
                               frame_stride=PP, wp=Wp, n_taps=9)

    pooled = pl.pallas_call(
        kernel,
        out_shape=jax.ShapeDtypeStruct((B, 1, Cout), jnp.float32),
        grid_spec=pltpu.PrefetchScalarGridSpec(
            num_scalar_prefetch=0,
            grid=(B,),
            in_specs=[
                pl.BlockSpec((1, Cin, L_total), lambda b: (b, 0, 0)),
                pl.BlockSpec((Cout, 9 * Cin), lambda b: (0, 0)),
                pl.BlockSpec((Cout, 1), lambda b: (0, 0)),
                pl.BlockSpec((1, PP), lambda b: (0, 0)),
            ],
            out_specs=pl.BlockSpec((1, 1, Cout), lambda b: (b, 0, 0)),
        ),
        compiler_params=pltpu.CompilerParams(
            dimension_semantics=("parallel",)),
    )(x_flat, w_im2col, bconv2d, mask)

    pooled = pooled[:, 0, :]                      # (B, Cout)
    # dropout(0.2) -> identity in eval mode; classifier as one batched matmul.
    return pooled @ wfc.T + bfc[None, :]


def reference_forward(x, wconv, bconv, wfc, bfc):
    """Pure-JAX reference mirroring the PyTorch forward (eval mode)."""
    B, F, Cin, H, W = x.shape
    feats = []
    for i in range(F):
        y = lax.conv_general_dilated(
            x[:, i], wconv, window_strides=(1, 1), padding="SAME",
            dimension_numbers=("NCHW", "OIHW", "NCHW"))
        y = jnp.maximum(y + bconv[None, :, None, None], 0.0)
        feats.append(y)
    z = jnp.stack(feats, axis=2)          # (B, C, F, H, W)
    z = jnp.max(z, axis=2)                # local_pooler: MaxPool3d over frames
    z = jnp.mean(z, axis=(2, 3))          # global_pooler: AdaptiveAvgPool2d(1)
    # dropout(0.2) -> identity in eval mode
    return z @ wfc.T + bfc[None, :]       # classifier


if __name__ == "__main__":
    # Small shapes consistent with the module's forward:
    B, n_frames, Cin, H, W = 2, 4, 3, 16, 16
    Cfeat, n_classes = 32, 27

    key = jax.random.PRNGKey(0)
    k_x, k_wc, k_bc, k_wf, k_bf = jax.random.split(key, 5)

    x = jax.random.normal(k_x, (B, n_frames, Cin, H, W), dtype=jnp.float32)
    wconv = 0.1 * jax.random.normal(k_wc, (Cfeat, Cin, 3, 3), dtype=jnp.float32)
    bconv = 0.1 * jax.random.normal(k_bc, (Cfeat,), dtype=jnp.float32)
    wfc = 0.1 * jax.random.normal(k_wf, (n_classes, Cfeat), dtype=jnp.float32)
    bfc = 0.1 * jax.random.normal(k_bf, (n_classes,), dtype=jnp.float32)

    out = pretrained_model_forward(x, wconv, bconv, wfc, bfc)
    out = jax.block_until_ready(out)

    ref = reference_forward(x, wconv, bconv, wfc, bfc)
    np.testing.assert_allclose(np.asarray(out), np.asarray(ref), rtol=1e-4, atol=1e-4)

    print("KERNEL_OK")
</pallas_src>

<mosaic_0001>
module attributes {stable_mosaic.version = 11 : i64} {
  func.func @_pooled_feature_kernel(%arg0: i32, %arg1: memref<1x3x1664xf32, #tpu.memory_space<vmem>>, %arg2: memref<32x27xf32, #tpu.memory_space<vmem>>, %arg3: memref<32x1xf32, #tpu.memory_space<vmem>>, %arg4: memref<1x384xf32, #tpu.memory_space<vmem>>, %arg5: memref<1x1x32xf32, #tpu.memory_space<vmem>>) attributes {dimension_semantics = [#tpu.dimension_semantics<parallel>], iteration_bounds = array<i64: 2>, scalar_prefetch = 0 : i64, scratch_operands = 0 : i64, tpu.core_type = #tpu.core_type<tc>, window_params = [{transform_indices = @transform_0, window_bounds = array<i64: 1, 3, 1664>}, {pipeline_mode = #tpu.pipeline_mode<synchronous>, transform_indices = @transform_1, window_bounds = array<i64: 32, 27>}, {pipeline_mode = #tpu.pipeline_mode<synchronous>, transform_indices = @transform_2, window_bounds = array<i64: 32, 1>}, {pipeline_mode = #tpu.pipeline_mode<synchronous>, transform_indices = @transform_3, window_bounds = array<i64: 1, 384>}, {transform_indices = @transform_4, window_bounds = array<i64: 1, 1, 32>}]} {
    %c0 = arith.constant 0 : index
    %c0_0 = arith.constant 0 : index
    %c0_1 = arith.constant 0 : index
    %0 = vector.load %arg1[%c0, %c0_0, %c0_1] : memref<1x3x1664xf32, #tpu.memory_space<vmem>>, vector<1x3x1664xf32>
    %1 = vector.shape_cast %0 : vector<1x3x1664xf32> to vector<3x1664xf32>
    %c0_2 = arith.constant 0 : index
    %c0_3 = arith.constant 0 : index
    %2 = vector.load %arg2[%c0_2, %c0_3] : memref<32x27xf32, #tpu.memory_space<vmem>>, vector<32x27xf32>
    %3 = vector.extract_strided_slice %1 {offsets = [0, 0], sizes = [3, 1536], strides = [1, 1]} : vector<3x1664xf32> to vector<3x1536xf32>
    %4 = vector.extract_strided_slice %2 {offsets = [0, 0], sizes = [32, 3], strides = [1, 1]} : vector<32x27xf32> to vector<32x3xf32>
    %cst = arith.constant dense<0.000000e+00> : vector<32x1536xf32>
    %5 = tpu.matmul %4, %3, %cst {dimension_numbers = #tpu.dot_dimension_numbers<[1], [0], [0], [1], [0, 0, 1, 1], [], []>} : vector<32x3xf32>, vector<3x1536xf32>, vector<32x1536xf32> -> vector<32x1536xf32>
    %6 = vector.extract_strided_slice %1 {offsets = [0, 1], sizes = [3, 1536], strides = [1, 1]} : vector<3x1664xf32> to vector<3x1536xf32>
    %7 = vector.extract_strided_slice %2 {offsets = [0, 3], sizes = [32, 3], strides = [1, 1]} : vector<32x27xf32> to vector<32x3xf32>
    %cst_4 = arith.constant dense<0.000000e+00> : vector<32x1536xf32>
    %8 = tpu.matmul %7, %6, %cst_4 {dimension_numbers = #tpu.dot_dimension_numbers<[1], [0], [0], [1], [0, 0, 1, 1], [], []>} : vector<32x3xf32>, vector<3x1536xf32>, vector<32x1536xf32> -> vector<32x1536xf32>
    %9 = arith.addf %5, %8 : vector<32x1536xf32>
    %10 = vector.extract_strided_slice %1 {offsets = [0, 2], sizes = [3, 1536], strides = [1, 1]} : vector<3x1664xf32> to vector<3x1536xf32>
    %11 = vector.extract_strided_slice %2 {offsets = [0, 6], sizes = [32, 3], strides = [1, 1]} : vector<32x27xf32> to vector<32x3xf32>
    %cst_5 = arith.constant dense<0.000000e+00> : vector<32x1536xf32>
    %12 = tpu.matmul %11, %10, %cst_5 {dimension_numbers = #tpu.dot_dimension_numbers<[1], [0], [0], [1], [0, 0, 1, 1], [], []>} : vector<32x3xf32>, vector<3x1536xf32>, vector<32x1536xf32> -> vector<32x1536xf32>
    %13 = arith.addf %9, %12 : vector<32x1536xf32>
    %14 = vector.extract_strided_slice %1 {offsets = [0, 18], sizes = [3, 1536], strides = [1, 1]} : vector<3x1664xf32> to vector<3x1536xf32>
    %15 = vector.extract_strided_slice %2 {offsets = [0, 9], sizes = [32, 3], strides = [1, 1]} : vector<32x27xf32> to vector<32x3xf32>
    %cst_6 = arith.constant dense<0.000000e+00> : vector<32x1536xf32>
    %16 = tpu.matmul %15, %14, %cst_6 {dimension_numbers = #tpu.dot_dimension_numbers<[1], [0], [0], [1], [0, 0, 1, 1], [], []>} : vector<32x3xf32>, vector<3x1536xf32>, vector<32x1536xf32> -> vector<32x1536xf32>
    %17 = arith.addf %13, %16 : vector<32x1536xf32>
    %18 = vector.extract_strided_slice %1 {offsets = [0, 19], sizes = [3, 1536], strides = [1, 1]} : vector<3x1664xf32> to vector<3x1536xf32>
    %19 = vector.extract_strided_slice %2 {offsets = [0, 12], sizes = [32, 3], strides = [1, 1]} : vector<32x27xf32> to vector<32x3xf32>
    %cst_7 = arith.constant dense<0.000000e+00> : vector<32x1536xf32>
    %20 = tpu.matmul %19, %18, %cst_7 {dimension_numbers = #tpu.dot_dimension_numbers<[1], [0], [0], [1], [0, 0, 1, 1], [], []>} : vector<32x3xf32>, vector<3x1536xf32>, vector<32x1536xf32> -> vector<32x1536xf32>
    %21 = arith.addf %17, %20 : vector<32x1536xf32>
    %22 = vector.extract_strided_slice %1 {offsets = [0, 20], sizes = [3, 1536], strides = [1, 1]} : vector<3x1664xf32> to vector<3x1536xf32>
    %23 = vector.extract_strided_slice %2 {offsets = [0, 15], sizes = [32, 3], strides = [1, 1]} : vector<32x27xf32> to vector<32x3xf32>
    %cst_8 = arith.constant dense<0.000000e+00> : vector<32x1536xf32>
    %24 = tpu.matmul %23, %22, %cst_8 {dimension_numbers = #tpu.dot_dimension_numbers<[1], [0], [0], [1], [0, 0, 1, 1], [], []>} : vector<32x3xf32>, vector<3x1536xf32>, vector<32x1536xf32> -> vector<32x1536xf32>
    %25 = arith.addf %21, %24 : vector<32x1536xf32>
    %26 = vector.extract_strided_slice %1 {offsets = [0, 36], sizes = [3, 1536], strides = [1, 1]} : vector<3x1664xf32> to vector<3x1536xf32>
    %27 = vector.extract_strided_slice %2 {offsets = [0, 18], sizes = [32, 3], strides = [1, 1]} : vector<32x27xf32> to vector<32x3xf32>
    %cst_9 = arith.constant dense<0.000000e+00> : vector<32x1536xf32>
    %28 = tpu.matmul %27, %26, %cst_9 {dimension_numbers = #tpu.dot_dimension_numbers<[1], [0], [0], [1], [0, 0, 1, 1], [], []>} : vector<32x3xf32>, vector<3x1536xf32>, vector<32x1536xf32> -> vector<32x1536xf32>
    %29 = arith.addf %25, %28 : vector<32x1536xf32>
    %30 = vector.extract_strided_slice %1 {offsets = [0, 37], sizes = [3, 1536], strides = [1, 1]} : vector<3x1664xf32> to vector<3x1536xf32>
    %31 = vector.extract_strided_slice %2 {offsets = [0, 21], sizes = [32, 3], strides = [1, 1]} : vector<32x27xf32> to vector<32x3xf32>
    %cst_10 = arith.constant dense<0.000000e+00> : vector<32x1536xf32>
    %32 = tpu.matmul %31, %30, %cst_10 {dimension_numbers = #tpu.dot_dimension_numbers<[1], [0], [0], [1], [0, 0, 1, 1], [], []>} : vector<32x3xf32>, vector<3x1536xf32>, vector<32x1536xf32> -> vector<32x1536xf32>
    %33 = arith.addf %29, %32 : vector<32x1536xf32>
    %34 = vector.extract_strided_slice %1 {offsets = [0, 38], sizes = [3, 1536], strides = [1, 1]} : vector<3x1664xf32> to vector<3x1536xf32>
    %35 = vector.extract_strided_slice %2 {offsets = [0, 24], sizes = [32, 3], strides = [1, 1]} : vector<32x27xf32> to vector<32x3xf32>
    %cst_11 = arith.constant dense<0.000000e+00> : vector<32x1536xf32>
    %36 = tpu.matmul %35, %34, %cst_11 {dimension_numbers = #tpu.dot_dimension_numbers<[1], [0], [0], [1], [0, 0, 1, 1], [], []>} : vector<32x3xf32>, vector<3x1536xf32>, vector<32x1536xf32> -> vector<32x1536xf32>
    %37 = arith.addf %33, %36 : vector<32x1536xf32>
    %c0_12 = arith.constant 0 : index
    %c0_13 = arith.constant 0 : index
    %38 = vector.load %arg3[%c0_12, %c0_13] : memref<32x1xf32, #tpu.memory_space<vmem>>, vector<32x1xf32>
    %39 = vector.broadcast %38 : vector<32x1xf32> to vector<32x1536xf32>
    %40 = arith.addf %37, %39 : vector<32x1536xf32>
    %cst_14 = arith.constant 0.000000e+00 : f32
    %41 = vector.broadcast %cst_14 : f32 to vector<32x1536xf32>
    %42 = arith.maximumf %40, %41 : vector<32x1536xf32>
    %43 = vector.extract_strided_slice %42 {offsets = [0, 0], sizes = [32, 384], strides = [1, 1]} : vector<32x1536xf32> to vector<32x384xf32>
    %44 = vector.extract_strided_slice %42 {offsets = [0, 384], sizes = [32, 384], strides = [1, 1]} : vector<32x1536xf32> to vector<32x384xf32>
    %45 = arith.maximumf %43, %44 : vector<32x384xf32>
    %46 = vector.extract_strided_slice %42 {offsets = [0, 768], sizes = [32, 384], strides = [1, 1]} : vector<32x1536xf32> to vector<32x384xf32>
    %47 = arith.maximumf %45, %46 : vector<32x384xf32>
    %48 = vector.extract_strided_slice %42 {offsets = [0, 1152], sizes = [32, 384], strides = [1, 1]} : vector<32x1536xf32> to vector<32x384xf32>
    %49 = arith.maximumf %47, %48 : vector<32x384xf32>
    %c0_15 = arith.constant 0 : index
    %c0_16 = arith.constant 0 : index
    %50 = vector.load %arg4[%c0_15, %c0_16] : memref<1x384xf32, #tpu.memory_space<vmem>>, vector<1x384xf32>
    %cst_17 = arith.constant dense<0.000000e+00> : vector<1x32xf32>
    %51 = tpu.matmul %50, %49, %cst_17 {dimension_numbers = #tpu.dot_dimension_numbers<[1], [1], [0], [0], [0, 0, 1, 0], [], []>} : vector<1x384xf32>, vector<32x384xf32>, vector<1x32xf32> -> vector<1x32xf32>
    %c0_18 = arith.constant 0 : index
    %c0_19 = arith.constant 0 : index
    %c0_20 = arith.constant 0 : index
    %52 = vector.load %arg5[%c0_18, %c0_19, %c0_20] : memref<1x1x32xf32, #tpu.memory_space<vmem>>, vector<1x1x32xf32>
    %53 = vector.shape_cast %52 : vector<1x1x32xf32> to vector<1x32xf32>
    %54 = vector.shape_cast %51 : vector<1x32xf32> to vector<1x1x32xf32>
    tpu.vector_store %arg5[%c0_18, %c0_19, %c0_20], %54 {strides = array<i32>} : memref<1x1x32xf32, #tpu.memory_space<vmem>>, vector<1x1x32xf32>,
    return
  }
  func.func @transform_0(%arg0: i32) -> (i32, i32, i32) {
    %c0_i32 = arith.constant 0 : i32
    %c0_i32_0 = arith.constant 0 : i32
    %c0_i32_1 = arith.constant 0 : i32
    return %arg0, %c0_i32, %c0_i32_0 : i32, i32, i32
  }
  func.func @transform_1(%arg0: i32) -> (i32, i32) {
    %c0_i32 = arith.constant 0 : i32
    %c0_i32_0 = arith.constant 0 : i32
    %c0_i32_1 = arith.constant 0 : i32
    return %c0_i32, %c0_i32_0 : i32, i32
  }
  func.func @transform_2(%arg0: i32) -> (i32, i32) {
    %c0_i32 = arith.constant 0 : i32
    %c0_i32_0 = arith.constant 0 : i32
    %c0_i32_1 = arith.constant 0 : i32
    return %c0_i32, %c0_i32_0 : i32, i32
  }
  func.func @transform_3(%arg0: i32) -> (i32, i32) {
    %c0_i32 = arith.constant 0 : i32
    %c0_i32_0 = arith.constant 0 : i32
    %c0_i32_1 = arith.constant 0 : i32
    return %c0_i32, %c0_i32_0 : i32, i32
  }
  func.func @transform_4(%arg0: i32) -> (i32, i32, i32) {
    %c0_i32 = arith.constant 0 : i32
    %c0_i32_0 = arith.constant 0 : i32
    %c0_i32_1 = arith.constant 0 : i32
    return %arg0, %c0_i32, %c0_i32_0 : i32, i32, i32
  }
}

</mosaic_0001>

<bundles_post_ra>
// kernel: pretrained_model_forward.1
= control target key start
LH: loop header
LB: loop body
LE: loop exit
PB: predicated region body
PF: predicated region fallthrough
CT: control target
= control target key end

     0   :  { %s5461_s15 = smov 0   ;;  %s8261_s0 = inlined_call_operand.vmem [shape: f32[2,3,1664], index: 0, kind: input, shape index: {}]   ;;  %s8262_s1 = inlined_call_operand.vmem [shape: f32[32,27], index: 1, kind: input, shape index: {}]   ;;  %s8263_s2 = inlined_call_operand.vmem [shape: f32[32,1], index: 2, kind: input, shape index: {}]   ;;  %s8264_s3 = inlined_call_operand.vmem [shape: f32[1,384], index: 3, kind: input, shape index: {}]   ;;  %s8265_s4 = inlined_call_operand.vmem [shape: f32[2,1,32], index: 4, kind: output, shape index: {}]  }
   0x1 LB: > { %s4828_s16 = sadd.s32 4294967295, %s5418_s15   ;;  %p4832_p0 = scmp.ge.s32.totalorder %s5418_s15, 1  ;;  %s5418_s15 = sphi %s5461_s15, %s14_s15  }
   0x2   : > { %p162_p1 = scmp.lt.s32.totalorder %s5418_s15, 3 }
   0x4   : > { %p163_p2 = pnand %p4832_p0, %p162_p1 }
   0x6   : > { %166 = sbr.rel (%p163_p2) target bundleno = 1298 (0x512), region = 36 }
   0xb   : > { %v5472_v0 = vld [vmem:[%s8262_s1] sm:$0xff]  ;;  %p186_p3 = scmp.lt.s32.totalorder %s4828_s16, 1  ;;  %s5420_s19 = smov 125   ;;  %v5511_v13 = vld [vmem:[%s8262_s1 + $0x10] sm:$0xff]  ;;  %v5533_v21 = vld [vmem:[%s8262_s1 + $0x8] sm:$0xff]  ;;  %vm273_vm0 = vcmask 1039360  }
   0xc   : > { %209 = vrot.lane.b32.xlu1 %v5472_v0, %s5420_s19  ;;  %s5421_s24 = smov 127   ;;  %v5539_v22 = vld [vmem:[%s8262_s1 + $0x18] sm:$0xff]  ;;  %s5422_s5 = smov 122   ;;  %vm286_vm1 = vcmask 23552   ;;  %vm295_vm2 = vcmask 1042432   ;;  %vm1126_vm3 = vcmask 1031168  }
   0xd   : > { %s8629_s16 = smov (!%p186_p3, %s4828_s16), 1  ;;  %s5423_s6 = smov 126   ;;  %vm1624_vm4 = vcmask 900096   ;;  %vm2122_vm5 = vcmask 891904   ;;  %vm2620_vm6 = vcmask 883712   ;;  %vm3118_vm7 = vcmask 752640  }
   0xe   : > { %s5376_s20 = smul.u32 52, %s8629_s16  ;;  %s5424_s7 = smov 119   ;;  %vm3616_vm8 = vcmask 744448   ;;  %vm4114_vm9 = vcmask 736256   ;;  %vm4779_vm10 = vcmask 253952  }
   0xf   : > { %s5425_s8 = smov 110   ;;  %s5426_s9 = smov 109  }
  0x10   : > { %s5482_s23 = scalar_lea.vmem %s8261_s0, %s5376_s20  ;;  %s5427_s10 = smov 116  }
  0x11   : > { %v5485_v1 = vld [vmem:[%s5482_s23 + $0x8] sm:$0x77]  ;;  %v5488_v2 = vld [vmem:[%s5482_s23] sm:$0x77]  ;;  %v5491_v3 = vld [vmem:[%s5482_s23 + $0x10] sm:$0x77] }
  0x12   : > { %226 = vst [vmem:[#allocation1 + $0x10] ss:$2 sm:$0xff] %v5485_v1  ;;  %v5495_v4 = vld [vmem:[%s5482_s23 + $0x18] sm:$0x77]  ;;  %v5501_v5 = vld [vmem:[%s5482_s23 + $0x20] sm:$0x77] }
  0x13   : > { %224 = vst [vmem:[#allocation1] ss:$2 sm:$0xff] %v5488_v2  ;;  %v5519_v16 = vld [vmem:[%s5482_s23 + $0x28] sm:$0x77]  ;;  %v5522_v17 = vld [vmem:[%s5482_s23 + $0x30] sm:$0x7] }
  0x14   : > { %228 = vst [vmem:[#allocation1 + $0x20] ss:$2 sm:$0xff] %v5491_v3  ;;  %s5428_s13 = smov 113   ;;  %s5429_s14 = smov 108  }
  0x15   : > { %230 = vst [vmem:[#allocation1 + $0x30] ss:$2 sm:$0xff] %v5495_v4  ;;  %s5430_s23 = smov 92   ;;  %s5432_s25 = smov 107  }
  0x16   : > { %8270 = vst [vmem:[#allocation2_spill] sm:$0xff] %v5522_v17  ;;  %s5433_s28 = smov 104   ;;  %s5434_s29 = smov 90  }
  0x19   : > { %v234_v6 = vld.sshfl [vmem:[#allocation1 + $0x18] sm:$0xff pattern:$0x75316420]  ;;  %v233_v12 = vld.sshfl [vmem:[#allocation1 + $0x10] sm:$0xff pattern:$0x75316420] }
  0x1a   : > { %253 = vrot.lane.b32.xlu0 %v234_v6, %s5421_s24  ;;  %v231_v7 = vld.sshfl [vmem:[#allocation1] sm:$0xff pattern:$0x75316420]  ;;  %v232_v8 = vld.sshfl [vmem:[#allocation1 + $0x8] sm:$0xff pattern:$0x75316420] }
  0x1b   : > { %247 = vrot.lane.b32.xlu1 %v231_v7, %s5421_s24  ;;  %249 = vrot.lane.b32.xlu2 %v232_v8, %s5421_s24  ;;  %239 = vst [vmem:[#allocation1] ss:$2 sm:$0xff] %v5501_v5  ;;  %v235_v11 = vld.sshfl [vmem:[#allocation1 + $0x20] sm:$0xff pattern:$0x75316420] }
  0x1c   : > { %v238_v9 = vld.sshfl [vmem:[#allocation1 + $0x38] sm:$0xff pattern:$0x75316420]  ;;  %v237_v10 = vld.sshfl [vmem:[#allocation1 + $0x30] sm:$0xff pattern:$0x75316420] }
  0x1d   : > { %674 = vst [vmem:[#allocation1 + $0x30] ss:$2 sm:$0xff] %v5495_v4  ;;  %v236_v20 = vld.sshfl [vmem:[#allocation1 + $0x28] sm:$0xff pattern:$0x75316420] }
  0x1e   : > { %240 = vst [vmem:[#allocation1 + $0x10] ss:$2 sm:$0xff] %v5519_v16 }
  0x1f   : > { %241 = vst [vmem:[#allocation1 + $0x20] ss:$2 sm:$0xff] %v5522_v17 }
  0x22   : > { %255 = vrot.lane.b32.xlu0 %v235_v11, %s5421_s24  ;;  %v242_v14 = vld.sshfl [vmem:[#allocation1] sm:$0xff pattern:$0x75316420]  ;;  %v243_v15 = vld.sshfl [vmem:[#allocation1 + $0x8] sm:$0xff pattern:$0x75316420] }
  0x23   : > { %251 = vrot.lane.b32.xlu2 %v233_v12, %s5421_s24  ;;  %213 = vrot.lane.b32.xlu1 %v5511_v13, %s5420_s19  ;;  %668 = vst [vmem:[#allocation1] ss:$2 sm:$0xff] %v5488_v2 }
  0x24   : > { %v5524_v18 = vld.sshfl [vmem:[#allocation1 + $0x30] sm:$0xff pattern:$0x75316420]  ;;  %v5526_v19 = vld.sshfl [vmem:[#allocation1 + $0x38] sm:$0xff pattern:$0x75316420] }
  0x25   : > { %1083 = vst [vmem:[#allocation1 + $0x30] ss:$2 sm:$0xff] %v5495_v4  ;;  %v245_v23 = vld.sshfl [vmem:[#allocation1 + $0x18] sm:$0xff pattern:$0x75316420] }
  0x26   : > { %v244_v24 = vld.sshfl [vmem:[#allocation1 + $0x10] sm:$0xff pattern:$0x75316420]  ;;  %v246_v25 = vld.sshfl [vmem:[#allocation1 + $0x20] sm:$0xff pattern:$0x75316420] }
  0x27   : > { %670 = vst [vmem:[#allocation1 + $0x10] ss:$2 sm:$0xff] %v5485_v1 }
  0x28   : > { %672 = vst [vmem:[#allocation1 + $0x20] ss:$2 sm:$0xff] %v5491_v3 }
  0x2a   : > { %211 = vrot.lane.b32.xlu0 %v5533_v21, %s5420_s19  ;;  %v675_v57 = vld.sshfl [vmem:[#allocation1] sm:$0xff pattern:$0x75316420]  ;;  %v676_v58 = vld.sshfl [vmem:[#allocation1 + $0x8] sm:$0xff pattern:$0x75316420] }
  0x2b   : > { %215 = vrot.lane.b32.xlu2 %v5539_v22, %s5420_s19  ;;  %263 = vrot.lane.b32.xlu1 %v242_v14, %s5421_s24  ;;  %683 = vst [vmem:[#allocation1] ss:$2 sm:$0xff] %v5501_v5 }
  0x2e   : > { %v677_v42 = vld.sshfl [vmem:[#allocation1 + $0x10] sm:$0xff pattern:$0x75316420]  ;;  %v678_v43 = vld.sshfl [vmem:[#allocation1 + $0x18] sm:$0xff pattern:$0x75316420] }
  0x2f   : > { %684 = vst [vmem:[#allocation1 + $0x10] ss:$2 sm:$0xff] %v5519_v16  ;;  %v5608_v51 = vld.sshfl [vmem:[#allocation1 + $0x20] sm:$0xff pattern:$0x75316420] }
  0x30   : > { %v5611_v52 = vld.sshfl [vmem:[#allocation1 + $0x28] sm:$0xff pattern:$0x75316420] }
  0x31   : > { %1081 = vst [vmem:[#allocation1 + $0x20] ss:$2 sm:$0xff] %v5491_v3 }
  0x32   : > { %261 = vrot.lane.b32.xlu0 %v238_v9, %s5421_s24  ;;  %v5638_v8 = vld.sshfl [vmem:[#allocation1] sm:$0xff pattern:$0x75316420]  ;;  %v5640_v9 = vld.sshfl [vmem:[#allocation1 + $0x8] sm:$0xff pattern:$0x75316420] }
  0x33   : > { %257 = vrot.lane.b32.xlu2 %v236_v20, %s5421_s24  ;;  %269 = vrot.lane.b32.xlu1 %v245_v23, %s5421_s24  ;;  %1077 = vst [vmem:[#allocation1] ss:$2 sm:$0xff] %v5488_v2 }
  0x36   : > { %v5600_v48 = vld.sshfl [vmem:[#allocation1 + $0x10] sm:$0xff pattern:$0x75316420]  ;;  %v5602_v49 = vld.sshfl [vmem:[#allocation1 + $0x18] sm:$0xff pattern:$0x75316420] }
  0x37   : > { %1079 = vst [vmem:[#allocation1 + $0x10] ss:$2 sm:$0xff] %v5485_v1 }
  0x38   : > { %v1088_v61 = vld.sshfl [vmem:[#allocation1 + $0x20] sm:$0xff pattern:$0x75316420]  ;;  %v1089_v62 = vld.sshfl [vmem:[#allocation1 + $0x28] sm:$0xff pattern:$0x75316420] }
  0x39   : > { %1094 = vst [vmem:[#allocation1 + $0x20] ss:$2 sm:$0xff] %v5522_v17 }
  0x3a   : > { %259 = vrot.lane.b32.xlu0 %v237_v10, %s5421_s24  ;;  %v1085_v10 = vld.sshfl [vmem:[#allocation1 + $0x8] sm:$0xff pattern:$0x75316420]  ;;  %v1084_v12 = vld.sshfl [vmem:[#allocation1] sm:$0xff pattern:$0x75316420] }
  0x3b   : > { %267 = vrot.lane.b32.xlu1 %v244_v24, %s5421_s24  ;;  %271 = vrot.lane.b32.xlu2 %v246_v25, %s5421_s24  ;;  %1092 = vst [vmem:[#allocation1] ss:$2 sm:$0xff] %v5501_v5 }
  0x3e   : > { %v1086_v59 = vld.sshfl [vmem:[#allocation1 + $0x10] sm:$0xff pattern:$0x75316420]  ;;  %v1087_v11 = vld.sshfl [vmem:[#allocation1 + $0x18] sm:$0xff pattern:$0x75316420] }
  0x3f   : > { %1093 = vst [vmem:[#allocation1 + $0x10] ss:$2 sm:$0xff] %v5519_v16 }
  0x40   : > { %v1099_v23 = vld.sshfl [vmem:[#allocation1 + $0x20] sm:$0xff pattern:$0x75316420] }
  0x41   : > { %1579 = vst [vmem:[#allocation1 + $0x20] ss:$2 sm:$0xff] %v5491_v3 }
  0x42   : > { %265 = vrot.lane.b32.xlu0 %v243_v15, %s5421_s24  ;;  %v1095_v14 = vld.sshfl [vmem:[#allocation1] sm:$0xff pattern:$0x75316420]  ;;  %v1091_v15 = vld.sshfl [vmem:[#allocation1 + $0x38] sm:$0xff pattern:$0x75316420] }
  0x43   : > { %1069 = vrot.lane.b32.xlu1 %v5472_v0, %s5422_s5  ;;  %1106 = vrot.lane.b32.xlu2 %v1087_v11, %s5423_s6  ;;  %v1096_v20 = vld.sshfl [vmem:[#allocation1 + $0x8] sm:$0xff pattern:$0x75316420]  ;;  %s5431_s24 = smov 91  }
  0x44   : > { %1575 = vst [vmem:[#allocation1] ss:$2 sm:$0xff] %v5488_v2 }
  0x46   : > { %v1097_v24 = vld.sshfl [vmem:[#allocation1 + $0x10] sm:$0xff pattern:$0x75316420] }
  0x4a   : > { %1108 = vrot.lane.b32.xlu0 %v1088_v61, %s5423_s6 }
  0x4b   : > { %1104 = vrot.lane.b32.xlu1 %v1086_v59, %s5423_s6  ;;  %1100 = vrot.lane.b32.xlu2 %v1084_v12, %s5423_s6 }
  0x52   : > { %1102 = vrot.lane.b32.xlu0 %v1085_v10, %s5423_s6 }
  0x53   : > { %1075 = vrot.lane.b32.xlu1 %v5539_v22, %s5422_s5  ;;  %1071 = vrot.lane.b32.xlu2 %v5533_v21, %s5422_s5 }
  0x5a   : > { %1073 = vrot.lane.b32.xlu0 %v5511_v13, %s5422_s5 }
  0x5b   : > { %1110 = vrot.lane.b32.xlu1 %v1089_v62, %s5423_s6  ;;  %1114 = vrot.lane.b32.xlu2 %v1091_v15, %s5423_s6 }
  0x62   : > { %1116 = vrot.lane.b32.xlu0 %v1095_v14, %s5423_s6 }
  0x63   : > { %1124 = vrot.lane.b32.xlu1 %v1099_v23, %s5423_s6 }
  0x75   : > { %v250_v26 = vpop.permute.xlu2 %249 }
  0x7d   : > { %v252_v27 = vpop.permute.xlu2 %251 }
  0x7e   : > { %v275_v28 = vsel %vm273_vm0, %v250_v26, %v252_v27  ;;  %v5558_v29 = vpop.permute.xlu1 %209 }
  0x7f   : > { %4839 = vmatpush.msk.msra.mxu1 %vm295_vm2, %v275_v28 }
  0x80   : > { %4840 = vmatmul.msk.f32.vlgmr.msra.gmra.mxu1 %vm286_vm1, %v5558_v29 }
  0x85   : > { %v5563_v30 = vpop.permute.xlu2 %215 }
  0x8c   : > { %v254_v31 = vpop.permute.xlu0 %253 }
  0x8d   : > { %v276_v32 = vsel %vm273_vm0, %v252_v27, %v254_v31  ;;  %v248_v33 = vpop.permute.xlu1 %247  ;;  %v258_v35 = vpop.permute.xlu2 %257  ;;  %v1582_v27 = vld.sshfl [vmem:[#allocation1] sm:$0xff pattern:$0x75316420] }
  0x8e   : > { %4844 = vmatpush.msk.msra.mxu2 %vm295_vm2, %v276_v32  ;;  %v274_v34 = vsel %vm273_vm0, %v248_v33, %v250_v26 }
  0x8f   : > { %4834 = vmatpush.msk.msra.mxu0 %vm295_vm2, %v274_v34  ;;  %4845 = vmatmul.msk.f32.vlgmr.msra.gmra.mxu2 %vm286_vm1, %v5558_v29 }
  0x90   : > { %4835 = vmatmul.msk.f32.vlgmr.msra.gmra.mxu0 %vm286_vm1, %v5558_v29 }
  0x94   : > { %v256_v36 = vpop.permute.xlu0 %255 }
  0x95   : > { %v277_v37 = vsel %vm273_vm0, %v254_v31, %v256_v36  ;;  %v278_v38 = vsel %vm273_vm0, %v256_v36, %v258_v35  ;;  %v5575_v39 = vpop.permute.xlu1 %213  ;;  %v272_v44 = vpop.permute.xlu2 %271 }
  0x96   : > { %4849 = vmatpush.msk.msra.mxu3 %vm295_vm2, %v277_v37  ;;  %4854 = vmatpush.msk.msrb.mxu0 %vm295_vm2, %v278_v38  ;;  %v1586_v38 = vld.sshfl [vmem:[#allocation1 + $0x20] sm:$0xff pattern:$0x75316420] }
  0x97   : > { %4850 = vmatmul.msk.f32.vlgmr.msra.gmra.mxu3 %vm286_vm1, %v5558_v29 }
  0x9c   : > { %v5581_v40 = vpop.permute.xlu0 %211 }
  0x9d   : > { %4836 = vmatmul.msk.f32.gmra.mxu0 %vm286_vm1, %v5581_v40  ;;  %4841 = vmatmul.msk.f32.gmra.mxu1 %vm286_vm1, %v5581_v40  ;;  %v264_v41 = vpop.permute.xlu1 %263  ;;  %v1107_v36 = vpop.permute.xlu2 %1106 }
  0x9e   : > { %4846 = vmatmul.msk.f32.gmra.mxu2 %vm286_vm1, %v5581_v40 }
  0x9f   : > { %4851 = vmatmul.msk.f32.gmra.mxu3 %vm286_vm1, %v5581_v40 }
  0xa4   : > { %v262_v45 = vpop.permute.xlu0 %261 }
  0xa5   : > { %4837 = vmatmul.msk.f32.gmra.mxu0 %vm286_vm1, %v5575_v39  ;;  %4842 = vmatmul.msk.f32.gmra.mxu1 %vm286_vm1, %v5575_v39  ;;  %v281_v46 = vsel %vm273_vm0, %v262_v45, %v264_v41  ;;  %v270_v47 = vpop.permute.xlu1 %269 }
  0xa6   : > { %4847 = vmatmul.msk.f32.gmra.mxu2 %vm286_vm1, %v5575_v39  ;;  %4869 = vmatpush.msk.msrb.mxu3 %vm295_vm2, %v281_v46  ;;  %v285_v50 = vsel %vm273_vm0, %v270_v47, %v272_v44 }
  0xa7   : > { %4852 = vmatmul.msk.f32.gmra.mxu3 %vm286_vm1, %v5575_v39 }
  0xa8   : > { %4889 = vmatpush.msk.msra.mxu3 %vm295_vm2, %v285_v50 }
  0xac   : > { %v260_v53 = vpop.permute.xlu0 %259 }
  0xad   : > { %4838 = vmatmul.msk.f32.gmra.mxu0 %vm286_vm1, %v5563_v30  ;;  %4843 = vmatmul.msk.f32.gmra.mxu1 %vm286_vm1, %v5563_v30  ;;  %v279_v54 = vsel %vm273_vm0, %v258_v35, %v260_v53  ;;  %v280_v55 = vsel %vm273_vm0, %v260_v53, %v262_v45  ;;  %v268_v56 = vpop.permute.xlu1 %267 }
  0xae   : > { %4848 = vmatmul.msk.f32.gmra.mxu2 %vm286_vm1, %v5563_v30  ;;  %4859 = vmatpush.msk.msrb.mxu1 %vm295_vm2, %v279_v54  ;;  %v284_v60 = vsel %vm273_vm0, %v268_v56, %v270_v47 }
  0xaf   : > { %4864 = vmatpush.msk.msrb.mxu2 %vm295_vm2, %v280_v55  ;;  %4853 = vmatmul.msk.f32.gmra.mxu3 %vm286_vm1, %v5563_v30 }
  0xb1   : > { %4884 = vmatpush.msk.msra.mxu2 %vm295_vm2, %v284_v60 }
  0xb4   : > { %v266_v63 = vpop.permute.xlu0 %265 }
  0xb5   : > { %v282_v6 = vsel %vm273_vm0, %v264_v41, %v266_v63  ;;  %4855 = vmatmul.msk.f32.vlgmr.msrb.gmra.mxu0 %vm286_vm1, %v5558_v29  ;;  %4860 = vmatmul.msk.f32.vlgmr.msrb.gmra.mxu1 %vm286_vm1, %v5558_v29  ;;  %v283_v7 = vsel %vm273_vm0, %v266_v63, %v268_v56  ;;  %v5803_v32 = vpop.permute.xlu1 %1069 }
  0xb6   : > { %4865 = vmatmul.msk.f32.vlgmr.msrb.gmra.mxu2 %vm286_vm1, %v5558_v29  ;;  %4874 = vmatpush.msk.msra.mxu0 %vm295_vm2, %v282_v6 }
  0xb7   : > { %4870 = vmatmul.msk.f32.vlgmr.msrb.gmra.mxu3 %vm286_vm1, %v5558_v29  ;;  %4879 = vmatpush.msk.msra.mxu1 %vm295_vm2, %v283_v7 }
  0xb8   : > { %4909 = vmatpush.msk.msrb.mxu3 %vm295_vm2, %v678_v43  ;;  %4894 = vmatpush.msk.msrb.mxu0 %vm295_vm2, %v675_v57 }
  0xb9   : > { %4904 = vmatpush.msk.msrb.mxu2 %vm295_vm2, %v677_v42  ;;  %4899 = vmatpush.msk.msrb.mxu1 %vm295_vm2, %v676_v58 }
  0xbc   : > { %v1109_v44 = vpop.permute.xlu0 %1108 }
  0xbd   : > { %4856 = vmatmul.msk.f32.gmra.mxu0 %vm286_vm1, %v5581_v40  ;;  %4861 = vmatmul.msk.f32.gmra.mxu1 %vm286_vm1, %v5581_v40  ;;  %v1105_v42 = vpop.permute.xlu1 %1104  ;;  %v1130_v45 = vsel %vm1126_vm3, %v1107_v36, %v1109_v44 }
  0xbe   : > { %4866 = vmatmul.msk.f32.gmra.mxu2 %vm286_vm1, %v5581_v40  ;;  %v1129_v43 = vsel %vm1126_vm3, %v1105_v42, %v1107_v36 }
  0xbf   : > { %4871 = vmatmul.msk.f32.gmra.mxu3 %vm286_vm1, %v5581_v40 }
  0xc4   : > { %v1103_v55 = vpop.permute.xlu0 %1102 }
  0xc5   : > { %4857 = vmatmul.msk.f32.gmra.mxu0 %vm286_vm1, %v5575_v39  ;;  %4862 = vmatmul.msk.f32.gmra.mxu1 %vm286_vm1, %v5575_v39  ;;  %v5854_v53 = vpop.permute.xlu1 %1075  ;;  %v1128_v57 = vsel %vm1126_vm3, %v1103_v55, %v1105_v42 }
  0xc6   : > { %4867 = vmatmul.msk.f32.gmra.mxu2 %vm286_vm1, %v5575_v39 }
  0xc7   : > { %4872 = vmatmul.msk.f32.gmra.mxu3 %vm286_vm1, %v5575_v39 }
  0xcc   : > { %v5901_v14 = vpop.permute.xlu0 %1073 }
  0xcd   : > { %4858 = vmatmul.msk.f32.gmra.mxu0 %vm286_vm1, %v5563_v30  ;;  %4863 = vmatmul.msk.f32.gmra.mxu1 %vm286_vm1, %v5563_v30  ;;  %v1111_v63 = vpop.permute.xlu1 %1110 }
  0xce   : > { %4868 = vmatmul.msk.f32.gmra.mxu2 %vm286_vm1, %v5563_v30  ;;  %v1131_v6 = vsel %vm1126_vm3, %v1109_v44, %v1111_v63 }
  0xcf   : > { %4873 = vmatmul.msk.f32.gmra.mxu3 %vm286_vm1, %v5563_v30 }
  0xd5   : > { %4875 = vmatmul.msk.f32.vlgmr.msra.gmra.mxu0 %vm286_vm1, %v5558_v29  ;;  %4880 = vmatmul.msk.f32.vlgmr.msra.gmra.mxu1 %vm286_vm1, %v5558_v29 }
  0xd6   : > { %4885 = vmatmul.msk.f32.vlgmr.msra.gmra.mxu2 %vm286_vm1, %v5558_v29  ;;  %4914 = vmatpush.msk.msra.mxu0 %vm295_vm2, %v5608_v51 }
  0xd7   : > { %4890 = vmatmul.msk.f32.vlgmr.msra.gmra.mxu3 %vm286_vm1, %v5558_v29  ;;  %4924 = vmatpush.msk.msra.mxu2 %vm295_vm2, %v5524_v18  ;;  %v1090_v18 = vld.sshfl [vmem:[#allocation1 + $0x30] sm:$0xff pattern:$0x75316420] }
  0xd8   : > { %4929 = vmatpush.msk.msra.mxu3 %vm295_vm2, %v5526_v19  ;;  %4919 = vmatpush.msk.msra.mxu1 %vm295_vm2, %v5611_v52  ;;  %1581 = vst [vmem:[#allocation1 + $0x30] ss:$2 sm:$0xff] %v5495_v4  ;;  %v1098_v19 = vld.sshfl [vmem:[#allocation1 + $0x18] sm:$0xff pattern:$0x75316420] }
  0xd9   : > { %1112 = vrot.lane.b32.xlu2 %v1090_v18, %s5423_s6  ;;  %1122 = vrot.lane.b32.xlu0 %v1098_v19, %s5423_s6  ;;  %1577 = vst [vmem:[#allocation1 + $0x10] ss:$2 sm:$0xff] %v5485_v1 }
  0xdd   : > { %4876 = vmatmul.msk.f32.gmra.mxu0 %vm286_vm1, %v5581_v40  ;;  %4881 = vmatmul.msk.f32.gmra.mxu1 %vm286_vm1, %v5581_v40 }
  0xde   : > { %4886 = vmatmul.msk.f32.gmra.mxu2 %vm286_vm1, %v5581_v40 }
  0xdf   : > { %4891 = vmatmul.msk.f32.gmra.mxu3 %vm286_vm1, %v5581_v40  ;;  %v1589_v46 = vld.sshfl [vmem:[#allocation1 + $0x38] sm:$0xff pattern:$0x75316420]  ;;  %v1588_v54 = vld.sshfl [vmem:[#allocation1 + $0x30] sm:$0xff pattern:$0x75316420] }
  0xe0   : > { %v1584_v25 = vld.sshfl [vmem:[#allocation1 + $0x10] sm:$0xff pattern:$0x75316420]  ;;  %v1585_v26 = vld.sshfl [vmem:[#allocation1 + $0x18] sm:$0xff pattern:$0x75316420] }
  0xe1   : > { %1118 = vrot.lane.b32.xlu2 %v1096_v20, %s5423_s6  ;;  %1120 = vrot.lane.b32.xlu0 %v1097_v24, %s5423_s6  ;;  %1591 = vst [vmem:[#allocation1 + $0x10] ss:$2 sm:$0xff] %v5519_v16 }
  0xe2   : > { %1604 = vrot.lane.b32.xlu1 %v1585_v26, %s5425_s8  ;;  %2079 = vst [vmem:[#allocation1 + $0x30] ss:$2 sm:$0xff] %v5495_v4  ;;  %v1117_v26 = vpop.permute.xlu0 %1116 }
  0xe5   : > { %4877 = vmatmul.msk.f32.gmra.mxu0 %vm286_vm1, %v5575_v39  ;;  %4882 = vmatmul.msk.f32.gmra.mxu1 %vm286_vm1, %v5575_v39 }
  0xe6   : > { %4887 = vmatmul.msk.f32.gmra.mxu2 %vm286_vm1, %v5575_v39 }
  0xe7   : > { %4892 = vmatmul.msk.f32.gmra.mxu3 %vm286_vm1, %v5575_v39 }
  0xe9   : > { %1567 = vrot.lane.b32.xlu0 %v5472_v0, %s5424_s7  ;;  %1606 = vrot.lane.b32.xlu2 %v1586_v38, %s5425_s8 }
  0xea   : > { %1598 = vrot.lane.b32.xlu1 %v1582_v27, %s5425_s8 }
  0xed   : > { %4878 = vmatmul.msk.f32.gmra.mxu0 %vm286_vm1, %v5563_v30  ;;  %4883 = vmatmul.msk.f32.gmra.mxu1 %vm286_vm1, %v5563_v30 }
  0xee   : > { %4888 = vmatmul.msk.f32.gmra.mxu2 %vm286_vm1, %v5563_v30 }
  0xef   : > { %4893 = vmatmul.msk.f32.gmra.mxu3 %vm286_vm1, %v5563_v30  ;;  %v1587_v30 = vld.sshfl [vmem:[#allocation1 + $0x28] sm:$0xff pattern:$0x75316420] }
  0xf0   : > { %1592 = vst [vmem:[#allocation1 + $0x20] ss:$2 sm:$0xff] %v5522_v17 }
  0xf1   : > { %1602 = vrot.lane.b32.xlu0 %v1584_v25, %s5425_s8 }
  0xf2   : > { %1569 = vrot.lane.b32.xlu1 %v5533_v21, %s5424_s7 }
  0xf5   : > { %4895 = vmatmul.msk.f32.vlgmr.msrb.gmra.mxu0 %vm286_vm1, %v5472_v0  ;;  %4900 = vmatmul.msk.f32.vlgmr.msrb.gmra.mxu1 %vm286_vm1, %v5472_v0 }
  0xf6   : > { %4905 = vmatmul.msk.f32.vlgmr.msrb.gmra.mxu2 %vm286_vm1, %v5472_v0  ;;  %4934 = vmatpush.msk.msrb.mxu0 %vm295_vm2, %v5638_v8 }
  0xf7   : > { %4910 = vmatmul.msk.f32.vlgmr.msrb.gmra.mxu3 %vm286_vm1, %v5472_v0  ;;  %4944 = vmatpush.msk.msrb.mxu2 %vm295_vm2, %v5600_v48  ;;  %v1101_v48 = vpop.permute.xlu2 %1100 }
  0xf8   : > { %4949 = vmatpush.msk.msrb.mxu3 %vm295_vm2, %v5602_v49  ;;  %4939 = vmatpush.msk.msrb.mxu1 %vm295_vm2, %v5640_v9  ;;  %v1583_v49 = vld.sshfl [vmem:[#allocation1 + $0x8] sm:$0xff pattern:$0x75316420]  ;;  %v1127_v58 = vsel %vm1126_vm3, %v1101_v48, %v1103_v55  ;;  %v1597_v55 = vld.sshfl [vmem:[#allocation1 + $0x20] sm:$0xff pattern:$0x75316420] }
  0xf9   : > { %1573 = vrot.lane.b32.xlu0 %v5539_v22, %s5424_s7  ;;  %1600 = vrot.lane.b32.xlu2 %v1583_v49, %s5425_s8  ;;  %1590 = vst [vmem:[#allocation1] ss:$2 sm:$0xff] %v5501_v5 }
  0xfa   : > { %1612 = vrot.lane.b32.xlu1 %v1589_v46, %s5425_s8  ;;  %2077 = vst [vmem:[#allocation1 + $0x20] ss:$2 sm:$0xff] %v5491_v3 }
  0xfd   : > { %4896 = vmatmul.msk.f32.gmra.mxu0 %vm286_vm1, %v5533_v21  ;;  %4901 = vmatmul.msk.f32.gmra.mxu1 %vm286_vm1, %v5533_v21  ;;  %v5789_v29 = vpop.f32.mrf.mxu1 }
  0xfe   : > { %4906 = vmatmul.msk.f32.gmra.mxu2 %vm286_vm1, %v5533_v21  ;;  %8272 = vst [vmem:[#allocation4_spill] sm:$0xff] %v5789_v29 }
  0xff   : > { %4911 = vmatmul.msk.f32.gmra.mxu3 %vm286_vm1, %v5533_v21  ;;  %v5870_v59 = vpop.permute.xlu2 %1071 }
 0x100   : > { %v1594_v7 = vld.sshfl [vmem:[#allocation1 + $0x8] sm:$0xff pattern:$0x75316420] }
 0x101   : > { %1608 = vrot.lane.b32.xlu0 %v1587_v30, %s5425_s8  ;;  %1571 = vrot.lane.b32.xlu2 %v5511_v13, %s5424_s7 }
 0x102   : > { %1610 = vrot.lane.b32.xlu1 %v1588_v54, %s5425_s8 }
 0x105   : > { %4897 = vmatmul.msk.f32.gmra.mxu0 %vm286_vm1, %v5511_v13  ;;  %4902 = vmatmul.msk.f32.gmra.mxu1 %vm286_vm1, %v5511_v13 }
 0x106   : > { %4907 = vmatmul.msk.f32.gmra.mxu2 %vm286_vm1, %v5511_v13 }
 0x107   : > { %4912 = vmatmul.msk.f32.gmra.mxu3 %vm286_vm1, %v5511_v13  ;;  %v1115_v9 = vpop.permute.xlu2 %1114 }
 0x108   : > { %v1134_v27 = vsel %vm1126_vm3, %v1115_v9, %v1117_v26 }
 0x109   : > { %1622 = vrot.lane.b32.xlu0 %v1597_v55, %s5425_s8 }
 0x10a   : > { %1616 = vrot.lane.b32.xlu1 %v1594_v7, %s5425_s8 }
 0x10d   : > { %4898 = vmatmul.msk.f32.gmra.mxu0 %vm286_vm1, %v5539_v22  ;;  %4903 = vmatmul.msk.f32.gmra.mxu1 %vm286_vm1, %v5539_v22  ;;  %v5787_v28 = vpop.f32.mrf.mxu0 }
 0x10e   : > { %4908 = vmatmul.msk.f32.gmra.mxu2 %vm286_vm1, %v5539_v22  ;;  %8271 = vst [vmem:[#allocation3_spill] sm:$0xff] %v5787_v28 }
 0x10f   : > { %4913 = vmatmul.msk.f32.gmra.mxu3 %vm286_vm1, %v5539_v22 }
 0x112   : > { %v5801_v31 = vpop.f32.mrf.mxu2 }
 0x115   : > { %4915 = vmatmul.msk.f32.vlgmr.msra.gmra.mxu0 %vm286_vm1, %v5472_v0  ;;  %4920 = vmatmul.msk.f32.vlgmr.msra.gmra.mxu1 %vm286_vm1, %v5472_v0 }
 0x116   : > { %4925 = vmatmul.msk.f32.vlgmr.msra.gmra.mxu2 %vm286_vm1, %v5472_v0  ;;  %4954 = vmatpush.msk.msra.mxu0 %vm295_vm2, %v1127_v58 }
 0x117   : > { %4930 = vmatmul.msk.f32.vlgmr.msra.gmra.mxu3 %vm286_vm1, %v5472_v0  ;;  %4964 = vmatpush.msk.msra.mxu2 %vm295_vm2, %v1129_v43  ;;  %v1593_v43 = vld.sshfl [vmem:[#allocation1] sm:$0xff pattern:$0x75316420] }
 0x118   : > { %4969 = vmatpush.msk.msra.mxu3 %vm295_vm2, %v1130_v45  ;;  %4959 = vmatpush.msk.msra.mxu1 %vm295_vm2, %v1128_v57  ;;  %2073 = vst [vmem:[#allocation1] ss:$2 sm:$0xff] %v5488_v2 }
 0x119   : > { %1614 = vrot.lane.b32.xlu2 %v1593_v43, %s5425_s8  ;;  %v1125_v43 = vpop.permute.xlu1 %1124 }
 0x11a   : > { %v5805_v33 = vpop.f32.mrf.mxu0  ;;  %v5807_v34 = vpop.f32.mrf.mxu1 }
 0x11b   : > { %8273 = vst [vmem:[#allocation5_spill] sm:$0xff] %v5805_v33  ;;  %v5811_v35 = vpop.f32.mrf.mxu3 }
 0x11c   : > { %8274 = vst [vmem:[#allocation6_spill] sm:$0xff] %v5807_v34 }
 0x11d   : > { %4916 = vmatmul.msk.f32.gmra.mxu0 %vm286_vm1, %v5533_v21  ;;  %4921 = vmatmul.msk.f32.gmra.mxu1 %vm286_vm1, %v5533_v21 }
 0x11e   : > { %4926 = vmatmul.msk.f32.gmra.mxu2 %vm286_vm1, %v5533_v21 }
 0x11f   : > { %4931 = vmatmul.msk.f32.gmra.mxu3 %vm286_vm1, %v5533_v21 }
 0x121   : > { %v5821_v37 = vpop.f32.mrf.mxu2 }
 0x122   : > { %v5823_v39 = vpop.f32.mrf.mxu0  ;;  %v5825_v40 = vpop.f32.mrf.mxu1 }
 0x123   : > { %8275 = vst [vmem:[#allocation7_spill] sm:$0xff] %v5823_v39  ;;  %v5829_v41 = vpop.f32.mrf.mxu3 }
 0x124   : > { %8276 = vst [vmem:[#allocation8_spill] sm:$0xff] %v5825_v40 }
 0x125   : > { %4917 = vmatmul.msk.f32.gmra.mxu0 %vm286_vm1, %v5511_v13  ;;  %4922 = vmatmul.msk.f32.gmra.mxu1 %vm286_vm1, %v5511_v13 }
 0x126   : > { %4927 = vmatmul.msk.f32.gmra.mxu2 %vm286_vm1, %v5511_v13 }
 0x127   : > { %4932 = vmatmul.msk.f32.gmra.mxu3 %vm286_vm1, %v5511_v13 }
 0x129   : > { %v5844_v47 = vpop.f32.mrf.mxu2 }
 0x12a   : > { %v5846_v50 = vpop.f32.mrf.mxu0  ;;  %v5848_v51 = vpop.f32.mrf.mxu1 }
 0x12b   : > { %8277 = vst [vmem:[#allocation9_spill] sm:$0xff] %v5846_v50  ;;  %v5852_v52 = vpop.f32.mrf.mxu3 }
 0x12c   : > { %8278 = vst [vmem:[#allocation10_spill] sm:$0xff] %v5848_v51 }
 0x12d   : > { %4918 = vmatmul.msk.f32.gmra.mxu0 %vm286_vm1, %v5539_v22  ;;  %4923 = vmatmul.msk.f32.gmra.mxu1 %vm286_vm1, %v5539_v22 }
 0x12e   : > { %4928 = vmatmul.msk.f32.gmra.mxu2 %vm286_vm1, %v5539_v22 }
 0x12f   : > { %4933 = vmatmul.msk.f32.gmra.mxu3 %vm286_vm1, %v5539_v22 }
 0x131   : > { %v5866_v56 = vpop.f32.mrf.mxu2 }
 0x132   : > { %v5872_v60 = vpop.f32.mrf.mxu0  ;;  %v5874_v61 = vpop.f32.mrf.mxu1 }
 0x133   : > { %8279 = vst [vmem:[#allocation11_spill] sm:$0xff] %v5872_v60  ;;  %v5878_v62 = vpop.f32.mrf.mxu3  ;;  %v1113_v18 = vpop.permute.xlu2 %1112 }
 0x134   : > { %8280 = vst [vmem:[#allocation12_spill] sm:$0xff] %v5874_v61  ;;  %v1132_v23 = vsel %vm1126_vm3, %v1111_v63, %v1113_v18  ;;  %v1133_v24 = vsel %vm1126_vm3, %v1113_v18, %v1115_v9 }
 0x135   : > { %4935 = vmatmul.msk.f32.vlgmr.msrb.gmra.mxu0 %vm286_vm1, %v5472_v0  ;;  %4940 = vmatmul.msk.f32.vlgmr.msrb.gmra.mxu1 %vm286_vm1, %v5472_v0 }
 0x136   : > { %4945 = vmatmul.msk.f32.vlgmr.msrb.gmra.mxu2 %vm286_vm1, %v5472_v0  ;;  %4974 = vmatpush.msk.msrb.mxu0 %vm295_vm2, %v1131_v6 }
 0x137   : > { %4950 = vmatmul.msk.f32.vlgmr.msrb.gmra.mxu3 %vm286_vm1, %v5472_v0  ;;  %4984 = vmatpush.msk.msrb.mxu2 %vm295_vm2, %v1133_v24 }
 0x138   : > { %4979 = vmatpush.msk.msrb.mxu1 %vm295_vm2, %v1132_v23  ;;  %4989 = vmatpush.msk.msrb.mxu3 %vm295_vm2, %v1134_v27  ;;  %v1596_v27 = vld.sshfl [vmem:[#allocation1 + $0x18] sm:$0xff pattern:$0x75316420] }
 0x139   : > { %v5893_v8 = vpop.f32.mrf.mxu2  ;;  %1620 = vrot.lane.b32.xlu2 %v1596_v27, %s5425_s8 }
 0x13a   : > { %v5895_v10 = vpop.f32.mrf.mxu0  ;;  %v5897_v11 = vpop.f32.mrf.mxu1 }
 0x13b   : > { %8281 = vst [vmem:[#allocation13_spill] sm:$0xff] %v5895_v10  ;;  %v5899_v12 = vpop.f32.mrf.mxu3  ;;  %v1119_v44 = vpop.permute.xlu2 %1118 }
 0x13c   : > { %8282 = vst [vmem:[#allocation14_spill] sm:$0xff] %v5897_v11  ;;  %v1135_v54 = vsel %vm1126_vm3, %v1117_v26, %v1119_v44  ;;  %v1595_v26 = vld.sshfl [vmem:[#allocation1 + $0x10] sm:$0xff pattern:$0x75316420] }
 0x13d   : > { %4936 = vmatmul.msk.f32.gmra.mxu0 %vm286_vm1, %v5533_v21  ;;  %4941 = vmatmul.msk.f32.gmra.mxu1 %vm286_vm1, %v5533_v21  ;;  %2075 = vst [vmem:[#allocation1 + $0x10] ss:$2 sm:$0xff] %v5485_v1 }
 0x13e   : > { %4946 = vmatmul.msk.f32.gmra.mxu2 %vm286_vm1, %v5533_v21 }
 0x13f   : > { %4951 = vmatmul.msk.f32.gmra.mxu3 %vm286_vm1, %v5533_v21 }
 0x141   : > { %v5911_v15 = vpop.f32.mrf.mxu2  ;;  %1618 = vrot.lane.b32.xlu2 %v1595_v26, %s5425_s8 }
 0x142   : > { %v5913_v19 = vpop.f32.mrf.mxu0  ;;  %v5915_v20 = vpop.f32.mrf.mxu1 }
 0x143   : > { %8283 = vst [vmem:[#allocation15_spill] sm:$0xff] %v5913_v19  ;;  %v5919_v25 = vpop.f32.mrf.mxu3 }
 0x144   : > { %8284 = vst [vmem:[#allocation16_spill] sm:$0xff] %v5915_v20  ;;  %v2083_v27 = vld.sshfl [vmem:[#allocation1 + $0x18] sm:$0xff pattern:$0x75316420] }
 0x145   : > { %4937 = vmatmul.msk.f32.gmra.mxu0 %vm286_vm1, %v5511_v13  ;;  %4942 = vmatmul.msk.f32.gmra.mxu1 %vm286_vm1, %v5511_v13 }
 0x146   : > { %4947 = vmatmul.msk.f32.gmra.mxu2 %vm286_vm1, %v5511_v13  ;;  %2102 = vrot.lane.b32.xlu0 %v2083_v27, %s5426_s9 }
 0x147   : > { %4952 = vmatmul.msk.f32.gmra.mxu3 %vm286_vm1, %v5511_v13 }
 0x149   : > { %v5933_v30 = vpop.f32.mrf.mxu2  ;;  %2065 = vrot.lane.b32.xlu2 %v5472_v0, %s5427_s10 }
 0x14a   : > { %v5935_v36 = vpop.f32.mrf.mxu0  ;;  %v5937_v38 = vpop.f32.mrf.mxu1 }
 0x14b   : > { %8285 = vst [vmem:[#allocation17_spill] sm:$0xff] %v5935_v36  ;;  %v5939_v42 = vpop.f32.mrf.mxu3  ;;  %v1123_v7 = vpop.permute.xlu0 %1122 }
 0x14c   : > { %8286 = vst [vmem:[#allocation18_spill] sm:$0xff] %v5937_v38  ;;  %v1138_v55 = vsel %vm1126_vm3, %v1123_v7, %v1125_v43  ;;  %v1607_v36 = vpop.permute.xlu2 %1606 }
 0x14d   : > { %4938 = vmatmul.msk.f32.gmra.mxu0 %vm286_vm1, %v5539_v22  ;;  %4943 = vmatmul.msk.f32.gmra.mxu1 %vm286_vm1, %v5539_v22 }
 0x14e   : > { %4948 = vmatmul.msk.f32.gmra.mxu2 %vm286_vm1, %v5539_v22 }
 0x14f   : > { %4953 = vmatmul.msk.f32.gmra.mxu3 %vm286_vm1, %v5539_v22 }
 0x151   : > { %v5951_v45 = vpop.f32.mrf.mxu2 }
 0x152   : > { %v5953_v46 = vpop.f32.mrf.mxu0  ;;  %v5955_v48 = vpop.f32.mrf.mxu1 }
 0x153   : > { %8287 = vst [vmem:[#allocation19_spill] sm:$0xff] %v5953_v46  ;;  %v5957_v49 = vpop.f32.mrf.mxu3 }
 0x154   : > { %8288 = vst [vmem:[#allocation20_spill] sm:$0xff] %v5955_v48  ;;  %v1605_v38 = vpop.permute.xlu1 %1604  ;;  %v1601_v10 = vpop.permute.xlu2 %1600 }
 0x155   : > { %4955 = vmatmul.msk.f32.vlgmr.msra.gmra.mxu0 %vm286_vm1, %v5803_v32  ;;  %4960 = vmatmul.msk.f32.vlgmr.msra.gmra.mxu1 %vm286_vm1, %v5803_v32  ;;  %v1628_v20 = vsel %vm1624_vm4, %v1605_v38, %v1607_v36 }
 0x156   : > { %4965 = vmatmul.msk.f32.vlgmr.msra.gmra.mxu2 %vm286_vm1, %v5803_v32  ;;  %4994 = vmatpush.msk.msra.mxu0 %vm295_vm2, %v1135_v54  ;;  %v1121_v54 = vpop.permute.xlu0 %1120 }
 0x157   : > { %4970 = vmatmul.msk.f32.vlgmr.msra.gmra.mxu3 %vm286_vm1, %v5803_v32 }
 0x158   : > { %5009 = vmatpush.msk.msra.mxu3 %vm295_vm2, %v1138_v55 }
 0x159   : > { %v5971_v57 = vpop.f32.mrf.mxu2 }
 0x15a   : > { %v5973_v58 = vpop.f32.mrf.mxu0  ;;  %v5975_v63 = vpop.f32.mrf.mxu1 }
 0x15b   : > { %8289 = vst [vmem:[#allocation21_spill] sm:$0xff] %v5973_v58  ;;  %v5977_v6 = vpop.f32.mrf.mxu3 }
 0x15c   : > { %8290 = vst [vmem:[#allocation22_spill] sm:$0xff] %v5975_v63  ;;  %v1599_v61 = vpop.permute.xlu1 %1598 }
 0x15d   : > { %4956 = vmatmul.msk.f32.gmra.mxu0 %vm286_vm1, %v5870_v59  ;;  %4961 = vmatmul.msk.f32.gmra.mxu1 %vm286_vm1, %v5870_v59 }
 0x15e   : > { %4966 = vmatmul.msk.f32.gmra.mxu2 %vm286_vm1, %v5870_v59 }
 0x15f   : > { %4971 = vmatmul.msk.f32.gmra.mxu3 %vm286_vm1, %v5870_v59 }
 0x161   : > { %v5987_v9 = vpop.f32.mrf.mxu2 }
 0x162   : > { %v5989_v18 = vpop.f32.mrf.mxu0  ;;  %v5991_v23 = vpop.f32.mrf.mxu1 }
 0x163   : > { %8291 = vst [vmem:[#allocation23_spill] sm:$0xff] %v5989_v18  ;;  %v5993_v24 = vpop.f32.mrf.mxu3  ;;  %v1136_v18 = vsel %vm1126_vm3, %v1119_v44, %v1121_v54 }
 0x164   : > { %8292 = vst [vmem:[#allocation24_spill] sm:$0xff] %v5991_v23  ;;  %v1137_v23 = vsel %vm1126_vm3, %v1121_v54, %v1123_v7  ;;  %4999 = vmatpush.msk.msra.mxu1 %vm295_vm2, %v1136_v18  ;;  %v2084_v7 = vld.sshfl [vmem:[#allocation1 + $0x20] sm:$0xff pattern:$0x75316420] }
 0x165   : > { %4957 = vmatmul.msk.f32.gmra.mxu0 %vm286_vm1, %v5901_v14  ;;  %4962 = vmatmul.msk.f32.gmra.mxu1 %vm286_vm1, %v5901_v14 }
 0x166   : > { %4967 = vmatmul.msk.f32.gmra.mxu2 %vm286_vm1, %v5901_v14  ;;  %2104 = vrot.lane.b32.xlu1 %v2084_v7, %s5426_s9 }
 0x167   : > { %4972 = vmatmul.msk.f32.gmra.mxu3 %vm286_vm1, %v5901_v14  ;;  %5004 = vmatpush.msk.msra.mxu2 %vm295_vm2, %v1137_v23  ;;  %v6032_v23 = vpop.permute.xlu0 %1567 }
 0x169   : > { %v6011_v63 = vpop.f32.mrf.mxu2 }
 0x16a   : > { %8293 = vst [vmem:[#allocation25_spill] sm:$0xff] %v6011_v63  ;;  %v6013_v43 = vpop.f32.mrf.mxu0  ;;  %v6015_v44 = vpop.f32.mrf.mxu1 }
 0x16b   : > { %8294 = vst [vmem:[#allocation26_spill] sm:$0xff] %v6013_v43  ;;  %v6017_v54 = vpop.f32.mrf.mxu3  ;;  %v2081_v43 = vld.sshfl [vmem:[#allocation1 + $0x8] sm:$0xff pattern:$0x75316420] }
 0x16c   : > { %8295 = vst [vmem:[#allocation27_spill] sm:$0xff] %v6015_v44  ;;  %v2080_v44 = vld.sshfl [vmem:[#allocation1] sm:$0xff pattern:$0x75316420] }
 0x16d   : > { %8296 = vst [vmem:[#allocation28_spill] sm:$0xff] %v6017_v54  ;;  %4958 = vmatmul.msk.f32.gmra.mxu0 %vm286_vm1, %v5854_v53  ;;  %4963 = vmatmul.msk.f32.gmra.mxu1 %vm286_vm1, %v5854_v53 }
 0x16e   : > { %4968 = vmatmul.msk.f32.gmra.mxu2 %vm286_vm1, %v5854_v53  ;;  %2098 = vrot.lane.b32.xlu1 %v2081_v43, %s5426_s9  ;;  %2088 = vst [vmem:[#allocation1] ss:$2 sm:$0xff] %v5501_v5 }
 0x16f   : > { %4973 = vmatmul.msk.f32.gmra.mxu3 %vm286_vm1, %v5854_v53  ;;  %2096 = vrot.lane.b32.xlu0 %v2080_v44, %s5426_s9  ;;  %v1603_v48 = vpop.permute.xlu0 %1602  ;;  %v2082_v44 = vld.sshfl [vmem:[#allocation1 + $0x10] sm:$0xff pattern:$0x75316420] }
 0x170   : > { %2089 = vst [vmem:[#allocation1 + $0x10] ss:$2 sm:$0xff] %v5519_v16  ;;  %v1627_v0 = vsel %vm1624_vm4, %v1603_v48, %v1605_v38  ;;  %2100 = vrot.lane.b32.xlu2 %v2082_v44, %s5426_s9 }
 0x171   : > { %v6030_v18 = vpop.f32.mrf.mxu2 }
 0x172   : > { %8297 = vst [vmem:[#allocation29_spill] sm:$0xff] %v6030_v18  ;;  %v6034_v55 = vpop.f32.mrf.mxu0  ;;  %v6036_v7 = vpop.f32.mrf.mxu1 }
 0x173   : > { %8298 = vst [vmem:[#allocation30_spill] sm:$0xff] %v6034_v55  ;;  %v6038_v58 = vpop.f32.mrf.mxu3 }
 0x174   : > { %8299 = vst [vmem:[#allocation31_spill] sm:$0xff] %v6036_v7 }
 0x175   : > { %8300 = vst [vmem:[#allocation32_spill] sm:$0xff] %v6038_v58  ;;  %4975 = vmatmul.msk.f32.vlgmr.msrb.gmra.mxu0 %vm286_vm1, %v5803_v32  ;;  %4980 = vmatmul.msk.f32.vlgmr.msrb.gmra.mxu1 %vm286_vm1, %v5803_v32  ;;  %v2091_v51 = vld.sshfl [vmem:[#allocation1] sm:$0xff pattern:$0x75316420] }
 0x176   : > { %4985 = vmatmul.msk.f32.vlgmr.msrb.gmra.mxu2 %vm286_vm1, %v5803_v32  ;;  %2069 = vrot.lane.b32.xlu1 %v5511_v13, %s5427_s10 }
 0x177   : > { %4990 = vmatmul.msk.f32.vlgmr.msrb.gmra.mxu3 %vm286_vm1, %v5803_v32  ;;  %2067 = vrot.lane.b32.xlu0 %v5533_v21, %s5427_s10  ;;  %v1626_v21 = vsel %vm1624_vm4, %v1601_v10, %v1603_v48  ;;  %v6095_v44 = vpop.permute.xlu0 %1573 }
 0x178   : > { %5024 = vmatpush.msk.msrb.mxu2 %vm295_vm2, %v1627_v0  ;;  %5029 = vmatpush.msk.msrb.mxu3 %vm295_vm2, %v1628_v20  ;;  %v1625_v20 = vsel %vm1624_vm4, %v1599_v61, %v1601_v10  ;;  %v2087_v0 = vld.sshfl [vmem:[#allocation1 + $0x38] sm:$0xff pattern:$0x75316420] }
 0x179   : > { %v6053_v26 = vpop.f32.mrf.mxu2  ;;  %5014 = vmatpush.msk.msrb.mxu0 %vm295_vm2, %v1625_v20  ;;  %2071 = vrot.lane.b32.xlu2 %v5539_v22, %s5427_s10  ;;  %v2085_v20 = vld.sshfl [vmem:[#allocation1 + $0x28] sm:$0xff pattern:$0x75316420]  ;;  %v2086_v22 = vld.sshfl [vmem:[#allocation1 + $0x30] sm:$0xff pattern:$0x75316420] }
 0x17a   : > { %v6055_v43 = vpop.f32.mrf.mxu0  ;;  %v6057_v27 = vpop.f32.mrf.mxu1  ;;  %5019 = vmatpush.msk.msrb.mxu1 %vm295_vm2, %v1626_v21  ;;  %2090 = vst [vmem:[#allocation1 + $0x20] ss:$2 sm:$0xff] %v5522_v17 }
 0x17b   : > { %8301 = vst [vmem:[#allocation33_spill] sm:$0xff] %v6055_v43  ;;  %v6059_v46 = vpop.f32.mrf.mxu3 }
 0x17c   : > { %8302 = vst [vmem:[#allocation34_spill] sm:$0xff] %v6057_v27  ;;  %v2094_v27 = vld.sshfl [vmem:[#allocation1 + $0x18] sm:$0xff pattern:$0x75316420] }
 0x17d   : > { %4976 = vmatmul.msk.f32.gmra.mxu0 %vm286_vm1, %v5870_v59  ;;  %4981 = vmatmul.msk.f32.gmra.mxu1 %vm286_vm1, %v5870_v59  ;;  %2577 = vst [vmem:[#allocation1 + $0x30] ss:$2 sm:$0xff] %v5495_v4 }
 0x17e   : > { %4986 = vmatmul.msk.f32.gmra.mxu2 %vm286_vm1, %v5870_v59  ;;  %2112 = vrot.lane.b32.xlu1 %v2091_v51, %s5426_s9 }
 0x17f   : > { %4991 = vmatmul.msk.f32.gmra.mxu3 %vm286_vm1, %v5870_v59  ;;  %2110 = vrot.lane.b32.xlu0 %v2087_v0, %s5426_s9  ;;  %v1609_v21 = vpop.permute.xlu0 %1608 }
 0x180   : > { %v1629_v29 = vsel %vm1624_vm4, %v1607_v36, %v1609_v21 }
 0x181   : > { %v6079_v13 = vpop.f32.mrf.mxu2  ;;  %2106 = vrot.lane.b32.xlu2 %v2085_v20, %s5426_s9  ;;  %v2092_v20 = vld.sshfl [vmem:[#allocation1 + $0x8] sm:$0xff pattern:$0x75316420]  ;;  %v2095_v63 = vld.sshfl [vmem:[#allocation1 + $0x20] sm:$0xff pattern:$0x75316420] }
 0x182   : > { %v6081_v19 = vpop.f32.mrf.mxu0  ;;  %v6083_v38 = vpop.f32.mrf.mxu1  ;;  %2571 = vst [vmem:[#allocation1] ss:$2 sm:$0xff] %v5488_v2 }
 0x183   : > { %8303 = vst [vmem:[#allocation35_spill] sm:$0xff] %v6081_v19  ;;  %v6085_v11 = vpop.f32.mrf.mxu3 }
 0x184   : > { %8304 = vst [vmem:[#allocation36_spill] sm:$0xff] %v6083_v38 }
 0x185   : > { %4977 = vmatmul.msk.f32.gmra.mxu0 %vm286_vm1, %v5901_v14  ;;  %4982 = vmatmul.msk.f32.gmra.mxu1 %vm286_vm1, %v5901_v14  ;;  %2575 = vst [vmem:[#allocation1 + $0x20] ss:$2 sm:$0xff] %v5491_v3 }
 0x186   : > { %4987 = vmatmul.msk.f32.gmra.mxu2 %vm286_vm1, %v5901_v14  ;;  %2118 = vrot.lane.b32.xlu1 %v2094_v27, %s5426_s9 }
 0x187   : > { %4992 = vmatmul.msk.f32.gmra.mxu3 %vm286_vm1, %v5901_v14  ;;  %2108 = vrot.lane.b32.xlu0 %v2086_v22, %s5426_s9  ;;  %v1623_v33 = vpop.permute.xlu0 %1622 }
 0x189   : > { %v6104_v48 = vpop.f32.mrf.mxu2  ;;  %2120 = vrot.lane.b32.xlu2 %v2095_v63, %s5426_s9 }
 0x18a   : > { %v6106_v61 = vpop.f32.mrf.mxu0  ;;  %v6108_v10 = vpop.f32.mrf.mxu1 }
 0x18b   : > { %8305 = vst [vmem:[#allocation37_spill] sm:$0xff] %v6106_v61  ;;  %v6110_v60 = vpop.f32.mrf.mxu3 }
 0x18c   : > { %8306 = vst [vmem:[#allocation38_spill] sm:$0xff] %v6108_v10  ;;  %v6133_v10 = vpop.permute.xlu1 %1569 }
 0x18d   : > { %4978 = vmatmul.msk.f32.gmra.mxu0 %vm286_vm1, %v5854_v53  ;;  %4983 = vmatmul.msk.f32.gmra.mxu1 %vm286_vm1, %v5854_v53 }
 0x18e   : > { %4988 = vmatmul.msk.f32.gmra.mxu2 %vm286_vm1, %v5854_v53 }
 0x18f   : > { %4993 = vmatmul.msk.f32.gmra.mxu3 %vm286_vm1, %v5854_v53  ;;  %2114 = vrot.lane.b32.xlu0 %v2092_v20, %s5426_s9 }
 0x191   : > { %v6124_v0 = vpop.f32.mrf.mxu2 }
 0x192   : > { %v6126_v61 = vpop.f32.mrf.mxu0  ;;  %v6128_v50 = vpop.f32.mrf.mxu1 }
 0x193   : > { %8307 = vst [vmem:[#allocation39_spill] sm:$0xff] %v6126_v61  ;;  %v6130_v7 = vpop.f32.mrf.mxu3 }
 0x194   : > { %8308 = vst [vmem:[#allocation40_spill] sm:$0xff] %v6128_v50  ;;  %v1613_v38 = vpop.permute.xlu1 %1612 }
 0x195   : > { %4995 = vmatmul.msk.f32.vlgmr.msra.gmra.mxu0 %vm286_vm1, %v5803_v32  ;;  %5000 = vmatmul.msk.f32.vlgmr.msra.gmra.mxu1 %vm286_vm1, %v5803_v32 }
 0x196   : > { %5005 = vmatmul.msk.f32.vlgmr.msra.gmra.mxu2 %vm286_vm1, %v5803_v32  ;;  %5034 = vmatpush.msk.msra.mxu0 %vm295_vm2, %v1629_v29  ;;  %v6161_v29 = vpop.permute.xlu2 %1571 }
 0x197   : > { %5010 = vmatmul.msk.f32.vlgmr.msra.gmra.mxu3 %vm286_vm1, %v5803_v32 }
 0x199   : > { %v6147_v36 = vpop.f32.mrf.mxu2 }
 0x19a   : > { %v6149_v22 = vpop.f32.mrf.mxu0  ;;  %v6151_v50 = vpop.f32.mrf.mxu1 }
 0x19b   : > { %8309 = vst [vmem:[#allocation41_spill] sm:$0xff] %v6149_v22  ;;  %v6153_v61 = vpop.f32.mrf.mxu3 }
 0x19c   : > { %8310 = vst [vmem:[#allocation42_spill] sm:$0xff] %v6151_v50  ;;  %v1611_v22 = vpop.permute.xlu1 %1610 }
 0x19d   : > { %4996 = vmatmul.msk.f32.gmra.mxu0 %vm286_vm1, %v5870_v59  ;;  %5001 = vmatmul.msk.f32.gmra.mxu1 %vm286_vm1, %v5870_v59  ;;  %v1630_v40 = vsel %vm1624_vm4, %v1609_v21, %v1611_v22  ;;  %v1631_v19 = vsel %vm1624_vm4, %v1611_v22, %v1613_v38 }
 0x19e   : > { %5006 = vmatmul.msk.f32.gmra.mxu2 %vm286_vm1, %v5870_v59  ;;  %5039 = vmatpush.msk.msra.mxu1 %vm295_vm2, %v1630_v40 }
 0x19f   : > { %5011 = vmatmul.msk.f32.gmra.mxu3 %vm286_vm1, %v5870_v59  ;;  %v1615_v59 = vpop.permute.xlu2 %1614  ;;  %5044 = vmatpush.msk.msra.mxu2 %vm295_vm2, %v1631_v19 }
 0x1a1   : > { %v6165_v32 = vpop.f32.mrf.mxu2 }
 0x1a2   : > { %v6167_v51 = vpop.f32.mrf.mxu0  ;;  %v6169_v20 = vpop.f32.mrf.mxu1 }
 0x1a3   : > { %8311 = vst [vmem:[#allocation43_spill] sm:$0xff] %v6167_v51  ;;  %v6171_v50 = vpop.f32.mrf.mxu3 }
 0x1a4   : > { %8312 = vst [vmem:[#allocation44_spill] sm:$0xff] %v6169_v20  ;;  %v1632_v20 = vsel %vm1624_vm4, %v1613_v38, %v1615_v59  ;;  %v1617_v40 = vpop.permute.xlu1 %1616 }
 0x1a5   : > { %4997 = vmatmul.msk.f32.gmra.mxu0 %vm286_vm1, %v5901_v14  ;;  %5002 = vmatmul.msk.f32.gmra.mxu1 %vm286_vm1, %v5901_v14 }
 0x1a6   : > { %5007 = vmatmul.msk.f32.gmra.mxu2 %vm286_vm1, %v5901_v14  ;;  %5049 = vmatpush.msk.msra.mxu3 %vm295_vm2, %v1632_v20 }
 0x1a7   : > { %5012 = vmatmul.msk.f32.gmra.mxu3 %vm286_vm1, %v5901_v14 }
 0x1a9   : > { %v6187_v21 = vpop.f32.mrf.mxu2 }
 0x1aa   : > { %v6189_v22 = vpop.f32.mrf.mxu0  ;;  %v6191_v51 = vpop.f32.mrf.mxu1 }
 0x1ab   : > { %8313 = vst [vmem:[#allocation45_spill] sm:$0xff] %v6189_v22  ;;  %v6193_v39 = vpop.f32.mrf.mxu3  ;;  %v2093_v22 = vld.sshfl [vmem:[#allocation1 + $0x10] sm:$0xff pattern:$0x75316420] }
 0x1ac   : > { %8314 = vst [vmem:[#allocation46_spill] sm:$0xff] %v6191_v51  ;;  %v1633_v51 = vsel %vm1624_vm4, %v1615_v59, %v1617_v40  ;;  %2116 = vrot.lane.b32.xlu1 %v2093_v22, %s5426_s9  ;;  %v1621_v22 = vpop.permute.xlu2 %1620 }
 0x1ad   : > { %4998 = vmatmul.msk.f32.gmra.mxu0 %vm286_vm1, %v5854_v53  ;;  %5003 = vmatmul.msk.f32.gmra.mxu1 %vm286_vm1, %v5854_v53  ;;  %2573 = vst [vmem:[#allocation1 + $0x10] ss:$2 sm:$0xff] %v5485_v1 }
 0x1ae   : > { %5008 = vmatmul.msk.f32.gmra.mxu2 %vm286_vm1, %v5854_v53 }
 0x1af   : > { %5013 = vmatmul.msk.f32.gmra.mxu3 %vm286_vm1, %v5854_v53 }
 0x1b1   : > { %v6204_v14 = vpop.f32.mrf.mxu2 }
 0x1b2   : > { %v6206_v19 = vpop.f32.mrf.mxu1  ;;  %v6208_v38 = vpop.f32.mrf.mxu0 }
 0x1b3   : > { %8315 = vst [vmem:[#allocation47_spill] sm:$0xff] %v6206_v19  ;;  %v6210_v20 = vpop.f32.mrf.mxu3 }
 0x1b4   : > { %8316 = vst [vmem:[#allocation48_spill] sm:$0xff] %v6208_v38  ;;  %v2580_v43 = vld.sshfl [vmem:[#allocation1 + $0x10] sm:$0xff pattern:$0x75316420]  ;;  %v1619_v55 = vpop.permute.xlu2 %1618 }
 0x1b5   : > { %5015 = vmatmul.msk.f32.vlgmr.msrb.gmra.mxu0 %vm286_vm1, %v6032_v23  ;;  %5020 = vmatmul.msk.f32.vlgmr.msrb.gmra.mxu1 %vm286_vm1, %v6032_v23  ;;  %v1634_v18 = vsel %vm1624_vm4, %v1617_v40, %v1619_v55  ;;  %v1635_v54 = vsel %vm1624_vm4, %v1619_v55, %v1621_v22 }
 0x1b6   : > { %5025 = vmatmul.msk.f32.vlgmr.msrb.gmra.mxu2 %vm286_vm1, %v6032_v23  ;;  %5054 = vmatpush.msk.msrb.mxu0 %vm295_vm2, %v1633_v51  ;;  %v6243_v51 = vld [vmem:[%s8262_s1] sm:$0xff] }
 0x1b7   : > { %5030 = vmatmul.msk.f32.vlgmr.msrb.gmra.mxu3 %vm286_vm1, %v6032_v23  ;;  %2563 = vrot.lane.b32.xlu1 %v6243_v51, %s5428_s13 }
 0x1b8   : > { %5064 = vmatpush.msk.msrb.mxu2 %vm295_vm2, %v1635_v54  ;;  %5059 = vmatpush.msk.msrb.mxu1 %vm295_vm2, %v1634_v18 }
 0x1b9   : > { %v6224_v53 = vpop.f32.mrf.mxu2 }
 0x1ba   : > { %v6226_v27 = vpop.f32.mrf.mxu0  ;;  %v6228_v59 = vpop.f32.mrf.mxu1 }
 0x1bb   : > { %8317 = vst [vmem:[#allocation49_spill] sm:$0xff] %v6226_v27  ;;  %v6230_v38 = vpop.f32.mrf.mxu3 }
 0x1bc   : > { %8318 = vst [vmem:[#allocation50_spill] sm:$0xff] %v6228_v59  ;;  %v6297_v54 = vpop.permute.xlu2 %2065 }
 0x1bd   : > { %5016 = vmatmul.msk.f32.gmra.mxu0 %vm286_vm1, %v6133_v10  ;;  %5021 = vmatmul.msk.f32.gmra.mxu1 %vm286_vm1, %v6133_v10 }
 0x1be   : > { %5026 = vmatmul.msk.f32.gmra.mxu2 %vm286_vm1, %v6133_v10 }
 0x1bf   : > { %5031 = vmatmul.msk.f32.gmra.mxu3 %vm286_vm1, %v6133_v10  ;;  %2598 = vrot.lane.b32.xlu1 %v2580_v43, %s5429_s14  ;;  %v2582_v43 = vld.sshfl [vmem:[#allocation1 + $0x20] sm:$0xff pattern:$0x75316420] }
 0x1c0   : > { %2602 = vrot.lane.b32.xlu0 %v2582_v43, %s5429_s14  ;;  %v2579_v43 = vld.sshfl [vmem:[#allocation1 + $0x8] sm:$0xff pattern:$0x75316420] }
 0x1c1   : > { %v6247_v59 = vpop.f32.mrf.mxu2 }
 0x1c2   : > { %v6249_v27 = vpop.f32.mrf.mxu0  ;;  %v6251_v19 = vpop.f32.mrf.mxu1 }
 0x1c3   : > { %8319 = vst [vmem:[#allocation51_spill] sm:$0xff] %v6249_v27  ;;  %v6253_v34 = vpop.f32.mrf.mxu3 }
 0x1c4   : > { %8320 = vst [vmem:[#allocation52_spill] sm:$0xff] %v6251_v19  ;;  %v1636_v19 = vsel %vm1624_vm4, %v1621_v22, %v1623_v33  ;;  %v6291_v33 = vld [vmem:[%s8262_s1 + $0x18] sm:$0xff]  ;;  %v797_v22 = vadd.f32 %v6053_v26, %v5801_v31 }
 0x1c5   : > { %8321 = vst [vmem:[#allocation53_spill] sm:$0xff] %v6253_v34  ;;  %5017 = vmatmul.msk.f32.gmra.mxu0 %vm286_vm1, %v6161_v29  ;;  %5022 = vmatmul.msk.f32.gmra.mxu1 %vm286_vm1, %v6161_v29 }
 0x1c6   : > { %5027 = vmatmul.msk.f32.gmra.mxu2 %vm286_vm1, %v6161_v29  ;;  %5069 = vmatpush.msk.msrb.mxu3 %vm295_vm2, %v1636_v19  ;;  %8324 = vst [vmem:[#allocation56_spill] sm:$0xff] %v6291_v33  ;;  %v2583_v19 = vld.sshfl [vmem:[#allocation1 + $0x28] sm:$0xff pattern:$0x75316420] }
 0x1c7   : > { %5032 = vmatmul.msk.f32.gmra.mxu3 %vm286_vm1, %v6161_v29  ;;  %2569 = vrot.lane.b32.xlu1 %v6291_v33, %s5428_s13  ;;  %2588 = vst [vmem:[#allocation1 + $0x20] ss:$2 sm:$0xff] %v5522_v17 }
 0x1c8   : > { %2596 = vrot.lane.b32.xlu0 %v2579_v43, %s5429_s14 }
 0x1c9   : > { %v6266_v27 = vpop.f32.mrf.mxu2 }
 0x1ca   : > { %v6268_v28 = vpop.f32.mrf.mxu1  ;;  %v6270_v58 = vpop.f32.mrf.mxu0 }
 0x1cb   : > { %8322 = vst [vmem:[#allocation54_spill] sm:$0xff] %v6268_v28  ;;  %v6274_v34 = vpop.f32.mrf.mxu3  ;;  %v826_v28 = vadd.f32 %v6059_v46, %v5811_v35  ;;  %v800_v35 = vadd.f32 %v6079_v13, %v5821_v37 }
 0x1cc   : > { %8323 = vst [vmem:[#allocation55_spill] sm:$0xff] %v6270_v58 }
 0x1cd   : > { %5018 = vmatmul.msk.f32.gmra.mxu0 %vm286_vm1, %v6095_v44  ;;  %5023 = vmatmul.msk.f32.gmra.mxu1 %vm286_vm1, %v6095_v44 }
 0x1ce   : > { %5028 = vmatmul.msk.f32.gmra.mxu2 %vm286_vm1, %v6095_v44 }
 0x1cf   : > { %5033 = vmatmul.msk.f32.gmra.mxu3 %vm286_vm1, %v6095_v44  ;;  %2604 = vrot.lane.b32.xlu1 %v2583_v19, %s5429_s14  ;;  %v2101_v19 = vpop.permute.xlu2 %2100 }
 0x1d1   : > { %v6295_v63 = vpop.f32.mrf.mxu2 }
 0x1d2   : > { %v6299_v18 = vpop.f32.mrf.mxu1  ;;  %v6301_v55 = vpop.f32.mrf.mxu0 }
 0x1d3   : > { %8325 = vst [vmem:[#allocation57_spill] sm:$0xff] %v6299_v18  ;;  %v6303_v40 = vpop.f32.mrf.mxu3 }
 0x1d4   : > { %8326 = vst [vmem:[#allocation58_spill] sm:$0xff] %v6301_v55 }
 0x1d5   : > { %8327 = vst [vmem:[#allocation59_spill] sm:$0xff] %v6303_v40  ;;  %5035 = vmatmul.msk.f32.vlgmr.msra.gmra.mxu0 %vm286_vm1, %v6032_v23  ;;  %5040 = vmatmul.msk.f32.vlgmr.msra.gmra.mxu1 %vm286_vm1, %v6032_v23 }
 0x1d6   : > { %5045 = vmatmul.msk.f32.vlgmr.msra.gmra.mxu2 %vm286_vm1, %v6032_v23 }
 0x1d7   : > { %5050 = vmatmul.msk.f32.vlgmr.msra.gmra.mxu3 %vm286_vm1, %v6032_v23 }
 0x1d8   : > { %v2105_v31 = vpop.permute.xlu1 %2104 }
 0x1d9   : > { %v1246_v58 = vpop.f32.mrf.mxu2 }
 0x1da   : > { %v6320_v18 = vadd.f32 %v1246_v58, %v797_v22  ;;  %v6322_v55 = vpop.f32.mrf.mxu1  ;;  %v6324_v17 = vpop.f32.mrf.mxu0 }
 0x1db   : > { %8328 = vst [vmem:[#allocation60_spill] sm:$0xff] %v6322_v55  ;;  %v1275_v40 = vpop.f32.mrf.mxu3  ;;  %v2581_v55 = vld.sshfl [vmem:[#allocation1 + $0x18] sm:$0xff pattern:$0x75316420] }
 0x1dc   : > { %8329 = vst [vmem:[#allocation61_spill] sm:$0xff] %v6324_v17  ;;  %v6327_v33 = vadd.f32 %v1275_v40, %v826_v28  ;;  %v2103_v28 = vpop.permute.xlu0 %2102  ;;  %v829_v40 = vadd.f32 %v6085_v11, %v5829_v41  ;;  %2600 = vrot.lane.b32.xlu2 %v2581_v55, %s5429_s14  ;;  %v6356_v41 = vld [vmem:[%s8262_s1 + $0x10] sm:$0xff]  ;;  %v6368_v55 = vpop.permute.xlu2 %2071 }
 0x1dd   : > { %5036 = vmatmul.msk.f32.gmra.mxu0 %vm286_vm1, %v6133_v10  ;;  %5041 = vmatmul.msk.f32.gmra.mxu1 %vm286_vm1, %v6133_v10  ;;  %v2125_v58 = vsel %vm2122_vm5, %v2101_v19, %v2103_v28  ;;  %v2126_v26 = vsel %vm2122_vm5, %v2103_v28, %v2105_v31  ;;  %2587 = vst [vmem:[#allocation1 + $0x10] ss:$2 sm:$0xff] %v5519_v16 }
 0x1de   : > { %5046 = vmatmul.msk.f32.gmra.mxu2 %vm286_vm1, %v6133_v10  ;;  %5089 = vmatpush.msk.msra.mxu3 %vm295_vm2, %v2126_v26  ;;  %v803_v28 = vadd.f32 %v6104_v48, %v5844_v47 }
 0x1df   : > { %5051 = vmatmul.msk.f32.gmra.mxu3 %vm286_vm1, %v6133_v10  ;;  %5084 = vmatpush.msk.msra.mxu2 %vm295_vm2, %v2125_v58 }
 0x1e0   : > { %2567 = vrot.lane.b32.xlu0 %v6356_v41, %s5428_s13  ;;  %v2099_v13 = vpop.permute.xlu1 %2098 }
 0x1e1   : > { %v1249_v46 = vpop.f32.mrf.mxu2 }
 0x1e2   : > { %v6343_v22 = vadd.f32 %v1249_v46, %v800_v35  ;;  %v6345_v43 = vpop.f32.mrf.mxu1  ;;  %v6347_v17 = vpop.f32.mrf.mxu0  ;;  %v2124_v35 = vsel %vm2122_vm5, %v2099_v13, %v2101_v19 }
 0x1e3   : > { %8330 = vst [vmem:[#allocation62_spill] sm:$0xff] %v6345_v43  ;;  %v1278_v37 = vpop.f32.mrf.mxu3  ;;  %5079 = vmatpush.msk.msra.mxu1 %vm295_vm2, %v2124_v35  ;;  %v2578_v43 = vld.sshfl [vmem:[#allocation1] sm:$0xff pattern:$0x75316420] }
 0x1e4   : > { %8331 = vst [vmem:[#allocation63_spill] sm:$0xff] %v6347_v17  ;;  %v6360_v11 = vadd.f32 %v1278_v37, %v829_v40  ;;  %v2097_v46 = vpop.permute.xlu0 %2096  ;;  %v832_v40 = vadd.f32 %v6110_v60, %v5852_v52  ;;  %2594 = vrot.lane.b32.xlu2 %v2578_v43, %s5429_s14  ;;  %v806_v52 = vadd.f32 %v6124_v0, %v5866_v56  ;;  %v2107_v60 = vpop.permute.xlu2 %2106  ;;  %v6414_v56 = vld [vmem:[%s8262_s1 + $0x8] sm:$0xff] }
 0x1e5   : > { %5037 = vmatmul.msk.f32.gmra.mxu0 %vm286_vm1, %v6161_v29  ;;  %5042 = vmatmul.msk.f32.gmra.mxu1 %vm286_vm1, %v6161_v29  ;;  %v2123_v26 = vsel %vm2122_vm5, %v2097_v46, %v2099_v13  ;;  %2586 = vst [vmem:[#allocation1] ss:$2 sm:$0xff] %v5501_v5  ;;  %v835_v43 = vadd.f32 %v6130_v7, %v5878_v62 }
 0x1e6   : > { %5047 = vmatmul.msk.f32.gmra.mxu2 %vm286_vm1, %v6161_v29  ;;  %5074 = vmatpush.msk.msra.mxu0 %vm295_vm2, %v2123_v26  ;;  %v2127_v26 = vsel %vm2122_vm5, %v2105_v31, %v2107_v60  ;;  %v913_v0 = vadd.f32 %v6147_v36, %v5893_v8  ;;  %v2585_v8 = vld.sshfl [vmem:[#allocation1 + $0x38] sm:$0xff pattern:$0x75316420]  ;;  %v945_v36 = vadd.f32 %v6171_v50, %v5919_v25  ;;  %v2584_v50 = vld.sshfl [vmem:[#allocation1 + $0x30] sm:$0xff pattern:$0x75316420] }
 0x1e7   : > { %5052 = vmatmul.msk.f32.gmra.mxu3 %vm286_vm1, %v6161_v29  ;;  %3075 = vst [vmem:[#allocation1 + $0x30] ss:$2 sm:$0xff] %v5495_v4  ;;  %v919_v25 = vadd.f32 %v6187_v21, %v5933_v30  ;;  %v2592_v30 = vld.sshfl [vmem:[#allocation1 + $0x18] sm:$0xff pattern:$0x75316420] }
 0x1e9   : > { %v1252_v58 = vpop.f32.mrf.mxu2 }
 0x1ea   : > { %v6379_v37 = vadd.f32 %v1252_v58, %v803_v28  ;;  %v6381_v17 = vpop.f32.mrf.mxu1  ;;  %v6383_v19 = vpop.f32.mrf.mxu0 }
 0x1eb   : > { %8332 = vst [vmem:[#allocation64_spill] sm:$0xff] %v6383_v19  ;;  %v1281_v35 = vpop.f32.mrf.mxu3 }
 0x1ec   : > { %v6388_v47 = vadd.f32 %v1281_v35, %v832_v40  ;;  %v6409_v40 = vpop.permute.xlu0 %2067  ;;  %2565 = vrot.lane.b32.xlu2 %v6414_v56, %s5428_s13  ;;  %v2589_v7 = vld.sshfl [vmem:[#allocation1] sm:$0xff pattern:$0x75316420]  ;;  %v942_v35 = vadd.f32 %v6153_v61, %v5899_v12  ;;  %v916_v12 = vadd.f32 %v6165_v32, %v5911_v15  ;;  %v6453_v61 = vpop.permute.xlu1 %2069 }
 0x1ed   : > { %5038 = vmatmul.msk.f32.gmra.mxu0 %vm286_vm1, %v6095_v44  ;;  %5043 = vmatmul.msk.f32.gmra.mxu1 %vm286_vm1, %v6095_v44 }
 0x1ee   : > { %5048 = vmatmul.msk.f32.gmra.mxu2 %vm286_vm1, %v6095_v44  ;;  %2610 = vrot.lane.b32.xlu0 %v2589_v7, %s5429_s14 }
 0x1ef   : > { %5053 = vmatmul.msk.f32.gmra.mxu3 %vm286_vm1, %v6095_v44 }
 0x1f1   : > { %v1255_v48 = vpop.f32.mrf.mxu2 }
 0x1f2   : > { %v6402_v13 = vadd.f32 %v1255_v48, %v806_v52  ;;  %v6404_v28 = vpop.f32.mrf.mxu1  ;;  %v6406_v46 = vpop.f32.mrf.mxu0 }
 0x1f3   : > { %8333 = vst [vmem:[#allocation65_spill] sm:$0xff] %v6404_v28  ;;  %v1284_v58 = vpop.f32.mrf.mxu3 }
 0x1f4   : > { %8334 = vst [vmem:[#allocation66_spill] sm:$0xff] %v6406_v46  ;;  %v6418_v62 = vadd.f32 %v1284_v58, %v835_v43  ;;  %2608 = vrot.lane.b32.xlu2 %v2585_v8, %s5429_s14 }
 0x1f5   : > { %5055 = vmatmul.msk.f32.vlgmr.msrb.gmra.mxu0 %vm286_vm1, %v6032_v23  ;;  %5060 = vmatmul.msk.f32.vlgmr.msrb.gmra.mxu1 %vm286_vm1, %v6032_v23 }
 0x1f6   : > { %5065 = vmatmul.msk.f32.vlgmr.msrb.gmra.mxu2 %vm286_vm1, %v6032_v23  ;;  %5094 = vmatpush.msk.msrb.mxu0 %vm295_vm2, %v2127_v26  ;;  %v2111_v26 = vpop.permute.xlu0 %2110 }
 0x1f7   : > { %5070 = vmatmul.msk.f32.vlgmr.msrb.gmra.mxu3 %vm286_vm1, %v6032_v23  ;;  %2616 = vrot.lane.b32.xlu0 %v2592_v30, %s5429_s14 }
 0x1f9   : > { %v1362_v31 = vpop.f32.mrf.mxu2 }
 0x1fa   : > { %v6434_v52 = vadd.f32 %v1362_v31, %v913_v0  ;;  %v6436_v48 = vpop.f32.mrf.mxu0  ;;  %v6438_v43 = vpop.f32.mrf.mxu1 }
 0x1fb   : > { %8335 = vst [vmem:[#allocation67_spill] sm:$0xff] %v6436_v48  ;;  %v1391_v58 = vpop.f32.mrf.mxu3 }
 0x1fc   : > { %8336 = vst [vmem:[#allocation68_spill] sm:$0xff] %v6438_v43  ;;  %v6440_v46 = vadd.f32 %v1391_v58, %v942_v35  ;;  %2606 = vrot.lane.b32.xlu2 %v2584_v50, %s5429_s14 }
 0x1fd   : > { %5056 = vmatmul.msk.f32.gmra.mxu0 %vm286_vm1, %v6133_v10  ;;  %5061 = vmatmul.msk.f32.gmra.mxu1 %vm286_vm1, %v6133_v10 }
 0x1fe   : > { %5066 = vmatmul.msk.f32.gmra.mxu2 %vm286_vm1, %v6133_v10  ;;  %v2109_v58 = vpop.permute.xlu0 %2108 }
 0x1ff   : > { %5071 = vmatmul.msk.f32.gmra.mxu3 %vm286_vm1, %v6133_v10  ;;  %v2128_v8 = vsel %vm2122_vm5, %v2107_v60, %v2109_v58  ;;  %v2129_v15 = vsel %vm2122_vm5, %v2109_v58, %v2111_v26  ;;  %v2113_v60 = vpop.permute.xlu1 %2112 }
 0x200   : > { %5099 = vmatpush.msk.msrb.mxu1 %vm295_vm2, %v2128_v8  ;;  %5104 = vmatpush.msk.msrb.mxu2 %vm295_vm2, %v2129_v15  ;;  %v951_v15 = vadd.f32 %v6210_v20, %v5957_v49  ;;  %v1029_v49 = vadd.f32 %v6224_v53, %v5971_v57  ;;  %v1058_v20 = vadd.f32 %v6230_v38, %v5977_v6  ;;  %v8345_v53 = vld [vmem:[#allocation53_spill] sm:$0xff] }
 0x201   : > { %v1365_v23 = vpop.f32.mrf.mxu2  ;;  %v1032_v57 = vadd.f32 %v6247_v59, %v5987_v9  ;;  %v2121_v59 = vpop.permute.xlu2 %2120 }
 0x202   : > { %v6457_v7 = vadd.f32 %v1365_v23, %v916_v12  ;;  %v6459_v0 = vpop.f32.mrf.mxu0  ;;  %v6461_v31 = vpop.f32.mrf.mxu1  ;;  %v948_v12 = vadd.f32 %v6193_v39, %v5939_v42  ;;  %v2590_v39 = vld.sshfl [vmem:[#allocation1 + $0x8] sm:$0xff pattern:$0x75316420]  ;;  %v922_v42 = vadd.f32 %v6204_v14, %v5951_v45  ;;  %v2591_v45 = vld.sshfl [vmem:[#allocation1 + $0x10] sm:$0xff pattern:$0x75316420] }
 0x203   : > { %8337 = vst [vmem:[#allocation69_spill] sm:$0xff] %v6459_v0  ;;  %v1394_v35 = vpop.f32.mrf.mxu3  ;;  %2614 = vrot.lane.b32.xlu0 %v2591_v45, %s5429_s14 }
 0x204   : > { %8338 = vst [vmem:[#allocation70_spill] sm:$0xff] %v6461_v31  ;;  %v6463_v10 = vadd.f32 %v1394_v35, %v945_v36  ;;  %2612 = vrot.lane.b32.xlu2 %v2590_v39, %s5429_s14 }
 0x205   : > { %5057 = vmatmul.msk.f32.gmra.mxu0 %vm286_vm1, %v6161_v29  ;;  %5062 = vmatmul.msk.f32.gmra.mxu1 %vm286_vm1, %v6161_v29  ;;  %3069 = vst [vmem:[#allocation1] ss:$2 sm:$0xff] %v5488_v2 }
 0x206   : > { %5067 = vmatmul.msk.f32.gmra.mxu2 %vm286_vm1, %v6161_v29  ;;  %v2115_v21 = vpop.permute.xlu0 %2114  ;;  %3071 = vst [vmem:[#allocation1 + $0x10] ss:$2 sm:$0xff] %v5485_v1 }
 0x207   : > { %5072 = vmatmul.msk.f32.gmra.mxu3 %vm286_vm1, %v6161_v29  ;;  %v2130_v29 = vsel %vm2122_vm5, %v2111_v26, %v2113_v60  ;;  %v2119_v6 = vpop.permute.xlu1 %2118 }
 0x208   : > { %5109 = vmatpush.msk.msrb.mxu3 %vm295_vm2, %v2130_v29 }
 0x209   : > { %v1368_v32 = vpop.f32.mrf.mxu2 }
 0x20a   : > { %v6483_v23 = vadd.f32 %v1368_v32, %v919_v25  ;;  %v6485_v36 = vpop.f32.mrf.mxu1  ;;  %v6487_v35 = vpop.f32.mrf.mxu0 }
 0x20b   : > { %8339 = vst [vmem:[#allocation71_spill] sm:$0xff] %v6485_v36  ;;  %v1397_v58 = vpop.f32.mrf.mxu3  ;;  %3061 = vrot.lane.b32.xlu0 %v6243_v51, %s5425_s8 }
 0x20c   : > { %8340 = vst [vmem:[#allocation72_spill] sm:$0xff] %v6487_v35  ;;  %v6491_v8 = vadd.f32 %v1397_v58, %v948_v12  ;;  %v2593_v58 = vld.sshfl [vmem:[#allocation1 + $0x20] sm:$0xff pattern:$0x75316420] }
 0x20d   : > { %5058 = vmatmul.msk.f32.gmra.mxu0 %vm286_vm1, %v6095_v44  ;;  %5063 = vmatmul.msk.f32.gmra.mxu1 %vm286_vm1, %v6095_v44  ;;  %3073 = vst [vmem:[#allocation1 + $0x20] ss:$2 sm:$0xff] %v5491_v3  ;;  %v3078_v9 = vld.sshfl [vmem:[#allocation1 + $0x10] sm:$0xff pattern:$0x75316420] }
 0x20e   : > { %5068 = vmatmul.msk.f32.gmra.mxu2 %vm286_vm1, %v6095_v44  ;;  %2618 = vrot.lane.b32.xlu1 %v2593_v58, %s5429_s14  ;;  %v3077_v35 = vld.sshfl [vmem:[#allocation1 + $0x8] sm:$0xff pattern:$0x75316420] }
 0x20f   : > { %5073 = vmatmul.msk.f32.gmra.mxu3 %vm286_vm1, %v6095_v44  ;;  %v2131_v44 = vsel %vm2122_vm5, %v2113_v60, %v2115_v21 }
 0x211   : > { %v1371_v26 = vpop.f32.mrf.mxu2 }
 0x212   : > { %v6508_v50 = vadd.f32 %v1371_v26, %v922_v42  ;;  %v6510_v25 = vpop.f32.mrf.mxu1  ;;  %v6512_v32 = vpop.f32.mrf.mxu0 }
 0x213   : > { %8341 = vst [vmem:[#allocation73_spill] sm:$0xff] %v6510_v25  ;;  %v1400_v12 = vpop.f32.mrf.mxu3  ;;  %3096 = vrot.lane.b32.xlu0 %v3078_v9, %s5430_s23 }
 0x214   : > { %8342 = vst [vmem:[#allocation74_spill] sm:$0xff] %v6512_v32  ;;  %v6515_v29 = vadd.f32 %v1400_v12, %v951_v15  ;;  %v1061_v15 = vadd.f32 %v8345_v53, %v5993_v24  ;;  %v2134_v24 = vsel %vm2122_vm5, %v2119_v6, %v2121_v59 }
 0x215   : > { %5075 = vmatmul.msk.f32.vlgmr.msra.gmra.mxu0 %vm286_vm1, %v6297_v54  ;;  %5080 = vmatmul.msk.f32.vlgmr.msra.gmra.mxu1 %vm286_vm1, %v6297_v54 }
 0x216   : > { %5085 = vmatmul.msk.f32.vlgmr.msra.gmra.mxu2 %vm286_vm1, %v6297_v54  ;;  %5114 = vmatpush.msk.msra.mxu0 %vm295_vm2, %v2131_v44 }
 0x217   : > { %5090 = vmatmul.msk.f32.vlgmr.msra.gmra.mxu3 %vm286_vm1, %v6297_v54 }
 0x218   : > { %5129 = vmatpush.msk.msra.mxu3 %vm295_vm2, %v2134_v24  ;;  %v8354_v24 = vld [vmem:[#allocation32_spill] sm:$0xff] }
 0x219   : > { %v1478_v14 = vpop.f32.mrf.mxu2 }
 0x21a   : > { %v6534_v60 = vadd.f32 %v1478_v14, %v1029_v49  ;;  %v6536_v30 = vpop.f32.mrf.mxu0  ;;  %v6538_v39 = vpop.f32.mrf.mxu1  ;;  %v8348_v14 = vld [vmem:[#allocation25_spill] sm:$0xff] }
 0x21b   : > { %8343 = vst [vmem:[#allocation75_spill] sm:$0xff] %v6536_v30  ;;  %v1507_v42 = vpop.f32.mrf.mxu3  ;;  %v8357_v30 = vld [vmem:[#allocation2_spill] sm:$0xff] }
 0x21c   : > { %8344 = vst [vmem:[#allocation76_spill] sm:$0xff] %v6538_v39  ;;  %v6540_v26 = vadd.f32 %v1507_v42, %v1058_v20  ;;  %v1035_v20 = vadd.f32 %v6266_v27, %v8348_v14  ;;  %v3079_v14 = vld.sshfl [vmem:[#allocation1 + $0x18] sm:$0xff pattern:$0x75316420] }
 0x21d   : > { %5076 = vmatmul.msk.f32.gmra.mxu0 %vm286_vm1, %v6409_v40  ;;  %5081 = vmatmul.msk.f32.gmra.mxu1 %vm286_vm1, %v6409_v40  ;;  %3085 = vst [vmem:[#allocation1 + $0x10] ss:$2 sm:$0xff] %v5519_v16 }
 0x21e   : > { %5086 = vmatmul.msk.f32.gmra.mxu2 %vm286_vm1, %v6409_v40  ;;  %3098 = vrot.lane.b32.xlu1 %v3079_v14, %s5430_s23 }
 0x21f   : > { %5091 = vmatmul.msk.f32.gmra.mxu3 %vm286_vm1, %v6409_v40 }
 0x221   : > { %v1481_v38 = vpop.f32.mrf.mxu2 }
 0x222   : > { %v6556_v12 = vadd.f32 %v1481_v38, %v1032_v57  ;;  %v6558_v44 = vpop.f32.mrf.mxu0  ;;  %v6560_v58 = vpop.f32.mrf.mxu1  ;;  %v8349_v38 = vld [vmem:[#allocation28_spill] sm:$0xff] }
 0x223   : > { %8346 = vst [vmem:[#allocation53_spill] sm:$0xff] %v6558_v44  ;;  %v1510_v45 = vpop.f32.mrf.mxu3  ;;  %v2117_v57 = vpop.permute.xlu1 %2116  ;;  %v1064_v53 = vadd.f32 %v6274_v34, %v8349_v38  ;;  %v8352_v34 = vld [vmem:[#allocation29_spill] sm:$0xff] }
 0x224   : > { %8347 = vst [vmem:[#allocation77_spill] sm:$0xff] %v6560_v58  ;;  %v6562_v49 = vadd.f32 %v1510_v45, %v1061_v15  ;;  %v2132_v58 = vsel %vm2122_vm5, %v2115_v21, %v2117_v57  ;;  %v2133_v27 = vsel %vm2122_vm5, %v2117_v57, %v2119_v6  ;;  %v1038_v21 = vadd.f32 %v6295_v63, %v8352_v34  ;;  %v8353_v6 = vld [vmem:[#allocation56_spill] sm:$0xff]  ;;  %v3081_v34 = vld.sshfl [vmem:[#allocation1 + $0x28] sm:$0xff pattern:$0x75316420] }
 0x225   : > { %5077 = vmatmul.msk.f32.gmra.mxu0 %vm286_vm1, %v6453_v61  ;;  %5082 = vmatmul.msk.f32.gmra.mxu1 %vm286_vm1, %v6453_v61 }
 0x226   : > { %5087 = vmatmul.msk.f32.gmra.mxu2 %vm286_vm1, %v6453_v61  ;;  %5119 = vmatpush.msk.msra.mxu1 %vm295_vm2, %v2132_v58 }
 0x227   : > { %5092 = vmatmul.msk.f32.gmra.mxu3 %vm286_vm1, %v6453_v61  ;;  %5124 = vmatpush.msk.msra.mxu2 %vm295_vm2, %v2133_v27  ;;  %v3076_v27 = vld.sshfl [vmem:[#allocation1] sm:$0xff pattern:$0x75316420] }
 0x228   : > { %3067 = vrot.lane.b32.xlu0 %v8353_v6, %s5425_s8  ;;  %3092 = vrot.lane.b32.xlu1 %v3076_v27, %s5430_s23  ;;  %3084 = vst [vmem:[#allocation1] ss:$2 sm:$0xff] %v5501_v5 }
 0x229   : > { %v1484_v42 = vpop.f32.mrf.mxu2 }
 0x22a   : > { %v6579_v15 = vadd.f32 %v1484_v42, %v1035_v20  ;;  %v6581_v45 = vpop.f32.mrf.mxu1  ;;  %v6583_v59 = vpop.f32.mrf.mxu0  ;;  %v8355_v20 = vld [vmem:[#allocation59_spill] sm:$0xff] }
 0x22b   : > { %8350 = vst [vmem:[#allocation25_spill] sm:$0xff] %v6581_v45  ;;  %v1513_v44 = vpop.f32.mrf.mxu3  ;;  %v6605_v58 = vpop.permute.xlu1 %2563  ;;  %v1067_v42 = vadd.f32 %v8355_v20, %v8354_v24  ;;  %v3080_v45 = vld.sshfl [vmem:[#allocation1 + $0x20] sm:$0xff pattern:$0x75316420] }
 0x22c   : > { %8351 = vst [vmem:[#allocation28_spill] sm:$0xff] %v6583_v59  ;;  %v6590_v9 = vadd.f32 %v1513_v44, %v1064_v53  ;;  %3100 = vrot.lane.b32.xlu2 %v3080_v45, %s5430_s23  ;;  %v3083_v45 = vld.sshfl [vmem:[#allocation1 + $0x38] sm:$0xff pattern:$0x75316420] }
 0x22d   : > { %5078 = vmatmul.msk.f32.gmra.mxu0 %vm286_vm1, %v6368_v55  ;;  %5083 = vmatmul.msk.f32.gmra.mxu1 %vm286_vm1, %v6368_v55  ;;  %3086 = vst [vmem:[#allocation1 + $0x20] ss:$2 sm:$0xff] %v8357_v30 }
 0x22e   : > { %5088 = vmatmul.msk.f32.gmra.mxu2 %vm286_vm1, %v6368_v55 }
 0x22f   : > { %5093 = vmatmul.msk.f32.gmra.mxu3 %vm286_vm1, %v6368_v55 }
 0x230   : > { %3102 = vrot.lane.b32.xlu0 %v3081_v34, %s5430_s23  ;;  %3063 = vrot.lane.b32.xlu1 %v6414_v56, %s5425_s8 }
 0x231   : > { %v1487_v44 = vpop.f32.mrf.mxu2 }
 0x232   : > { %v6609_v57 = vadd.f32 %v1487_v44, %v1038_v21  ;;  %v6611_v38 = vpop.f32.mrf.mxu1  ;;  %v6613_v53 = vpop.f32.mrf.mxu0 }
 0x233   : > { %8356 = vst [vmem:[#allocation29_spill] sm:$0xff] %v6611_v38  ;;  %v1516_v14 = vpop.f32.mrf.mxu3 }
 0x234   : > { %v6616_v63 = vadd.f32 %v1516_v14, %v1067_v42  ;;  %v2599_v14 = vpop.permute.xlu1 %2598  ;;  %3094 = vrot.lane.b32.xlu2 %v3077_v35, %s5430_s23  ;;  %v3082_v35 = vld.sshfl [vmem:[#allocation1 + $0x30] sm:$0xff pattern:$0x75316420] }
 0x235   : > { %5095 = vmatmul.msk.f32.vlgmr.msrb.gmra.mxu0 %vm286_vm1, %v6297_v54  ;;  %5100 = vmatmul.msk.f32.vlgmr.msrb.gmra.mxu1 %vm286_vm1, %v6297_v54  ;;  %3573 = vst [vmem:[#allocation1 + $0x30] ss:$2 sm:$0xff] %v5495_v4 }
 0x236   : > { %5105 = vmatmul.msk.f32.vlgmr.msrb.gmra.mxu2 %vm286_vm1, %v6297_v54 }
 0x237   : > { %5110 = vmatmul.msk.f32.vlgmr.msrb.gmra.mxu3 %vm286_vm1, %v6297_v54 }
 0x238   : > { %3106 = vrot.lane.b32.xlu1 %v3083_v45, %s5430_s23 }
 0x239   : > { %v1744_v21 = vpop.f32.mrf.mxu2 }
 0x23a   : > { %v6628_v44 = vadd.f32 %v1744_v21, %v6320_v18  ;;  %v6630_v24 = vpop.f32.mrf.mxu1  ;;  %v6632_v20 = vpop.f32.mrf.mxu0 }
 0x23b   : > { %v1773_v42 = vpop.f32.mrf.mxu3  ;;  %v2601_v18 = vpop.permute.xlu2 %2600 }
 0x23c   : > { %v6637_v27 = vadd.f32 %v1773_v42, %v6327_v33  ;;  %v2623_v34 = vsel %vm2620_vm6, %v2599_v14, %v2601_v18  ;;  %3065 = vrot.lane.b32.xlu2 %v6356_v41, %s5425_s8 }
 0x23d   : > { %5096 = vmatmul.msk.f32.gmra.mxu0 %vm286_vm1, %v6409_v40  ;;  %5101 = vmatmul.msk.f32.gmra.mxu1 %vm286_vm1, %v6409_v40 }
 0x23e   : > { %5106 = vmatmul.msk.f32.gmra.mxu2 %vm286_vm1, %v6409_v40 }
 0x23f   : > { %5111 = vmatmul.msk.f32.gmra.mxu3 %vm286_vm1, %v6409_v40  ;;  %5144 = vmatpush.msk.msrb.mxu2 %vm295_vm2, %v2623_v34 }
 0x240   : > { %3104 = vrot.lane.b32.xlu1 %v3082_v35, %s5430_s23 }
 0x241   : > { %v1747_v33 = vpop.f32.mrf.mxu2 }
 0x242   : > { %v6650_v21 = vadd.f32 %v1747_v33, %v6343_v22  ;;  %v6652_v42 = vpop.f32.mrf.mxu1  ;;  %v6654_v59 = vpop.f32.mrf.mxu0 }
 0x243   : > { %v1776_v39 = vpop.f32.mrf.mxu3  ;;  %v2603_v22 = vpop.permute.xlu0 %2602 }
 0x244   : > { %v6659_v32 = vadd.f32 %v1776_v39, %v6360_v11  ;;  %v2624_v34 = vsel %vm2620_vm6, %v2601_v18, %v2603_v22  ;;  %v6668_v33 = vpop.permute.xlu1 %2569  ;;  %v2595_v31 = vpop.permute.xlu2 %2594 }
 0x245   : > { %5097 = vmatmul.msk.f32.gmra.mxu0 %vm286_vm1, %v6453_v61  ;;  %5102 = vmatmul.msk.f32.gmra.mxu1 %vm286_vm1, %v6453_v61 }
 0x246   : > { %5107 = vmatmul.msk.f32.gmra.mxu2 %vm286_vm1, %v6453_v61  ;;  %5149 = vmatpush.msk.msrb.mxu3 %vm295_vm2, %v2624_v34 }
 0x247   : > { %5112 = vmatmul.msk.f32.gmra.mxu3 %vm286_vm1, %v6453_v61 }
 0x249   : > { %v1750_v11 = vpop.f32.mrf.mxu2 }
 0x24a   : > { %v6675_v39 = vadd.f32 %v1750_v11, %v6379_v37  ;;  %v6677_v25 = vpop.f32.mrf.mxu1  ;;  %v6679_v36 = vpop.f32.mrf.mxu0 }
 0x24b   : > { %8358 = vst [vmem:[#allocation56_spill] sm:$0xff] %v6679_v36  ;;  %v1779_v18 = vpop.f32.mrf.mxu3  ;;  %v2597_v37 = vpop.permute.xlu0 %2596 }
 0x24c   : > { %v6684_v0 = vadd.f32 %v1779_v18, %v6388_v47  ;;  %v2622_v34 = vsel %vm2620_vm6, %v2597_v37, %v2599_v14  ;;  %v2621_v45 = vsel %vm2620_vm6, %v2595_v31, %v2597_v37  ;;  %v2605_v47 = vpop.permute.xlu1 %2604  ;;  %v6708_v48 = vpop.permute.xlu2 %2565 }
 0x24d   : > { %5098 = vmatmul.msk.f32.gmra.mxu0 %vm286_vm1, %v6368_v55  ;;  %5103 = vmatmul.msk.f32.gmra.mxu1 %vm286_vm1, %v6368_v55  ;;  %v2625_v43 = vsel %vm2620_vm6, %v2603_v22, %v2605_v47 }
 0x24e   : > { %5108 = vmatmul.msk.f32.gmra.mxu2 %vm286_vm1, %v6368_v55  ;;  %5134 = vmatpush.msk.msrb.mxu0 %vm295_vm2, %v2621_v45 }
 0x24f   : > { %5113 = vmatmul.msk.f32.gmra.mxu3 %vm286_vm1, %v6368_v55  ;;  %5139 = vmatpush.msk.msrb.mxu1 %vm295_vm2, %v2622_v34 }
 0x251   : > { %v1753_v11 = vpop.f32.mrf.mxu2 }
 0x252   : > { %v6701_v18 = vadd.f32 %v1753_v11, %v6402_v13  ;;  %v6703_v14 = vpop.f32.mrf.mxu1  ;;  %v6705_v31 = vpop.f32.mrf.mxu0  ;;  %v3088_v13 = vld.sshfl [vmem:[#allocation1 + $0x8] sm:$0xff pattern:$0x75316420] }
 0x253   : > { %8359 = vst [vmem:[#allocation32_spill] sm:$0xff] %v6703_v14  ;;  %v1782_v37 = vpop.f32.mrf.mxu3  ;;  %3110 = vrot.lane.b32.xlu1 %v3088_v13, %s5430_s23 }
 0x254   : > { %8360 = vst [vmem:[#allocation59_spill] sm:$0xff] %v6705_v31  ;;  %v6713_v34 = vadd.f32 %v1782_v37, %v6418_v62  ;;  %v2609_v37 = vpop.permute.xlu2 %2608 }
 0x255   : > { %5115 = vmatmul.msk.f32.vlgmr.msra.gmra.mxu0 %vm286_vm1, %v6297_v54  ;;  %5120 = vmatmul.msk.f32.vlgmr.msra.gmra.mxu1 %vm286_vm1, %v6297_v54 }
 0x256   : > { %5125 = vmatmul.msk.f32.vlgmr.msra.gmra.mxu2 %vm286_vm1, %v6297_v54  ;;  %5154 = vmatpush.msk.msra.mxu0 %vm295_vm2, %v2625_v43 }
 0x257   : > { %5130 = vmatmul.msk.f32.vlgmr.msra.gmra.mxu3 %vm286_vm1, %v6297_v54 }
 0x259   : > { %v1860_v22 = vpop.f32.mrf.mxu2 }
 0x25a   : > { %v6726_v62 = vadd.f32 %v1860_v22, %v6434_v52  ;;  %v6728_v45 = vpop.f32.mrf.mxu0  ;;  %v6730_v35 = vpop.f32.mrf.mxu1 }
 0x25b   : > { %8361 = vst [vmem:[#allocation2_spill] sm:$0xff] %v6728_v45  ;;  %v1889_v11 = vpop.f32.mrf.mxu3  ;;  %v6743_v52 = vpop.permute.xlu0 %2567 }
 0x25c   : > { %8362 = vst [vmem:[#allocation78_spill] sm:$0xff] %v6730_v35  ;;  %v6733_v31 = vadd.f32 %v1889_v11, %v6440_v46  ;;  %v2607_v11 = vpop.permute.xlu2 %2606 }
 0x25d   : > { %5116 = vmatmul.msk.f32.gmra.mxu0 %vm286_vm1, %v6409_v40  ;;  %5121 = vmatmul.msk.f32.gmra.mxu1 %vm286_vm1, %v6409_v40  ;;  %v2626_v45 = vsel %vm2620_vm6, %v2605_v47, %v2607_v11  ;;  %v2627_v14 = vsel %vm2620_vm6, %v2607_v11, %v2609_v37 }
 0x25e   : > { %5126 = vmatmul.msk.f32.gmra.mxu2 %vm286_vm1, %v6409_v40  ;;  %5159 = vmatpush.msk.msra.mxu1 %vm295_vm2, %v2626_v45 }
 0x25f   : > { %5131 = vmatmul.msk.f32.gmra.mxu3 %vm286_vm1, %v6409_v40  ;;  %5164 = vmatpush.msk.msra.mxu2 %vm295_vm2, %v2627_v14 }
 0x261   : > { %v1863_v54 = vpop.f32.mrf.mxu2 }
 0x262   : > { %v6746_v43 = vadd.f32 %v1863_v54, %v6457_v7  ;;  %v6748_v46 = vpop.f32.mrf.mxu0  ;;  %v6750_v13 = vpop.f32.mrf.mxu1 }
 0x263   : > { %8363 = vst [vmem:[#allocation79_spill] sm:$0xff] %v6748_v46  ;;  %v1892_v22 = vpop.f32.mrf.mxu3  ;;  %v2611_v7 = vpop.permute.xlu0 %2610  ;;  %v3581_v46 = vld.sshfl [vmem:[#allocation1 + $0x38] sm:$0xff pattern:$0x75316420] }
 0x264   : > { %8364 = vst [vmem:[#allocation80_spill] sm:$0xff] %v6750_v13  ;;  %v6753_v35 = vadd.f32 %v1892_v22, %v6463_v10  ;;  %v2628_v22 = vsel %vm2620_vm6, %v2609_v37, %v2611_v7 }
 0x265   : > { %5117 = vmatmul.msk.f32.gmra.mxu0 %vm286_vm1, %v6453_v61  ;;  %5122 = vmatmul.msk.f32.gmra.mxu1 %vm286_vm1, %v6453_v61 }
 0x266   : > { %5127 = vmatmul.msk.f32.gmra.mxu2 %vm286_vm1, %v6453_v61  ;;  %5169 = vmatpush.msk.msra.mxu3 %vm295_vm2, %v2628_v22 }
 0x267   : > { %5132 = vmatmul.msk.f32.gmra.mxu3 %vm286_vm1, %v6453_v61  ;;  %v3087_v61 = vld.sshfl [vmem:[#allocation1] sm:$0xff pattern:$0x75316420] }
 0x268   : > { %3567 = vst [vmem:[#allocation1] ss:$2 sm:$0xff] %v5488_v2  ;;  %3108 = vrot.lane.b32.xlu2 %v3087_v61, %s5430_s23 }
 0x269   : > { %v1866_v40 = vpop.f32.mrf.mxu2 }
 0x26a   : > { %v6768_v10 = vadd.f32 %v1866_v40, %v6483_v23  ;;  %v6770_v47 = vpop.f32.mrf.mxu0  ;;  %v6772_v54 = vpop.f32.mrf.mxu1 }
 0x26b   : > { %8365 = vst [vmem:[#allocation81_spill] sm:$0xff] %v6770_v47  ;;  %v1895_v11 = vpop.f32.mrf.mxu3  ;;  %v2613_v23 = vpop.permute.xlu2 %2612  ;;  %v3091_v47 = vld.sshfl [vmem:[#allocation1 + $0x20] sm:$0xff pattern:$0x75316420] }
 0x26c   : > { %8366 = vst [vmem:[#allocation82_spill] sm:$0xff] %v6772_v54  ;;  %v6777_v45 = vadd.f32 %v1895_v11, %v6491_v8  ;;  %v2629_v11 = vsel %vm2620_vm6, %v2611_v7, %v2613_v23  ;;  %3116 = vrot.lane.b32.xlu0 %v3091_v47, %s5430_s23  ;;  %v2617_v47 = vpop.permute.xlu0 %2616 }
 0x26d   : > { %5118 = vmatmul.msk.f32.gmra.mxu0 %vm286_vm1, %v6368_v55  ;;  %5123 = vmatmul.msk.f32.gmra.mxu1 %vm286_vm1, %v6368_v55  ;;  %3571 = vst [vmem:[#allocation1 + $0x20] ss:$2 sm:$0xff] %v5491_v3 }
 0x26e   : > { %5128 = vmatmul.msk.f32.gmra.mxu2 %vm286_vm1, %v6368_v55 }
 0x26f   : > { %5133 = vmatmul.msk.f32.gmra.mxu3 %vm286_vm1, %v6368_v55 }
 0x271   : > { %v1869_v8 = vpop.f32.mrf.mxu2 }
 0x272   : > { %v6790_v14 = vadd.f32 %v1869_v8, %v6508_v50  ;;  %v6792_v37 = vpop.f32.mrf.mxu0  ;;  %v6794_v40 = vpop.f32.mrf.mxu1 }
 0x273   : > { %8367 = vst [vmem:[#allocation83_spill] sm:$0xff] %v6792_v37  ;;  %v1898_v22 = vpop.f32.mrf.mxu3 }
 0x274   : > { %8368 = vst [vmem:[#allocation84_spill] sm:$0xff] %v6794_v40  ;;  %v6798_v54 = vadd.f32 %v1898_v22, %v6515_v29  ;;  %v3578_v40 = vld.sshfl [vmem:[#allocation1 + $0x20] sm:$0xff pattern:$0x75316420] }
 0x275   : > { %5135 = vmatmul.msk.f32.vlgmr.msrb.gmra.mxu0 %vm286_vm1, %v6605_v58  ;;  %5140 = vmatmul.msk.f32.vlgmr.msrb.gmra.mxu1 %vm286_vm1, %v6605_v58  ;;  %v2615_v13 = vpop.permute.xlu0 %2614 }
 0x276   : > { %5145 = vmatmul.msk.f32.vlgmr.msrb.gmra.mxu2 %vm286_vm1, %v6605_v58  ;;  %5174 = vmatpush.msk.msrb.mxu0 %vm295_vm2, %v2629_v11 }
 0x277   : > { %5150 = vmatmul.msk.f32.vlgmr.msrb.gmra.mxu3 %vm286_vm1, %v6605_v58  ;;  %3598 = vrot.lane.b32.xlu1 %v3578_v40, %s5431_s24 }
 0x279   : > { %v1976_v55 = vpop.f32.mrf.mxu2 }
 0x27a   : > { %v6812_v50 = vadd.f32 %v1976_v55, %v6534_v60  ;;  %v6814_v29 = vpop.f32.mrf.mxu0  ;;  %v6816_v7 = vpop.f32.mrf.mxu1 }
 0x27b   : > { %8369 = vst [vmem:[#allocation85_spill] sm:$0xff] %v6814_v29  ;;  %v2005_v61 = vpop.f32.mrf.mxu3  ;;  %v3090_v29 = vld.sshfl [vmem:[#allocation1 + $0x18] sm:$0xff pattern:$0x75316420] }
 0x27c   : > { %8370 = vst [vmem:[#allocation86_spill] sm:$0xff] %v6816_v7  ;;  %v6819_v8 = vadd.f32 %v2005_v61, %v6540_v26  ;;  %v3089_v7 = vld.sshfl [vmem:[#allocation1 + $0x10] sm:$0xff pattern:$0x75316420]  ;;  %3114 = vrot.lane.b32.xlu2 %v3090_v29, %s5430_s23 }
 0x27d   : > { %5136 = vmatmul.msk.f32.gmra.mxu0 %vm286_vm1, %v6708_v48  ;;  %5141 = vmatmul.msk.f32.gmra.mxu1 %vm286_vm1, %v6708_v48  ;;  %3569 = vst [vmem:[#allocation1 + $0x10] ss:$2 sm:$0xff] %v5485_v1 }
 0x27e   : > { %5146 = vmatmul.msk.f32.gmra.mxu2 %vm286_vm1, %v6708_v48 }
 0x27f   : > { %5151 = vmatmul.msk.f32.gmra.mxu3 %vm286_vm1, %v6708_v48 }
 0x281   : > { %v1979_v60 = vpop.f32.mrf.mxu2 }
 0x282   : > { %v6830_v22 = vadd.f32 %v1979_v60, %v6556_v12  ;;  %v6832_v11 = vpop.f32.mrf.mxu1  ;;  %v6834_v26 = vpop.f32.mrf.mxu0 }
 0x283   : > { %8371 = vst [vmem:[#allocation87_spill] sm:$0xff] %v6832_v11  ;;  %v2008_v55 = vpop.f32.mrf.mxu3 }
 0x284   : > { %8372 = vst [vmem:[#allocation88_spill] sm:$0xff] %v6834_v26  ;;  %v6837_v61 = vadd.f32 %v2008_v55, %v6562_v49  ;;  %v2619_v49 = vpop.permute.xlu1 %2618  ;;  %3112 = vrot.lane.b32.xlu2 %v3089_v7, %s5430_s23 }
 0x285   : > { %5137 = vmatmul.msk.f32.gmra.mxu0 %vm286_vm1, %v6743_v52  ;;  %5142 = vmatmul.msk.f32.gmra.mxu1 %vm286_vm1, %v6743_v52  ;;  %v2632_v11 = vsel %vm2620_vm6, %v2617_v47, %v2619_v49  ;;  %v2630_v49 = vsel %vm2620_vm6, %v2613_v23, %v2615_v13  ;;  %v3575_v23 = vld.sshfl [vmem:[#allocation1 + $0x8] sm:$0xff pattern:$0x75316420] }
 0x286   : > { %5147 = vmatmul.msk.f32.gmra.mxu2 %vm286_vm1, %v6743_v52  ;;  %5189 = vmatpush.msk.msrb.mxu3 %vm295_vm2, %v2632_v11 }
 0x287   : > { %5152 = vmatmul.msk.f32.gmra.mxu3 %vm286_vm1, %v6743_v52  ;;  %5179 = vmatpush.msk.msrb.mxu1 %vm295_vm2, %v2630_v49 }
 0x288   : > { %3592 = vrot.lane.b32.xlu1 %v3575_v23, %s5431_s24 }
 0x289   : > { %v1982_v12 = vpop.f32.mrf.mxu2 }
 0x28a   : > { %v6850_v60 = vadd.f32 %v1982_v12, %v6579_v15  ;;  %v6852_v55 = vpop.f32.mrf.mxu1  ;;  %v6854_v26 = vpop.f32.mrf.mxu0  ;;  %v2631_v15 = vsel %vm2620_vm6, %v2615_v13, %v2617_v47  ;;  %v3577_v12 = vld.sshfl [vmem:[#allocation1 + $0x18] sm:$0xff pattern:$0x75316420]  ;;  %v3574_v47 = vld.sshfl [vmem:[#allocation1] sm:$0xff pattern:$0x75316420] }
 0x28b   : > { %8373 = vst [vmem:[#allocation89_spill] sm:$0xff] %v6852_v55  ;;  %v2011_v37 = vpop.f32.mrf.mxu3  ;;  %3596 = vrot.lane.b32.xlu0 %v3577_v12, %s5431_s24  ;;  %5184 = vmatpush.msk.msrb.mxu2 %vm295_vm2, %v2631_v15  ;;  %v6883_v12 = vpop.permute.xlu0 %3061 }
 0x28c   : > { %8374 = vst [vmem:[#allocation90_spill] sm:$0xff] %v6854_v26  ;;  %v6860_v29 = vadd.f32 %v2011_v37, %v6590_v9  ;;  %3559 = vrot.lane.b32.xlu2 %v6243_v51, %s5432_s25 }
 0x28d   : > { %5138 = vmatmul.msk.f32.gmra.mxu0 %vm286_vm1, %v6668_v33  ;;  %5143 = vmatmul.msk.f32.gmra.mxu1 %vm286_vm1, %v6668_v33  ;;  %3582 = vst [vmem:[#allocation1] ss:$2 sm:$0xff] %v5501_v5 }
 0x28e   : > { %5148 = vmatmul.msk.f32.gmra.mxu2 %vm286_vm1, %v6668_v33 }
 0x28f   : > { %5153 = vmatmul.msk.f32.gmra.mxu3 %vm286_vm1, %v6668_v33 }
 0x290   : > { %3563 = vrot.lane.b32.xlu1 %v6356_v41, %s5432_s25  ;;  %v3099_v51 = vpop.permute.xlu1 %3098 }
 0x291   : > { %v1985_v9 = vpop.f32.mrf.mxu2 }
 0x292   : > { %v6877_v37 = vadd.f32 %v1985_v9, %v6609_v57  ;;  %v6879_v40 = vpop.f32.mrf.mxu1  ;;  %v6881_v13 = vpop.f32.mrf.mxu0 }
 0x293   : > { %8375 = vst [vmem:[#allocation91_spill] sm:$0xff] %v6879_v40  ;;  %v2014_v11 = vpop.f32.mrf.mxu3  ;;  %3590 = vrot.lane.b32.xlu0 %v3574_v47, %s5431_s24  ;;  %v3097_v47 = vpop.permute.xlu0 %3096 }
 0x294   : > { %v6888_v7 = vadd.f32 %v2014_v11, %v6616_v63  ;;  %v3576_v11 = vld.sshfl [vmem:[#allocation1 + $0x10] sm:$0xff pattern:$0x75316420]  ;;  %v3121_v41 = vsel %vm3118_vm7, %v3097_v47, %v3099_v51 }
 0x295   : > { %5155 = vmatmul.msk.f32.vlgmr.msra.gmra.mxu0 %vm286_vm1, %v6605_v58  ;;  %5160 = vmatmul.msk.f32.vlgmr.msra.gmra.mxu1 %vm286_vm1, %v6605_v58  ;;  %3583 = vst [vmem:[#allocation1 + $0x10] ss:$2 sm:$0xff] %v5519_v16 }
 0x296   : > { %5165 = vmatmul.msk.f32.vlgmr.msra.gmra.mxu2 %vm286_vm1, %v6605_v58  ;;  %3594 = vrot.lane.b32.xlu2 %v3576_v11, %s5431_s24 }
 0x297   : > { %5170 = vmatmul.msk.f32.vlgmr.msra.gmra.mxu3 %vm286_vm1, %v6605_v58  ;;  %5204 = vmatpush.msk.msra.mxu2 %vm295_vm2, %v3121_v41 }
 0x299   : > { %v2242_v57 = vpop.f32.mrf.mxu2 }
 0x29a   : > { %v6902_v63 = vadd.f32 %v2242_v57, %v6628_v44  ;;  %v6904_v15 = vpop.f32.mrf.mxu0  ;;  %v6906_v49 = vpop.f32.mrf.mxu1 }
 0x29b   : > { %v2271_v9 = vpop.f32.mrf.mxu3  ;;  %v3101_v44 = vpop.permute.xlu2 %3100  ;;  %3561 = vrot.lane.b32.xlu0 %v6414_v56, %s5432_s25 }
 0x29c   : > { %v6911_v23 = vadd.f32 %v2271_v9, %v6637_v27  ;;  %v3122_v27 = vsel %vm3118_vm7, %v3099_v51, %v3101_v44  ;;  %v3093_v41 = vpop.permute.xlu1 %3092 }
 0x29d   : > { %5156 = vmatmul.msk.f32.gmra.mxu0 %vm286_vm1, %v6708_v48  ;;  %5161 = vmatmul.msk.f32.gmra.mxu1 %vm286_vm1, %v6708_v48 }
 0x29e   : > { %5166 = vmatmul.msk.f32.gmra.mxu2 %vm286_vm1, %v6708_v48  ;;  %5209 = vmatpush.msk.msra.mxu3 %vm295_vm2, %v3122_v27 }
 0x29f   : > { %5171 = vmatmul.msk.f32.gmra.mxu3 %vm286_vm1, %v6708_v48  ;;  %3565 = vrot.lane.b32.xlu2 %v8353_v6, %s5432_s25  ;;  %v3580_v6 = vld.sshfl [vmem:[#allocation1 + $0x30] sm:$0xff pattern:$0x75316420] }
 0x2a0   : > { %4071 = vst [vmem:[#allocation1 + $0x30] ss:$2 sm:$0xff] %v5495_v4 }
 0x2a1   : > { %v2245_v57 = vpop.f32.mrf.mxu2 }
 0x2a2   : > { %v6930_v9 = vadd.f32 %v2245_v57, %v6650_v21  ;;  %v6932_v26 = vpop.f32.mrf.mxu1  ;;  %v6934_v55 = vpop.f32.mrf.mxu0 }
 0x2a3   : > { %v2274_v51 = vpop.f32.mrf.mxu3  ;;  %v3095_v11 = vpop.permute.xlu2 %3094  ;;  %3604 = vrot.lane.b32.xlu0 %v3581_v46, %s5431_s24 }
 0x2a4   : > { %v6937_v56 = vadd.f32 %v2274_v51, %v6659_v32  ;;  %v6945_v21 = vpop.permute.xlu0 %3067  ;;  %v3120_v27 = vsel %vm3118_vm7, %v3095_v11, %v3097_v47  ;;  %v3119_v57 = vsel %vm3118_vm7, %v3093_v41, %v3095_v11  ;;  %v6986_v28 = vpop.permute.xlu1 %3063 }
 0x2a5   : > { %5157 = vmatmul.msk.f32.gmra.mxu0 %vm286_vm1, %v6743_v52  ;;  %5162 = vmatmul.msk.f32.gmra.mxu1 %vm286_vm1, %v6743_v52 }
 0x2a6   : > { %5167 = vmatmul.msk.f32.gmra.mxu2 %vm286_vm1, %v6743_v52  ;;  %5194 = vmatpush.msk.msra.mxu0 %vm295_vm2, %v3119_v57  ;;  %v3579_v57 = vld.sshfl [vmem:[#allocation1 + $0x28] sm:$0xff pattern:$0x75316420] }
 0x2a7   : > { %5172 = vmatmul.msk.f32.gmra.mxu3 %vm286_vm1, %v6743_v52  ;;  %5199 = vmatpush.msk.msra.mxu1 %vm295_vm2, %v3120_v27  ;;  %3584 = vst [vmem:[#allocation1 + $0x20] ss:$2 sm:$0xff] %v8357_v30 }
 0x2a8   : > { %3600 = vrot.lane.b32.xlu2 %v3579_v57, %s5431_s24  ;;  %v3585_v57 = vld.sshfl [vmem:[#allocation1] sm:$0xff pattern:$0x75316420] }
 0x2a9   : > { %v2248_v32 = vpop.f32.mrf.mxu2  ;;  %3606 = vrot.lane.b32.xlu1 %v3585_v57, %s5431_s24 }
 0x2aa   : > { %v6957_v51 = vadd.f32 %v2248_v32, %v6675_v39  ;;  %v6959_v47 = vpop.f32.mrf.mxu1  ;;  %v6961_v11 = vpop.f32.mrf.mxu0 }
 0x2ab   : > { %8376 = vst [vmem:[#allocation92_spill] sm:$0xff] %v6959_v47  ;;  %v2277_v41 = vpop.f32.mrf.mxu3  ;;  %3602 = vrot.lane.b32.xlu0 %v3580_v6, %s5431_s24 }
 0x2ac   : > { %8377 = vst [vmem:[#allocation93_spill] sm:$0xff] %v6961_v11  ;;  %v6964_v40 = vadd.f32 %v2277_v41, %v6684_v0  ;;  %v3103_v0 = vpop.permute.xlu0 %3102 }
 0x2ad   : > { %5158 = vmatmul.msk.f32.gmra.mxu0 %vm286_vm1, %v6668_v33  ;;  %5163 = vmatmul.msk.f32.gmra.mxu1 %vm286_vm1, %v6668_v33  ;;  %v3123_v11 = vsel %vm3118_vm7, %v3101_v44, %v3103_v0 }
 0x2ae   : > { %5168 = vmatmul.msk.f32.gmra.mxu2 %vm286_vm1, %v6668_v33  ;;  %v3589_v36 = vld.sshfl [vmem:[#allocation1 + $0x20] sm:$0xff pattern:$0x75316420] }
 0x2af   : > { %5173 = vmatmul.msk.f32.gmra.mxu3 %vm286_vm1, %v6668_v33  ;;  %4069 = vst [vmem:[#allocation1 + $0x20] ss:$2 sm:$0xff] %v5491_v3 }
 0x2b0   : > { %3614 = vrot.lane.b32.xlu2 %v3589_v36, %s5431_s24 }
 0x2b1   : > { %v2251_v39 = vpop.f32.mrf.mxu2 }
 0x2b2   : > { %v6979_v46 = vadd.f32 %v2251_v39, %v6701_v18  ;;  %v6981_v27 = vpop.f32.mrf.mxu1  ;;  %v6983_v32 = vpop.f32.mrf.mxu0  ;;  %v3586_v18 = vld.sshfl [vmem:[#allocation1 + $0x8] sm:$0xff pattern:$0x75316420] }
 0x2b3   : > { %8378 = vst [vmem:[#allocation94_spill] sm:$0xff] %v6981_v27  ;;  %v2280_v41 = vpop.f32.mrf.mxu3  ;;  %3608 = vrot.lane.b32.xlu0 %v3586_v18, %s5431_s24  ;;  %v3107_v39 = vpop.permute.xlu1 %3106 }
 0x2b4   : > { %8379 = vst [vmem:[#allocation95_spill] sm:$0xff] %v6983_v32  ;;  %v6989_v4 = vadd.f32 %v2280_v41, %v6713_v34 }
 0x2b5   : > { %5175 = vmatmul.msk.f32.vlgmr.msrb.gmra.mxu0 %vm286_vm1, %v6605_v58  ;;  %5180 = vmatmul.msk.f32.vlgmr.msrb.gmra.mxu1 %vm286_vm1, %v6605_v58  ;;  %4065 = vst [vmem:[#allocation1] ss:$2 sm:$0xff] %v5488_v2  ;;  %v7023_v2 = vpop.permute.xlu2 %3065 }
 0x2b6   : > { %5185 = vmatmul.msk.f32.vlgmr.msrb.gmra.mxu2 %vm286_vm1, %v6605_v58  ;;  %5214 = vmatpush.msk.msrb.mxu0 %vm295_vm2, %v3123_v11 }
 0x2b7   : > { %5190 = vmatmul.msk.f32.vlgmr.msrb.gmra.mxu3 %vm286_vm1, %v6605_v58 }
 0x2b9   : > { %v2358_v34 = vpop.f32.mrf.mxu2 }
 0x2ba   : > { %v7006_v3 = vadd.f32 %v2358_v34, %v6726_v62  ;;  %v7008_v44 = vpop.f32.mrf.mxu1  ;;  %v7010_v6 = vpop.f32.mrf.mxu0 }
 0x2bb   : > { %8380 = vst [vmem:[#allocation96_spill] sm:$0xff] %v7008_v44  ;;  %v2387_v11 = vpop.f32.mrf.mxu3  ;;  %v3105_v18 = vpop.permute.xlu1 %3104 }
 0x2bc   : > { %8381 = vst [vmem:[#allocation97_spill] sm:$0xff] %v7010_v6  ;;  %v7013_v58 = vadd.f32 %v2387_v11, %v6733_v31  ;;  %v3124_v11 = vsel %vm3118_vm7, %v3103_v0, %v3105_v18  ;;  %v3125_v6 = vsel %vm3118_vm7, %v3105_v18, %v3107_v39  ;;  %v4072_v32 = vld.sshfl [vmem:[#allocation1] sm:$0xff pattern:$0x75316420] }
 0x2bd   : > { %5176 = vmatmul.msk.f32.gmra.mxu0 %vm286_vm1, %v6708_v48  ;;  %5181 = vmatmul.msk.f32.gmra.mxu1 %vm286_vm1, %v6708_v48 }
 0x2be   : > { %5186 = vmatmul.msk.f32.gmra.mxu2 %vm286_vm1, %v6708_v48  ;;  %5219 = vmatpush.msk.msrb.mxu1 %vm295_vm2, %v3124_v11 }
 0x2bf   : > { %5191 = vmatmul.msk.f32.gmra.mxu3 %vm286_vm1, %v6708_v48  ;;  %5224 = vmatpush.msk.msrb.mxu2 %vm295_vm2, %v3125_v6 }
 0x2c1   : > { %v2361_v36 = vpop.f32.mrf.mxu2 }
 0x2c2   : > { %v7026_v62 = vadd.f32 %v2361_v36, %v6746_v43  ;;  %v7028_v31 = vpop.f32.mrf.mxu1  ;;  %v7030_v41 = vpop.f32.mrf.mxu0 }
 0x2c3   : > { %8382 = vst [vmem:[#allocation98_spill] sm:$0xff] %v7028_v31  ;;  %v2390_v57 = vpop.f32.mrf.mxu3  ;;  %v3109_v48 = vpop.permute.xlu2 %3108 }
 0x2c4   : > { %8383 = vst [vmem:[#allocation99_spill] sm:$0xff] %v7030_v41  ;;  %v7033_v34 = vadd.f32 %v2390_v57, %v6753_v35  ;;  %v3126_v43 = vsel %vm3118_vm7, %v3107_v39, %v3109_v48 }
 0x2c5   : > { %5177 = vmatmul.msk.f32.gmra.mxu0 %vm286_vm1, %v6743_v52  ;;  %5182 = vmatmul.msk.f32.gmra.mxu1 %vm286_vm1, %v6743_v52 }
 0x2c6   : > { %5187 = vmatmul.msk.f32.gmra.mxu2 %vm286_vm1, %v6743_v52  ;;  %5229 = vmatpush.msk.msrb.mxu3 %vm295_vm2, %v3126_v43 }
 0x2c7   : > { %5192 = vmatmul.msk.f32.gmra.mxu3 %vm286_vm1, %v6743_v52  ;;  %v3588_v52 = vld.sshfl [vmem:[#allocation1 + $0x18] sm:$0xff pattern:$0x75316420] }
 0x2c8   : > { %3612 = vrot.lane.b32.xlu1 %v3588_v52, %s5431_s24 }
 0x2c9   : > { %v2364_v35 = vpop.f32.mrf.mxu2 }
 0x2ca   : > { %v7049_v0 = vadd.f32 %v2364_v35, %v6768_v10  ;;  %v7051_v36 = vpop.f32.mrf.mxu1  ;;  %v7053_v57 = vpop.f32.mrf.mxu0 }
 0x2cb   : > { %8384 = vst [vmem:[#allocation100_spill] sm:$0xff] %v7051_v36  ;;  %v2393_v18 = vpop.f32.mrf.mxu3  ;;  %v3111_v10 = vpop.permute.xlu1 %3110 }
 0x2cc   : > { %8385 = vst [vmem:[#allocation101_spill] sm:$0xff] %v7053_v57  ;;  %v7057_v11 = vadd.f32 %v2393_v18, %v6777_v45  ;;  %v3127_v18 = vsel %vm3118_vm7, %v3109_v48, %v3111_v10  ;;  %v3587_v57 = vld.sshfl [vmem:[#allocation1 + $0x10] sm:$0xff pattern:$0x75316420] }
 0x2cd   : > { %5178 = vmatmul.msk.f32.gmra.mxu0 %vm286_vm1, %v6668_v33  ;;  %5183 = vmatmul.msk.f32.gmra.mxu1 %vm286_vm1, %v6668_v33  ;;  %4067 = vst [vmem:[#allocation1 + $0x10] ss:$2 sm:$0xff] %v5485_v1 }
 0x2ce   : > { %5188 = vmatmul.msk.f32.gmra.mxu2 %vm286_vm1, %v6668_v33 }
 0x2cf   : > { %5193 = vmatmul.msk.f32.gmra.mxu3 %vm286_vm1, %v6668_v33 }
 0x2d0   : > { %3610 = vrot.lane.b32.xlu1 %v3587_v57, %s5431_s24  ;;  %s193_s24 = scalar_lea.vmem %s8265_s4, %s8629_s16 }
 0x2d1   : > { %v2367_v6 = vpop.f32.mrf.mxu2 }
 0x2d2   : > { %v7069_v45 = vadd.f32 %v2367_v6, %v6790_v14  ;;  %v7071_v39 = vpop.f32.mrf.mxu1  ;;  %v7073_v35 = vpop.f32.mrf.mxu0 }
 0x2d3   : > { %8386 = vst [vmem:[#allocation102_spill] sm:$0xff] %v7071_v39  ;;  %v2396_v43 = vpop.f32.mrf.mxu3 }
 0x2d4   : > { %8387 = vst [vmem:[#allocation103_spill] sm:$0xff] %v7073_v35  ;;  %v7077_v36 = vadd.f32 %v2396_v43, %v6798_v54  ;;  %v4075_v41 = vld.sshfl [vmem:[#allocation1 + $0x18] sm:$0xff pattern:$0x75316420] }
 0x2d5   : > { %5195 = vmatmul.msk.f32.vlgmr.msra.gmra.mxu0 %vm286_vm1, %v6883_v12  ;;  %5200 = vmatmul.msk.f32.vlgmr.msra.gmra.mxu1 %vm286_vm1, %v6883_v12 }
 0x2d6   : > { %5205 = vmatmul.msk.f32.vlgmr.msra.gmra.mxu2 %vm286_vm1, %v6883_v12  ;;  %5234 = vmatpush.msk.msra.mxu0 %vm295_vm2, %v3127_v18  ;;  %v3115_v57 = vpop.permute.xlu2 %3114 }
 0x2d7   : > { %5210 = vmatmul.msk.f32.vlgmr.msra.gmra.mxu3 %vm286_vm1, %v6883_v12  ;;  %4094 = vrot.lane.b32.xlu2 %v4075_v41, %s5434_s29 }
 0x2d9   : > { %v2474_v33 = vpop.f32.mrf.mxu2 }
 0x2da   : > { %v7091_v54 = vadd.f32 %v2474_v33, %v6812_v50  ;;  %v7093_v14 = vpop.f32.mrf.mxu0  ;;  %v7095_v48 = vpop.f32.mrf.mxu1  ;;  %v5408_v50 = vld [vmem:[%s8262_s1] sm:$0xff] }
 0x2db   : > { %8388 = vst [vmem:[#allocation104_spill] sm:$0xff] %v7093_v14  ;;  %v2503_v52 = vpop.f32.mrf.mxu3  ;;  %4057 = vrot.lane.b32.xlu1 %v5408_v50, %s5433_s28 }
 0x2dc   : > { %8389 = vst [vmem:[#allocation105_spill] sm:$0xff] %v7095_v48  ;;  %v7098_v1 = vadd.f32 %v2503_v52, %v6819_v8  ;;  %v4074_v48 = vld.sshfl [vmem:[#allocation1 + $0x10] sm:$0xff pattern:$0x75316420] }
 0x2dd   : > { %5196 = vmatmul.msk.f32.gmra.mxu0 %vm286_vm1, %v6986_v28  ;;  %5201 = vmatmul.msk.f32.gmra.mxu1 %vm286_vm1, %v6986_v28  ;;  %4081 = vst [vmem:[#allocation1 + $0x10] ss:$2 sm:$0xff] %v5519_v16 }
 0x2de   : > { %5206 = vmatmul.msk.f32.gmra.mxu2 %vm286_vm1, %v6986_v28  ;;  %v3117_v50 = vpop.permute.xlu0 %3116  ;;  %v3113_v35 = vpop.permute.xlu2 %3112 }
 0x2df   : > { %5211 = vmatmul.msk.f32.gmra.mxu3 %vm286_vm1, %v6986_v28  ;;  %v3128_v39 = vsel %vm3118_vm7, %v3111_v10, %v3113_v35  ;;  %4088 = vrot.lane.b32.xlu2 %v4072_v32, %s5434_s29 }
 0x2e0   : > { %5239 = vmatpush.msk.msra.mxu1 %vm295_vm2, %v3128_v39  ;;  %v4073_v39 = vld.sshfl [vmem:[#allocation1 + $0x8] sm:$0xff pattern:$0x75316420] }
 0x2e1   : > { %v2477_v8 = vpop.f32.mrf.mxu2  ;;  %4080 = vst [vmem:[#allocation1] ss:$2 sm:$0xff] %v5501_v5 }
 0x2e2   : > { %v7113_v6 = vadd.f32 %v2477_v8, %v6830_v22  ;;  %v7115_v43 = vpop.f32.mrf.mxu0  ;;  %v7117_v18 = vpop.f32.mrf.mxu1 }
 0x2e3   : > { %8390 = vst [vmem:[#allocation106_spill] sm:$0xff] %v7115_v43  ;;  %v2506_v33 = vpop.f32.mrf.mxu3  ;;  %4092 = vrot.lane.b32.xlu1 %v4074_v48, %s5434_s29  ;;  %v4076_v43 = vld.sshfl [vmem:[#allocation1 + $0x20] sm:$0xff pattern:$0x75316420] }
 0x2e4   : > { %8391 = vst [vmem:[#allocation107_spill] sm:$0xff] %v7117_v18  ;;  %v7120_v52 = vadd.f32 %v2506_v33, %v6837_v61  ;;  %v3130_v18 = vsel %vm3118_vm7, %v3115_v57, %v3117_v50  ;;  %4096 = vrot.lane.b32.xlu0 %v4076_v43, %s5434_s29  ;;  %v4077_v50 = vld.sshfl [vmem:[#allocation1 + $0x28] sm:$0xff pattern:$0x75316420] }
 0x2e5   : > { %5197 = vmatmul.msk.f32.gmra.mxu0 %vm286_vm1, %v7023_v2  ;;  %5202 = vmatmul.msk.f32.gmra.mxu1 %vm286_vm1, %v7023_v2  ;;  %4082 = vst [vmem:[#allocation1 + $0x20] ss:$2 sm:$0xff] %v8357_v30  ;;  %v5410_v30 = vld [vmem:[%s8262_s1 + $0x10] sm:$0xff] }
 0x2e6   : > { %5207 = vmatmul.msk.f32.gmra.mxu2 %vm286_vm1, %v7023_v2  ;;  %5249 = vmatpush.msk.msra.mxu3 %vm295_vm2, %v3130_v18  ;;  %v7167_v18 = vpop.permute.xlu2 %3559 }
 0x2e7   : > { %5212 = vmatmul.msk.f32.gmra.mxu3 %vm286_vm1, %v7023_v2 }
 0x2e9   : > { %v2480_v22 = vpop.f32.mrf.mxu2 }
 0x2ea   : > { %v7132_v61 = vadd.f32 %v2480_v22, %v6850_v60  ;;  %v7134_v8 = vpop.f32.mrf.mxu1  ;;  %v7136_v33 = vpop.f32.mrf.mxu0  ;;  %v3129_v60 = vsel %vm3118_vm7, %v3113_v35, %v3115_v57 }
 0x2eb   : > { %8392 = vst [vmem:[#allocation108_spill] sm:$0xff] %v7134_v8  ;;  %v2509_v14 = vpop.f32.mrf.mxu3  ;;  %5244 = vmatpush.msk.msra.mxu2 %vm295_vm2, %v3129_v60 }
 0x2ec   : > { %8393 = vst [vmem:[#allocation109_spill] sm:$0xff] %v7136_v33  ;;  %v7142_v48 = vadd.f32 %v2509_v14, %v6860_v29  ;;  %v5409_v29 = vld [vmem:[%s8262_s1 + $0x18] sm:$0xff]  ;;  %4090 = vrot.lane.b32.xlu0 %v4073_v39, %s5434_s29 }
 0x2ed   : > { %5198 = vmatmul.msk.f32.gmra.mxu0 %vm286_vm1, %v6945_v21  ;;  %5203 = vmatmul.msk.f32.gmra.mxu1 %vm286_vm1, %v6945_v21 }
 0x2ee   : > { %5208 = vmatmul.msk.f32.gmra.mxu2 %vm286_vm1, %v6945_v21  ;;  %4063 = vrot.lane.b32.xlu1 %v5409_v29, %s5433_s28 }
 0x2ef   : > { %5213 = vmatmul.msk.f32.gmra.mxu3 %vm286_vm1, %v6945_v21 }
 0x2f1   : > { %v2483_v10 = vpop.f32.mrf.mxu2 }
 0x2f2   : > { %v7161_v35 = vadd.f32 %v2483_v10, %v6877_v37  ;;  %v7163_v14 = vpop.f32.mrf.mxu1  ;;  %v7165_v57 = vpop.f32.mrf.mxu0 }
 0x2f3   : > { %8394 = vst [vmem:[#allocation110_spill] sm:$0xff] %v7163_v14  ;;  %v2512_v43 = vpop.f32.mrf.mxu3 }
 0x2f4   : > { %v7171_v22 = vadd.f32 %v2512_v43, %v6888_v7  ;;  %4061 = vrot.lane.b32.xlu0 %v5410_v30, %s5433_s28  ;;  %v3595_v43 = vpop.permute.xlu2 %3594 }
 0x2f5   : > { %5215 = vmatmul.msk.f32.vlgmr.msrb.gmra.mxu0 %vm286_vm1, %v6883_v12  ;;  %5220 = vmatmul.msk.f32.vlgmr.msrb.gmra.mxu1 %vm286_vm1, %v6883_v12 }
 0x2f6   : > { %5225 = vmatmul.msk.f32.vlgmr.msrb.gmra.mxu2 %vm286_vm1, %v6883_v12  ;;  %4098 = vrot.lane.b32.xlu1 %v4077_v50, %s5434_s29 }
 0x2f7   : > { %5230 = vmatmul.msk.f32.vlgmr.msrb.gmra.mxu3 %vm286_vm1, %v6883_v12 }
 0x2f9   : > { %v2740_v37 = vpop.f32.mrf.mxu2 }
 0x2fa   : > { %v7184_v7 = vadd.f32 %v2740_v37, %v6902_v63  ;;  %v7186_v60 = vpop.f32.mrf.mxu1  ;;  %v7188_v29 = vpop.f32.mrf.mxu0 }
 0x2fb   : > { %v2769_v10 = vpop.f32.mrf.mxu3  ;;  %v3599_v63 = vpop.permute.xlu1 %3598 }
 0x2fc   : > { %v7195_v39 = vadd.f32 %v2769_v10, %v6911_v23 }
 0x2fd   : > { %5216 = vmatmul.msk.f32.gmra.mxu0 %vm286_vm1, %v6986_v28  ;;  %5221 = vmatmul.msk.f32.gmra.mxu1 %vm286_vm1, %v6986_v28  ;;  %v3597_v50 = vpop.permute.xlu0 %3596 }
 0x2fe   : > { %5226 = vmatmul.msk.f32.gmra.mxu2 %vm286_vm1, %v6986_v28  ;;  %v3619_v23 = vsel %vm3616_vm8, %v3595_v43, %v3597_v50  ;;  %v3620_v10 = vsel %vm3616_vm8, %v3597_v50, %v3599_v63  ;;  %v7227_v50 = vpop.permute.xlu2 %3565 }
 0x2ff   : > { %5231 = vmatmul.msk.f32.gmra.mxu3 %vm286_vm1, %v6986_v28  ;;  %5264 = vmatpush.msk.msrb.mxu2 %vm295_vm2, %v3619_v23 }
 0x300   : > { %5269 = vmatpush.msk.msrb.mxu3 %vm295_vm2, %v3620_v10 }
 0x301   : > { %v2743_v37 = vpop.f32.mrf.mxu2 }
 0x302   : > { %v7208_v30 = vadd.f32 %v2743_v37, %v6930_v9  ;;  %v7210_v33 = vpop.f32.mrf.mxu1  ;;  %v7212_v8 = vpop.f32.mrf.mxu0 }
 0x303   : > { %v2772_v31 = vpop.f32.mrf.mxu3  ;;  %v3593_v9 = vpop.permute.xlu1 %3592 }
 0x304   : > { %v7219_v44 = vadd.f32 %v2772_v31, %v6937_v56  ;;  %v3618_v37 = vsel %vm3616_vm8, %v3593_v9, %v3595_v43 }
 0x305   : > { %5217 = vmatmul.msk.f32.gmra.mxu0 %vm286_vm1, %v7023_v2  ;;  %5222 = vmatmul.msk.f32.gmra.mxu1 %vm286_vm1, %v7023_v2  ;;  %v3591_v16 = vpop.permute.xlu0 %3590 }
 0x306   : > { %5227 = vmatmul.msk.f32.gmra.mxu2 %vm286_vm1, %v7023_v2  ;;  %5259 = vmatpush.msk.msrb.mxu1 %vm295_vm2, %v3618_v37  ;;  %v3617_v31 = vsel %vm3616_vm8, %v3591_v16, %v3593_v9 }
 0x307   : > { %5232 = vmatmul.msk.f32.gmra.mxu3 %vm286_vm1, %v7023_v2  ;;  %5254 = vmatpush.msk.msrb.mxu0 %vm295_vm2, %v3617_v31 }
 0x309   : > { %v2746_v56 = vpop.f32.mrf.mxu2 }
 0x30a   : > { %v7235_v41 = vadd.f32 %v2746_v56, %v6957_v51  ;;  %v7237_v23 = vpop.f32.mrf.mxu1  ;;  %v7239_v10 = vpop.f32.mrf.mxu0 }
 0x30b   : > { %8395 = vst [vmem:[#allocation111_spill] sm:$0xff] %v7237_v23  ;;  %v2775_v43 = vpop.f32.mrf.mxu3  ;;  %v3601_v51 = vpop.permute.xlu2 %3600 }
 0x30c   : > { %8396 = vst [vmem:[#allocation112_spill] sm:$0xff] %v7239_v10  ;;  %v7245_v37 = vadd.f32 %v2775_v43, %v6964_v40  ;;  %v3621_v56 = vsel %vm3616_vm8, %v3599_v63, %v3601_v51  ;;  %v5411_v43 = vld [vmem:[%s8262_s1 + $0x8] sm:$0xff] }
 0x30d   : > { %5218 = vmatmul.msk.f32.gmra.mxu0 %vm286_vm1, %v6945_v21  ;;  %5223 = vmatmul.msk.f32.gmra.mxu1 %vm286_vm1, %v6945_v21  ;;  %v7263_v31 = vpop.permute.xlu0 %3561 }
 0x30e   : > { %5228 = vmatmul.msk.f32.gmra.mxu2 %vm286_vm1, %v6945_v21  ;;  %4059 = vrot.lane.b32.xlu2 %v5411_v43, %s5433_s28 }
 0x30f   : > { %5233 = vmatmul.msk.f32.gmra.mxu3 %vm286_vm1, %v6945_v21 }
 0x311   : > { %v2749_v9 = vpop.f32.mrf.mxu2 }
 0x312   : > { %v7256_v32 = vadd.f32 %v2749_v9, %v6979_v46  ;;  %v7258_v5 = vpop.f32.mrf.mxu1  ;;  %v7260_v40 = vpop.f32.mrf.mxu0  ;;  %v4083_v46 = vld.sshfl [vmem:[#allocation1] sm:$0xff pattern:$0x75316420] }
 0x313   : > { %8397 = vst [vmem:[#allocation113_spill] sm:$0xff] %v7258_v5  ;;  %v2778_v16 = vpop.f32.mrf.mxu3  ;;  %4104 = vrot.lane.b32.xlu0 %v4083_v46, %s5434_s29 }
 0x314   : > { %8398 = vst [vmem:[#allocation114_spill] sm:$0xff] %v7260_v40  ;;  %v7270_v27 = vadd.f32 %v2778_v16, %v6989_v4 }
 0x315   : > { %5235 = vmatmul.msk.f32.vlgmr.msra.gmra.mxu0 %vm286_vm1, %v6883_v12  ;;  %5240 = vmatmul.msk.f32.vlgmr.msra.gmra.mxu1 %vm286_vm1, %v6883_v12  ;;  %v3605_v40 = vpop.permute.xlu0 %3604 }
 0x316   : > { %5245 = vmatmul.msk.f32.vlgmr.msra.gmra.mxu2 %vm286_vm1, %v6883_v12  ;;  %5274 = vmatpush.msk.msra.mxu0 %vm295_vm2, %v3621_v56  ;;  %v7301_v56 = vpop.permute.xlu1 %3563 }
 0x317   : > { %5250 = vmatmul.msk.f32.vlgmr.msra.gmra.mxu3 %vm286_vm1, %v6883_v12  ;;  %v4079_v12 = vld.sshfl [vmem:[#allocation1 + $0x38] sm:$0xff pattern:$0x75316420] }
 0x318   : > { %4102 = vrot.lane.b32.xlu2 %v4079_v12, %s5434_s29 }
 0x319   : > { %v2856_v63 = vpop.f32.mrf.mxu2 }
 0x31a   : > { %v7283_v4 = vadd.f32 %v2856_v63, %v7006_v3  ;;  %v7285_v9 = vpop.f32.mrf.mxu0  ;;  %v7287_v16 = vpop.f32.mrf.mxu1 }
 0x31b   : > { %8399 = vst [vmem:[#allocation115_spill] sm:$0xff] %v7285_v9  ;;  %v2885_v43 = vpop.f32.mrf.mxu3 }
 0x31c   : > { %8400 = vst [vmem:[#allocation116_spill] sm:$0xff] %v7287_v16  ;;  %v7290_v5 = vadd.f32 %v2885_v43, %v7013_v58 }
 0x31d   : > { %5236 = vmatmul.msk.f32.gmra.mxu0 %vm286_vm1, %v6986_v28  ;;  %5241 = vmatmul.msk.f32.gmra.mxu1 %vm286_vm1, %v6986_v28  ;;  %v3603_v16 = vpop.permute.xlu0 %3602 }
 0x31e   : > { %5246 = vmatmul.msk.f32.gmra.mxu2 %vm286_vm1, %v6986_v28  ;;  %v3622_v10 = vsel %vm3616_vm8, %v3601_v51, %v3603_v16  ;;  %v3607_v51 = vpop.permute.xlu1 %3606 }
 0x31f   : > { %5251 = vmatmul.msk.f32.gmra.mxu3 %vm286_vm1, %v6986_v28  ;;  %v3623_v28 = vsel %vm3616_vm8, %v3603_v16, %v3605_v40  ;;  %5279 = vmatpush.msk.msra.mxu1 %vm295_vm2, %v3622_v10  ;;  %v4086_v10 = vld.sshfl [vmem:[#allocation1 + $0x18] sm:$0xff pattern:$0x75316420] }
 0x320   : > { %5284 = vmatpush.msk.msra.mxu2 %vm295_vm2, %v3623_v28  ;;  %4110 = vrot.lane.b32.xlu0 %v4086_v10, %s5434_s29 }
 0x321   : > { %v2859_v3 = vpop.f32.mrf.mxu2 }
 0x322   : > { %v7304_v58 = vadd.f32 %v2859_v3, %v7026_v62  ;;  %v7306_v46 = vpop.f32.mrf.mxu0  ;;  %v7308_v63 = vpop.f32.mrf.mxu1  ;;  %v4078_v62 = vld.sshfl [vmem:[#allocation1 + $0x30] sm:$0xff pattern:$0x75316420] }
 0x323   : > { %8401 = vst [vmem:[#allocation117_spill] sm:$0xff] %v7306_v46  ;;  %v2888_v43 = vpop.f32.mrf.mxu3  ;;  %4100 = vrot.lane.b32.xlu2 %v4078_v62, %s5434_s29 }
 0x324   : > { %8402 = vst [vmem:[#allocation118_spill] sm:$0xff] %v7308_v63  ;;  %v7311_v9 = vadd.f32 %v2888_v43, %v7033_v34  ;;  %v3624_v43 = vsel %vm3616_vm8, %v3605_v40, %v3607_v51 }
 0x325   : > { %5237 = vmatmul.msk.f32.gmra.mxu0 %vm286_vm1, %v7023_v2  ;;  %5242 = vmatmul.msk.f32.gmra.mxu1 %vm286_vm1, %v7023_v2  ;;  %v3609_v40 = vpop.permute.xlu0 %3608 }
 0x326   : > { %5247 = vmatmul.msk.f32.gmra.mxu2 %vm286_vm1, %v7023_v2  ;;  %5289 = vmatpush.msk.msra.mxu3 %vm295_vm2, %v3624_v43  ;;  %v3625_v43 = vsel %vm3616_vm8, %v3607_v51, %v3609_v40 }
 0x327   : > { %5252 = vmatmul.msk.f32.gmra.mxu3 %vm286_vm1, %v7023_v2 }
 0x329   : > { %v2862_v34 = vpop.f32.mrf.mxu2 }
 0x32a   : > { %v7327_v16 = vadd.f32 %v2862_v34, %v7049_v0  ;;  %v7329_v12 = vpop.f32.mrf.mxu1  ;;  %v7331_v3 = vpop.f32.mrf.mxu0  ;;  %v4084_v0 = vld.sshfl [vmem:[#allocation1 + $0x8] sm:$0xff pattern:$0x75316420] }
 0x32b   : > { %8403 = vst [vmem:[#allocation119_spill] sm:$0xff] %v7329_v12  ;;  %v2891_v63 = vpop.f32.mrf.mxu3  ;;  %4106 = vrot.lane.b32.xlu2 %v4084_v0, %s5434_s29  ;;  %v4087_v12 = vld.sshfl [vmem:[#allocation1 + $0x20] sm:$0xff pattern:$0x75316420] }
 0x32c   : > { %8404 = vst [vmem:[#allocation120_spill] sm:$0xff] %v7331_v3  ;;  %v7336_v2 = vadd.f32 %v2891_v63, %v7057_v11  ;;  %4112 = vrot.lane.b32.xlu1 %v4087_v12, %s5434_s29 }
 0x32d   : > { %5238 = vmatmul.msk.f32.gmra.mxu0 %vm286_vm1, %v6945_v21  ;;  %5243 = vmatmul.msk.f32.gmra.mxu1 %vm286_vm1, %v6945_v21 }
 0x32e   : > { %5248 = vmatmul.msk.f32.gmra.mxu2 %vm286_vm1, %v6945_v21 }
 0x32f   : > { %5253 = vmatmul.msk.f32.gmra.mxu3 %vm286_vm1, %v6945_v21  ;;  %v4085_v21 = vld.sshfl [vmem:[#allocation1 + $0x10] sm:$0xff pattern:$0x75316420] }
 0x330   : > { %4108 = vrot.lane.b32.xlu0 %v4085_v21, %s5434_s29 }
 0x331   : > { %v2865_v11 = vpop.f32.mrf.mxu2 }
 0x332   : > { %v7349_v63 = vadd.f32 %v2865_v11, %v7069_v45  ;;  %v7351_v28 = vpop.f32.mrf.mxu1  ;;  %v7353_v62 = vpop.f32.mrf.mxu0 }
 0x333   : > { %8405 = vst [vmem:[#allocation121_spill] sm:$0xff] %v7351_v28  ;;  %v2894_v34 = vpop.f32.mrf.mxu3 }
 0x334   : > { %8406 = vst [vmem:[#allocation122_spill] sm:$0xff] %v7353_v62  ;;  %v7357_v10 = vadd.f32 %v2894_v34, %v7077_v36 }
 0x335   : > { %5255 = vmatmul.msk.f32.vlgmr.msrb.gmra.mxu0 %vm286_vm1, %v7167_v18  ;;  %5260 = vmatmul.msk.f32.vlgmr.msrb.gmra.mxu1 %vm286_vm1, %v7167_v18 }
 0x336   : > { %5265 = vmatmul.msk.f32.vlgmr.msrb.gmra.mxu2 %vm286_vm1, %v7167_v18  ;;  %5294 = vmatpush.msk.msrb.mxu0 %vm295_vm2, %v3625_v43 }
 0x337   : > { %5270 = vmatmul.msk.f32.vlgmr.msrb.gmra.mxu3 %vm286_vm1, %v7167_v18 }
 0x339   : > { %v2972_v36 = vpop.f32.mrf.mxu2 }
 0x33a   : > { %v7371_v45 = vadd.f32 %v2972_v36, %v7091_v54  ;;  %v7373_v51 = vpop.f32.mrf.mxu0  ;;  %v7375_v0 = vpop.f32.mrf.mxu1 }
 0x33b   : > { %8407 = vst [vmem:[#allocation123_spill] sm:$0xff] %v7373_v51  ;;  %v3001_v11 = vpop.f32.mrf.mxu3  ;;  %v3613_v54 = vpop.permute.xlu1 %3612 }
 0x33c   : > { %8408 = vst [vmem:[#allocation124_spill] sm:$0xff] %v7375_v0  ;;  %v7378_v34 = vadd.f32 %v3001_v11, %v7098_v1  ;;  %v3615_v0 = vpop.permute.xlu2 %3614 }
 0x33d   : > { %5256 = vmatmul.msk.f32.gmra.mxu0 %vm286_vm1, %v7263_v31  ;;  %5261 = vmatmul.msk.f32.gmra.mxu1 %vm286_vm1, %v7263_v31  ;;  %v3628_v51 = vsel %vm3616_vm8, %v3613_v54, %v3615_v0 }
 0x33e   : > { %5266 = vmatmul.msk.f32.gmra.mxu2 %vm286_vm1, %v7263_v31  ;;  %5309 = vmatpush.msk.msrb.mxu3 %vm295_vm2, %v3628_v51 }
 0x33f   : > { %5271 = vmatmul.msk.f32.gmra.mxu3 %vm286_vm1, %v7263_v31 }
 0x341   : > { %v2975_v12 = vpop.f32.mrf.mxu2 }
 0x342   : > { %v7389_v43 = vadd.f32 %v2975_v12, %v7113_v6  ;;  %v7391_v21 = vpop.f32.mrf.mxu0  ;;  %v7393_v1 = vpop.f32.mrf.mxu1 }
 0x343   : > { %8409 = vst [vmem:[#allocation125_spill] sm:$0xff] %v7391_v21  ;;  %v3004_v36 = vpop.f32.mrf.mxu3 }
 0x344   : > { %8410 = vst [vmem:[#allocation126_spill] sm:$0xff] %v7393_v1  ;;  %v7396_v11 = vadd.f32 %v3004_v36, %v7120_v52  ;;  %v3611_v52 = vpop.permute.xlu1 %3610 }
 0x345   : > { %5257 = vmatmul.msk.f32.gmra.mxu0 %vm286_vm1, %v7301_v56  ;;  %5262 = vmatmul.msk.f32.gmra.mxu1 %vm286_vm1, %v7301_v56  ;;  %v3626_v21 = vsel %vm3616_vm8, %v3609_v40, %v3611_v52  ;;  %v3627_v0 = vsel %vm3616_vm8, %v3611_v52, %v3613_v54 }
 0x346   : > { %5267 = vmatmul.msk.f32.gmra.mxu2 %vm286_vm1, %v7301_v56  ;;  %5299 = vmatpush.msk.msrb.mxu1 %vm295_vm2, %v3626_v21 }
 0x347   : > { %5272 = vmatmul.msk.f32.gmra.mxu3 %vm286_vm1, %v7301_v56  ;;  %5304 = vmatpush.msk.msrb.mxu2 %vm295_vm2, %v3627_v0 }
 0x349   : > { %v2978_v6 = vpop.f32.mrf.mxu2 }
 0x34a   : > { %v7409_v12 = vadd.f32 %v2978_v6, %v7132_v61  ;;  %v7411_v36 = vpop.f32.mrf.mxu1  ;;  %v7413_v1 = vpop.f32.mrf.mxu0 }
 0x34b   : > { %8411 = vst [vmem:[#allocation127_spill] sm:$0xff] %v7411_v36  ;;  %v3007_v62 = vpop.f32.mrf.mxu3  ;;  %v4095_v36 = vpop.permute.xlu2 %4094 }
 0x34c   : > { %8412 = vst [vmem:[#allocation128_spill] sm:$0xff] %v7413_v1  ;;  %v7420_v51 = vadd.f32 %v3007_v62, %v7142_v48 }
 0x34d   : > { %5258 = vmatmul.msk.f32.gmra.mxu0 %vm286_vm1, %v7227_v50  ;;  %5263 = vmatmul.msk.f32.gmra.mxu1 %vm286_vm1, %v7227_v50  ;;  %v7430_v40 = vpop.permute.xlu1 %4057 }
 0x34e   : > { %5268 = vmatmul.msk.f32.gmra.mxu2 %vm286_vm1, %v7227_v50 }
 0x34f   : > { %5273 = vmatmul.msk.f32.gmra.mxu3 %vm286_vm1, %v7227_v50 }
 0x351   : > { %v2981_v61 = vpop.f32.mrf.mxu2 }
 0x352   : > { %v7433_v54 = vadd.f32 %v2981_v61, %v7161_v35  ;;  %v7435_v48 = vpop.f32.mrf.mxu1  ;;  %v7437_v62 = vpop.f32.mrf.mxu0 }
 0x353   : > { %8413 = vst [vmem:[#allocation129_spill] sm:$0xff] %v7435_v48  ;;  %v3010_v21 = vpop.f32.mrf.mxu3 }
 0x354   : > { %v7440_v6 = vadd.f32 %v3010_v21, %v7171_v22 }
 0x355   : > { %5275 = vmatmul.msk.f32.vlgmr.msra.gmra.mxu0 %vm286_vm1, %v7167_v18  ;;  %5280 = vmatmul.msk.f32.vlgmr.msra.gmra.mxu1 %vm286_vm1, %v7167_v18  ;;  %v4093_v1 = vpop.permute.xlu1 %4092 }
 0x356   : > { %5285 = vmatmul.msk.f32.vlgmr.msra.gmra.mxu2 %vm286_vm1, %v7167_v18  ;;  %v4097_v28 = vpop.permute.xlu0 %4096 }
 0x357   : > { %5290 = vmatmul.msk.f32.vlgmr.msra.gmra.mxu3 %vm286_vm1, %v7167_v18 }
 0x359   : > { %v3238_v35 = vpop.f32.mrf.mxu2 }
 0x35a   : > { %v7451_v52 = vadd.f32 %v3238_v35, %v7184_v7  ;;  %v7453_v0 = vpop.f32.mrf.mxu0  ;;  %v7455_v22 = vpop.f32.mrf.mxu1  ;;  %v4117_v7 = vsel %vm4114_vm9, %v4093_v1, %v4095_v36  ;;  %v4118_v35 = vsel %vm4114_vm9, %v4095_v36, %v4097_v28 }
 0x35b   : > { %v3267_v61 = vpop.f32.mrf.mxu3  ;;  %5324 = vmatpush.msk.msra.mxu2 %vm295_vm2, %v4117_v7  ;;  %5329 = vmatpush.msk.msra.mxu3 %vm295_vm2, %v4118_v35  ;;  %v4089_v7 = vpop.permute.xlu2 %4088 }
 0x35c   : > { %v7458_v21 = vadd.f32 %v3267_v61, %v7195_v39 }
 0x35d   : > { %5276 = vmatmul.msk.f32.gmra.mxu0 %vm286_vm1, %v7263_v31  ;;  %5281 = vmatmul.msk.f32.gmra.mxu1 %vm286_vm1, %v7263_v31 }
 0x35e   : > { %5286 = vmatmul.msk.f32.gmra.mxu2 %vm286_vm1, %v7263_v31  ;;  %v4091_v36 = vpop.permute.xlu0 %4090 }
 0x35f   : > { %5291 = vmatmul.msk.f32.gmra.mxu3 %vm286_vm1, %v7263_v31  ;;  %v4116_v35 = vsel %vm4114_vm9, %v4091_v36, %v4093_v1 }
 0x360   : > { %5319 = vmatpush.msk.msra.mxu1 %vm295_vm2, %v4116_v35 }
 0x361   : > { %v3241_v39 = vpop.f32.mrf.mxu2 }
 0x362   : > { %v7473_v61 = vadd.f32 %v3241_v39, %v7208_v30  ;;  %v7475_v3 = vpop.f32.mrf.mxu0  ;;  %v7477_v46 = vpop.f32.mrf.mxu1  ;;  %v4115_v39 = vsel %vm4114_vm9, %v4089_v7, %v4091_v36 }
 0x363   : > { %v3270_v48 = vpop.f32.mrf.mxu3  ;;  %v7488_v30 = vpop.permute.xlu1 %4063  ;;  %5314 = vmatpush.msk.msra.mxu0 %vm295_vm2, %v4115_v39 }
 0x364   : > { %v7480_v14 = vadd.f32 %v3270_v48, %v7219_v44 }
 0x365   : > { %5277 = vmatmul.msk.f32.gmra.mxu0 %vm286_vm1, %v7301_v56  ;;  %5282 = vmatmul.msk.f32.gmra.mxu1 %vm286_vm1, %v7301_v56 }
 0x366   : > { %5287 = vmatmul.msk.f32.gmra.mxu2 %vm286_vm1, %v7301_v56 }
 0x367   : > { %5292 = vmatmul.msk.f32.gmra.mxu3 %vm286_vm1, %v7301_v56 }
 0x369   : > { %v3244_v44 = vpop.f32.mrf.mxu2 }
 0x36a   : > { %v7497_v48 = vadd.f32 %v3244_v44, %v7235_v41  ;;  %v7499_v23 = vpop.f32.mrf.mxu0  ;;  %v7501_v38 = vpop.f32.mrf.mxu1 }
 0x36b   : > { %8414 = vst [vmem:[#allocation130_spill] sm:$0xff] %v7499_v23  ;;  %v3273_v19 = vpop.f32.mrf.mxu3  ;;  %v4099_v41 = vpop.permute.xlu1 %4098 }
 0x36c   : > { %8415 = vst [vmem:[#allocation131_spill] sm:$0xff] %v7501_v38  ;;  %v7504_v1 = vadd.f32 %v3273_v19, %v7245_v37  ;;  %v4119_v39 = vsel %vm4114_vm9, %v4097_v28, %v4099_v41  ;;  %v7522_v44 = vpop.permute.xlu2 %4059 }
 0x36d   : > { %5278 = vmatmul.msk.f32.gmra.mxu0 %vm286_vm1, %v7227_v50  ;;  %5283 = vmatmul.msk.f32.gmra.mxu1 %vm286_vm1, %v7227_v50 }
 0x36e   : > { %5288 = vmatmul.msk.f32.gmra.mxu2 %vm286_vm1, %v7227_v50 }
 0x36f   : > { %5293 = vmatmul.msk.f32.gmra.mxu3 %vm286_vm1, %v7227_v50 }
 0x371   : > { %v3247_v36 = vpop.f32.mrf.mxu2 }
 0x372   : > { %v7515_v7 = vadd.f32 %v3247_v36, %v7256_v32  ;;  %v7517_v35 = vpop.f32.mrf.mxu0  ;;  %v7519_v19 = vpop.f32.mrf.mxu1 }
 0x373   : > { %8416 = vst [vmem:[#allocation132_spill] sm:$0xff] %v7517_v35  ;;  %v3276_v37 = vpop.f32.mrf.mxu3 }
 0x374   : > { %8417 = vst [vmem:[#allocation133_spill] sm:$0xff] %v7519_v19  ;;  %v7525_v23 = vadd.f32 %v3276_v37, %v7270_v27  ;;  %v5435_v37 = vmov 0   ;;  %v4558_v19 = vld [vmem:[%s8263_s2 + $0x18] sm:$0xff] }
 0x375   : > { %5295 = vmatmul.msk.f32.vlgmr.msrb.gmra.mxu0 %vm286_vm1, %v7167_v18  ;;  %5300 = vmatmul.msk.f32.vlgmr.msrb.gmra.mxu1 %vm286_vm1, %v7167_v18 }
 0x376   : > { %5305 = vmatmul.msk.f32.vlgmr.msrb.gmra.mxu2 %vm286_vm1, %v7167_v18  ;;  %5334 = vmatpush.msk.msrb.mxu0 %vm295_vm2, %v4119_v39  ;;  %v4103_v39 = vpop.permute.xlu2 %4102 }
 0x377   : > { %5310 = vmatmul.msk.f32.vlgmr.msrb.gmra.mxu3 %vm286_vm1, %v7167_v18  ;;  %5401 = vset.pattern.permute.xlu1 %v5435_v37 }
 0x378   : > { %5403 = vset.pattern.permute.xlu0 %v5435_v37  ;;  %4576 = vperm.xlu1 %5401, %v4558_v19  }
 0x379   : > { %v3354_v32 = vpop.f32.mrf.mxu2  ;;  %5402 = vset.pattern.permute.xlu2 %v5435_v37  ;;  %v4555_v37 = vld [vmem:[%s8263_s2] sm:$0xff] }
 0x37a   : > { %v7537_v28 = vadd.f32 %v3354_v32, %v7283_v4  ;;  %v7539_v27 = vpop.f32.mrf.mxu0  ;;  %v7541_v36 = vpop.f32.mrf.mxu1 }
 0x37b   : > { %8418 = vst [vmem:[#allocation134_spill] sm:$0xff] %v7539_v27  ;;  %v3383_v35 = vpop.f32.mrf.mxu3  ;;  %v7557_v32 = vpop.permute.xlu0 %4061 }
 0x37c   : > { %8419 = vst [vmem:[#allocation135_spill] sm:$0xff] %v7541_v36  ;;  %v7547_v18 = vadd.f32 %v3383_v35, %v7290_v5 }
 0x37d   : > { %5296 = vmatmul.msk.f32.gmra.mxu0 %vm286_vm1, %v7263_v31  ;;  %5301 = vmatmul.msk.f32.gmra.mxu1 %vm286_vm1, %v7263_v31 }
 0x37e   : > { %5306 = vmatmul.msk.f32.gmra.mxu2 %vm286_vm1, %v7263_v31  ;;  %v4101_v27 = vpop.permute.xlu2 %4100 }
 0x37f   : > { %5311 = vmatmul.msk.f32.gmra.mxu3 %vm286_vm1, %v7263_v31  ;;  %v4120_v31 = vsel %vm4114_vm9, %v4099_v41, %v4101_v27  ;;  %v4121_v47 = vsel %vm4114_vm9, %v4101_v27, %v4103_v39 }
 0x380   : > { %4561 = vperm.xlu1 %5401, %v4555_v37   ;;  %5339 = vmatpush.msk.msrb.mxu1 %vm295_vm2, %v4120_v31  ;;  %v4556_v37 = vld [vmem:[%s8263_s2 + $0x8] sm:$0xff] }
 0x381   : > { %v3357_v4 = vpop.f32.mrf.mxu2  ;;  %5344 = vmatpush.msk.msrb.mxu2 %vm295_vm2, %v4121_v47  ;;  %4566 = vperm.xlu0 %5403, %v4556_v37  }
 0x382   : > { %v7560_v19 = vadd.f32 %v3357_v4, %v7304_v58  ;;  %v7562_v5 = vpop.f32.mrf.mxu0  ;;  %v7564_v35 = vpop.f32.mrf.mxu1 }
 0x383   : > { %8420 = vst [vmem:[#allocation136_spill] sm:$0xff] %v7562_v5  ;;  %v3386_v36 = vpop.f32.mrf.mxu3 }
 0x384   : > { %8421 = vst [vmem:[#allocation137_spill] sm:$0xff] %v7564_v35  ;;  %v7570_v38 = vadd.f32 %v3386_v36, %v7311_v9 }
 0x385   : > { %5297 = vmatmul.msk.f32.gmra.mxu0 %vm286_vm1, %v7301_v56  ;;  %5302 = vmatmul.msk.f32.gmra.mxu1 %vm286_vm1, %v7301_v56  ;;  %v4105_v58 = vpop.permute.xlu0 %4104 }
 0x386   : > { %5307 = vmatmul.msk.f32.gmra.mxu2 %vm286_vm1, %v7301_v56  ;;  %v4122_v4 = vsel %vm4114_vm9, %v4103_v39, %v4105_v58 }
 0x387   : > { %5312 = vmatmul.msk.f32.gmra.mxu3 %vm286_vm1, %v7301_v56  ;;  %v4107_v56 = vpop.permute.xlu2 %4106 }
 0x388   : > { %5349 = vmatpush.msk.msrb.mxu3 %vm295_vm2, %v4122_v4  ;;  %v4123_v37 = vsel %vm4114_vm9, %v4105_v58, %v4107_v56 }
 0x389   : > { %v3360_v9 = vpop.f32.mrf.mxu2 }
 0x38a   : > { %v7585_v41 = vadd.f32 %v3360_v9, %v7327_v16  ;;  %v7587_v27 = vpop.f32.mrf.mxu0  ;;  %v7589_v36 = vpop.f32.mrf.mxu1 }
 0x38b   : > { %8422 = vst [vmem:[#allocation138_spill] sm:$0xff] %v7587_v27  ;;  %v3389_v31 = vpop.f32.mrf.mxu3 }
 0x38c   : > { %8423 = vst [vmem:[#allocation139_spill] sm:$0xff] %v7589_v36  ;;  %v7597_v47 = vadd.f32 %v3389_v31, %v7336_v2 }
 0x38d   : > { %5298 = vmatmul.msk.f32.gmra.mxu0 %vm286_vm1, %v7227_v50  ;;  %5303 = vmatmul.msk.f32.gmra.mxu1 %vm286_vm1, %v7227_v50 }
 0x38e   : > { %5308 = vmatmul.msk.f32.gmra.mxu2 %vm286_vm1, %v7227_v50 }
 0x38f   : > { %5313 = vmatmul.msk.f32.gmra.mxu3 %vm286_vm1, %v7227_v50 }
 0x391   : > { %v3363_v16 = vpop.f32.mrf.mxu2 }
 0x392   : > { %v7608_v39 = vadd.f32 %v3363_v16, %v7349_v63  ;;  %v7610_v9 = vpop.f32.mrf.mxu0  ;;  %v7612_v2 = vpop.f32.mrf.mxu1 }
 0x393   : > { %8424 = vst [vmem:[#allocation140_spill] sm:$0xff] %v7610_v9  ;;  %v3392_v4 = vpop.f32.mrf.mxu3 }
 0x394   : > { %8425 = vst [vmem:[#allocation141_spill] sm:$0xff] %v7612_v2  ;;  %v7616_v31 = vadd.f32 %v3392_v4, %v7357_v10  ;;  %v4557_v2 = vld [vmem:[%s8263_s2 + $0x10] sm:$0xff] }
 0x395   : > { %5315 = vmatmul.msk.f32.vlgmr.msra.gmra.mxu0 %vm286_vm1, %v7430_v40  ;;  %5320 = vmatmul.msk.f32.vlgmr.msra.gmra.mxu1 %vm286_vm1, %v7430_v40 }
 0x396   : > { %5325 = vmatmul.msk.f32.vlgmr.msra.gmra.mxu2 %vm286_vm1, %v7430_v40  ;;  %5354 = vmatpush.msk.msra.mxu0 %vm295_vm2, %v4123_v37  ;;  %v4111_v37 = vpop.permute.xlu0 %4110 }
 0x397   : > { %5330 = vmatmul.msk.f32.vlgmr.msra.gmra.mxu3 %vm286_vm1, %v7430_v40  ;;  %4571 = vperm.xlu2 %5402, %v4557_v2  }
 0x399   : > { %v3470_v50 = vpop.f32.mrf.mxu2 }
 0x39a   : > { %v7628_v63 = vadd.f32 %v3470_v50, %v7371_v45  ;;  %v7630_v10 = vpop.f32.mrf.mxu1  ;;  %v7632_v58 = vpop.f32.mrf.mxu0 }
 0x39b   : > { %8426 = vst [vmem:[#allocation142_spill] sm:$0xff] %v7630_v10  ;;  %v3499_v16 = vpop.f32.mrf.mxu3 }
 0x39c   : > { %8427 = vst [vmem:[#allocation143_spill] sm:$0xff] %v7632_v58  ;;  %v7635_v4 = vadd.f32 %v3499_v16, %v7378_v34 }
 0x39d   : > { %5316 = vmatmul.msk.f32.gmra.mxu0 %vm286_vm1, %v7522_v44  ;;  %5321 = vmatmul.msk.f32.gmra.mxu1 %vm286_vm1, %v7522_v44 }
 0x39e   : > { %5326 = vmatmul.msk.f32.gmra.mxu2 %vm286_vm1, %v7522_v44 }
 0x39f   : > { %5331 = vmatmul.msk.f32.gmra.mxu3 %vm286_vm1, %v7522_v44 }
 0x3a1   : > { %v3473_v45 = vpop.f32.mrf.mxu2 }
 0x3a2   : > { %v7646_v50 = vadd.f32 %v3473_v45, %v7389_v43  ;;  %v7648_v58 = vpop.f32.mrf.mxu1  ;;  %v7650_v34 = vpop.f32.mrf.mxu0 }
 0x3a3   : > { %8428 = vst [vmem:[#allocation144_spill] sm:$0xff] %v7648_v58  ;;  %v3502_v16 = vpop.f32.mrf.mxu3  ;;  %v4113_v45 = vpop.permute.xlu1 %4112 }
 0x3a4   : > { %8429 = vst [vmem:[#allocation145_spill] sm:$0xff] %v7650_v34  ;;  %v7653_v10 = vadd.f32 %v3502_v16, %v7396_v11  ;;  %v4126_v16 = vsel %vm4114_vm9, %v4111_v37, %v4113_v45  ;;  %v4109_v36 = vpop.permute.xlu0 %4108 }
 0x3a5   : > { %5317 = vmatmul.msk.f32.gmra.mxu0 %vm286_vm1, %v7557_v32  ;;  %5322 = vmatmul.msk.f32.gmra.mxu1 %vm286_vm1, %v7557_v32 }
 0x3a6   : > { %5327 = vmatmul.msk.f32.gmra.mxu2 %vm286_vm1, %v7557_v32  ;;  %5369 = vmatpush.msk.msra.mxu3 %vm295_vm2, %v4126_v16 }
 0x3a7   : > { %5332 = vmatmul.msk.f32.gmra.mxu3 %vm286_vm1, %v7557_v32 }
 0x3a9   : > { %v3476_v43 = vpop.f32.mrf.mxu2 }
 0x3aa   : > { %v7664_v34 = vadd.f32 %v3476_v43, %v7409_v12  ;;  %v7666_v58 = vpop.f32.mrf.mxu1  ;;  %v7668_v11 = vpop.f32.mrf.mxu0  ;;  %v4124_v12 = vsel %vm4114_vm9, %v4107_v56, %v4109_v36  ;;  %v4125_v43 = vsel %vm4114_vm9, %v4109_v36, %v4111_v37 }
 0x3ab   : > { %8430 = vst [vmem:[#allocation146_spill] sm:$0xff] %v7666_v58  ;;  %v3505_v9 = vpop.f32.mrf.mxu3  ;;  %5359 = vmatpush.msk.msra.mxu1 %vm295_vm2, %v4124_v12  ;;  %5364 = vmatpush.msk.msra.mxu2 %vm295_vm2, %v4125_v43 }
 0x3ac   : > { %8431 = vst [vmem:[#allocation147_spill] sm:$0xff] %v7668_v11  ;;  %v7676_v27 = vadd.f32 %v3505_v9, %v7420_v51 }
 0x3ad   : > { %5318 = vmatmul.msk.f32.gmra.mxu0 %vm286_vm1, %v7488_v30  ;;  %5323 = vmatmul.msk.f32.gmra.mxu1 %vm286_vm1, %v7488_v30 }
 0x3ae   : > { %5328 = vmatmul.msk.f32.gmra.mxu2 %vm286_vm1, %v7488_v30 }
 0x3af   : > { %5333 = vmatmul.msk.f32.gmra.mxu3 %vm286_vm1, %v7488_v30 }
 0x3b1   : > { %v3479_v51 = vpop.f32.mrf.mxu2 }
 0x3b2   : > { %v7691_v56 = vadd.f32 %v3479_v51, %v7433_v54  ;;  %v7693_v36 = vpop.f32.mrf.mxu0  ;;  %v7695_v9 = vpop.f32.mrf.mxu1 }
 0x3b3   : > { %v3508_v2 = vpop.f32.mrf.mxu3 }
 0x3b4   : > { %v7698_v37 = vadd.f32 %v3508_v2, %v7440_v6 }
 0x3b5   : > { %5335 = vmatmul.msk.f32.vlgmr.msrb.gmra.mxu0 %vm286_vm1, %v7430_v40  ;;  %5340 = vmatmul.msk.f32.vlgmr.msrb.gmra.mxu1 %vm286_vm1, %v7430_v40 }
 0x3b6   : > { %5345 = vmatmul.msk.f32.vlgmr.msrb.gmra.mxu2 %vm286_vm1, %v7430_v40 }
 0x3b7   : > { %5350 = vmatmul.msk.f32.vlgmr.msrb.gmra.mxu3 %vm286_vm1, %v7430_v40 }
 0x3b9   : > { %v7708_v54 = vpop.f32.mrf.mxu2 }
 0x3ba   : > { %v7710_v45 = vpop.f32.mrf.mxu0  ;;  %v7712_v16 = vpop.f32.mrf.mxu1 }
 0x3bb   : > { %v3765_v6 = vpop.f32.mrf.mxu3 }
 0x3bc   : > { %v7715_v12 = vadd.f32 %v3765_v6, %v7458_v21 }
 0x3bd   : > { %5336 = vmatmul.msk.f32.gmra.mxu0 %vm286_vm1, %v7522_v44  ;;  %5341 = vmatmul.msk.f32.gmra.mxu1 %vm286_vm1, %v7522_v44 }
 0x3be   : > { %5346 = vmatmul.msk.f32.gmra.mxu2 %vm286_vm1, %v7522_v44 }
 0x3bf   : > { %5351 = vmatmul.msk.f32.gmra.mxu3 %vm286_vm1, %v7522_v44 }
 0x3c1   : > { %v3739_v43 = vpop.f32.mrf.mxu2 }
 0x3c2   : > { %v7726_v51 = vadd.f32 %v3739_v43, %v7473_v61  ;;  %v7728_v2 = vpop.f32.mrf.mxu0  ;;  %v7730_v21 = vpop.f32.mrf.mxu1 }
 0x3c3   : > { %v3768_v6 = vpop.f32.mrf.mxu3 }
 0x3c4   : > { %v7733_v11 = vadd.f32 %v3768_v6, %v7480_v14 }
 0x3c5   : > { %5337 = vmatmul.msk.f32.gmra.mxu0 %vm286_vm1, %v7557_v32  ;;  %5342 = vmatmul.msk.f32.gmra.mxu1 %vm286_vm1, %v7557_v32 }
 0x3c6   : > { %5347 = vmatmul.msk.f32.gmra.mxu2 %vm286_vm1, %v7557_v32 }
 0x3c7   : > { %5352 = vmatmul.msk.f32.gmra.mxu3 %vm286_vm1, %v7557_v32 }
 0x3c9   : > { %v3742_v61 = vpop.f32.mrf.mxu2 }
 0x3ca   : > { %v7744_v43 = vadd.f32 %v3742_v61, %v7497_v48  ;;  %v7746_v58 = vpop.f32.mrf.mxu1  ;;  %v7748_v14 = vpop.f32.mrf.mxu0 }
 0x3cb   : > { %8432 = vst [vmem:[#allocation148_spill] sm:$0xff] %v7748_v14  ;;  %v3771_v6 = vpop.f32.mrf.mxu3 }
 0x3cc   : > { %v7751_v35 = vadd.f32 %v3771_v6, %v7504_v1 }
 0x3cd   : > { %5338 = vmatmul.msk.f32.gmra.mxu0 %vm286_vm1, %v7488_v30  ;;  %5343 = vmatmul.msk.f32.gmra.mxu1 %vm286_vm1, %v7488_v30 }
 0x3ce   : > { %5348 = vmatmul.msk.f32.gmra.mxu2 %vm286_vm1, %v7488_v30 }
 0x3cf   : > { %5353 = vmatmul.msk.f32.gmra.mxu3 %vm286_vm1, %v7488_v30 }
 0x3d1   : > { %v3745_v48 = vpop.f32.mrf.mxu2 }
 0x3d2   : > { %v7762_v61 = vadd.f32 %v3745_v48, %v7515_v7  ;;  %v7764_v5 = vpop.f32.mrf.mxu0  ;;  %v7766_v1 = vpop.f32.mrf.mxu1 }
 0x3d3   : > { %v3774_v6 = vpop.f32.mrf.mxu3 }
 0x3d4   : > { %8433 = vst [vmem:[#allocation149_spill] sm:$0xff] %v7762_v61  ;;  %v7769_v14 = vadd.f32 %v3774_v6, %v7525_v23 }
 0x3d5   : > { %5355 = vmatmul.msk.f32.vlgmr.msra.gmra.mxu0 %vm286_vm1, %v7430_v40  ;;  %5360 = vmatmul.msk.f32.vlgmr.msra.gmra.mxu1 %vm286_vm1, %v7430_v40 }
 0x3d6   : > { %8434 = vst [vmem:[#allocation150_spill] sm:$0xff] %v7769_v14  ;;  %5365 = vmatmul.msk.f32.vlgmr.msra.gmra.mxu2 %vm286_vm1, %v7430_v40 }
 0x3d7   : > { %5370 = vmatmul.msk.f32.vlgmr.msra.gmra.mxu3 %vm286_vm1, %v7430_v40 }
 0x3d9   : > { %v3852_v7 = vpop.f32.mrf.mxu2 }
 0x3da   : > { %v7780_v48 = vadd.f32 %v3852_v7, %v7537_v28  ;;  %v7782_v61 = vpop.f32.mrf.mxu0  ;;  %v7784_v23 = vpop.f32.mrf.mxu1 }
 0x3db   : > { %v3881_v6 = vpop.f32.mrf.mxu3 }
 0x3dc   : > { %v7787_v14 = vadd.f32 %v3881_v6, %v7547_v18 }
 0x3dd   : > { %5356 = vmatmul.msk.f32.gmra.mxu0 %vm286_vm1, %v7522_v44  ;;  %5361 = vmatmul.msk.f32.gmra.mxu1 %vm286_vm1, %v7522_v44 }
 0x3de   : > { %8435 = vst [vmem:[#allocation151_spill] sm:$0xff] %v7787_v14  ;;  %5366 = vmatmul.msk.f32.gmra.mxu2 %vm286_vm1, %v7522_v44 }
 0x3df   : > { %5371 = vmatmul.msk.f32.gmra.mxu3 %vm286_vm1, %v7522_v44 }
 0x3e1   : > { %v3855_v40 = vpop.f32.mrf.mxu2 }
 0x3e2   : > { %v7798_v28 = vadd.f32 %v3855_v40, %v7560_v19  ;;  %v7800_v7 = vpop.f32.mrf.mxu0  ;;  %v7802_v18 = vpop.f32.mrf.mxu1 }
 0x3e3   : > { %v3884_v6 = vpop.f32.mrf.mxu3 }
 0x3e4   : > { %8436 = vst [vmem:[#allocation152_spill] sm:$0xff] %v7798_v28  ;;  %v7805_v14 = vadd.f32 %v3884_v6, %v7570_v38 }
 0x3e5   : > { %5357 = vmatmul.msk.f32.gmra.mxu0 %vm286_vm1, %v7557_v32  ;;  %5362 = vmatmul.msk.f32.gmra.mxu1 %vm286_vm1, %v7557_v32 }
 0x3e6   : > { %8437 = vst [vmem:[#allocation153_spill] sm:$0xff] %v7805_v14  ;;  %5367 = vmatmul.msk.f32.gmra.mxu2 %vm286_vm1, %v7557_v32 }
 0x3e7   : > { %5372 = vmatmul.msk.f32.gmra.mxu3 %vm286_vm1, %v7557_v32 }
 0x3e9   : > { %v3858_v44 = vpop.f32.mrf.mxu2 }
 0x3ea   : > { %v7816_v19 = vadd.f32 %v3858_v44, %v7585_v41  ;;  %v7818_v40 = vpop.f32.mrf.mxu0  ;;  %v7820_v38 = vpop.f32.mrf.mxu1 }
 0x3eb   : > { %8439 = vst [vmem:[#allocation155_spill] sm:$0xff] %v7818_v40  ;;  %v3887_v6 = vpop.f32.mrf.mxu3 }
 0x3ec   : > { %8438 = vst [vmem:[#allocation154_spill] sm:$0xff] %v7816_v19  ;;  %v7823_v14 = vadd.f32 %v3887_v6, %v7597_v47 }
 0x3ed   : > { %8440 = vst [vmem:[#allocation156_spill] sm:$0xff] %v7820_v38  ;;  %5358 = vmatmul.msk.f32.gmra.mxu0 %vm286_vm1, %v7488_v30  ;;  %5363 = vmatmul.msk.f32.gmra.mxu1 %vm286_vm1, %v7488_v30 }
 0x3ee   : > { %8441 = vst [vmem:[#allocation157_spill] sm:$0xff] %v7823_v14  ;;  %5368 = vmatmul.msk.f32.gmra.mxu2 %vm286_vm1, %v7488_v30 }
 0x3ef   : > { %5373 = vmatmul.msk.f32.gmra.mxu3 %vm286_vm1, %v7488_v30 }
 0x3f1   : > { %v3861_v32 = vpop.f32.mrf.mxu2 }
 0x3f2   : > { %v7834_v41 = vadd.f32 %v3861_v32, %v7608_v39  ;;  %v7836_v44 = vpop.f32.mrf.mxu0  ;;  %v7838_v47 = vpop.f32.mrf.mxu1 }
 0x3f3   : > { %8443 = vst [vmem:[#allocation159_spill] sm:$0xff] %v7836_v44  ;;  %v3890_v6 = vpop.f32.mrf.mxu3 }
 0x3f4   : > { %8442 = vst [vmem:[#allocation158_spill] sm:$0xff] %v7834_v41  ;;  %v7841_v14 = vadd.f32 %v3890_v6, %v7616_v31 }
 0x3f5   : > { %8444 = vst [vmem:[#allocation160_spill] sm:$0xff] %v7838_v47 }
 0x3f6   : > { %8445 = vst [vmem:[#allocation161_spill] sm:$0xff] %v7841_v14 }
 0x3f9   : > { %v3968_v19 = vpop.f32.mrf.mxu2 }
 0x3fa   : > { %v7844_v38 = vadd.f32 %v3968_v19, %v7628_v63  ;;  %v7846_v40 = vpop.f32.mrf.mxu0  ;;  %v7848_v28 = vpop.f32.mrf.mxu1 }
 0x3fb   : > { %8447 = vst [vmem:[#allocation163_spill] sm:$0xff] %v7846_v40  ;;  %v3997_v30 = vpop.f32.mrf.mxu3  ;;  %v8455_v40 = vld [vmem:[#allocation30_spill] sm:$0xff] }
 0x3fc   : > { %8446 = vst [vmem:[#allocation162_spill] sm:$0xff] %v7844_v38  ;;  %v7851_v39 = vadd.f32 %v3997_v30, %v7635_v4  ;;  %v8454_v38 = vld [vmem:[#allocation3_spill] sm:$0xff] }
 0x3fd   : > { %8448 = vst [vmem:[#allocation164_spill] sm:$0xff] %v7848_v28  ;;  %v739_v28 = vadd.f32 %v8455_v40, %v8454_v38 }
 0x3fe   : > { %8449 = vst [vmem:[#allocation165_spill] sm:$0xff] %v7851_v39  ;;  %v8463_v39 = vld [vmem:[#allocation34_spill] sm:$0xff] }
 0x401   : > { %v3971_v32 = vpop.f32.mrf.mxu2 }
 0x402   : > { %v7854_v41 = vadd.f32 %v3971_v32, %v7646_v50  ;;  %v7856_v47 = vpop.f32.mrf.mxu0  ;;  %v7858_v31 = vpop.f32.mrf.mxu1  ;;  %v8459_v32 = vld [vmem:[#allocation58_spill] sm:$0xff] }
 0x403   : > { %8451 = vst [vmem:[#allocation167_spill] sm:$0xff] %v7856_v47  ;;  %v4000_v6 = vpop.f32.mrf.mxu3  ;;  %v8460_v47 = vld [vmem:[#allocation5_spill] sm:$0xff] }
 0x404   : > { %8450 = vst [vmem:[#allocation166_spill] sm:$0xff] %v7854_v41  ;;  %v7861_v63 = vadd.f32 %v4000_v6, %v7653_v10  ;;  %v1519_v41 = vadd.f32 %v8459_v32, %v739_v28  ;;  %v8461_v10 = vld [vmem:[#allocation33_spill] sm:$0xff] }
 0x405   : > { %8452 = vst [vmem:[#allocation168_spill] sm:$0xff] %v7858_v31  ;;  %v742_v6 = vadd.f32 %v8461_v10, %v8460_v47 }
 0x406   : > { %8453 = vst [vmem:[#allocation169_spill] sm:$0xff] %v7861_v63  ;;  %v8462_v63 = vld [vmem:[#allocation6_spill] sm:$0xff]  ;;  %v2017_v40 = vadd.f32 %v6613_v53, %v1519_v41 }
 0x407   : > { %v771_v44 = vadd.f32 %v8463_v39, %v8462_v63 }
 0x409   : > { %v3974_v19 = vpop.f32.mrf.mxu2 }
 0x40a   : > { %v7866_v14 = vadd.f32 %v3974_v19, %v7664_v34  ;;  %v7868_v4 = vpop.f32.mrf.mxu0  ;;  %v7870_v30 = vpop.f32.mrf.mxu1  ;;  %v8464_v34 = vld [vmem:[#allocation60_spill] sm:$0xff]  ;;  %v8465_v19 = vld [vmem:[#allocation61_spill] sm:$0xff] }
 0x40b   : > { %8457 = vst [vmem:[#allocation30_spill] sm:$0xff] %v7868_v4  ;;  %v4003_v50 = vpop.f32.mrf.mxu3  ;;  %v1532_v38 = vadd.f32 %v8464_v34, %v771_v44  ;;  %v7883_v4 = vpop.permute.xlu1 %4576  ;;  %v8470_v34 = vld [vmem:[#allocation62_spill] sm:$0xff] }
 0x40c   : > { %8456 = vst [vmem:[#allocation3_spill] sm:$0xff] %v7866_v14  ;;  %v7874_v31 = vadd.f32 %v4003_v50, %v7676_v27  ;;  %v1531_v14 = vadd.f32 %v8465_v19, %v742_v6 }
 0x40d   : > { %8458 = vst [vmem:[#allocation170_spill] sm:$0xff] %v7870_v30  ;;  %v2515_v30 = vadd.f32 %v6881_v13, %v2017_v40  ;;  %v2030_v28 = vadd.f32 %v6630_v24, %v1532_v38  ;;  %v8471_v38 = vld [vmem:[#allocation63_spill] sm:$0xff] }
 0x40e   : > { %v2029_v27 = vadd.f32 %v6632_v20, %v1531_v14  ;;  %v8466_v20 = vld [vmem:[#allocation7_spill] sm:$0xff] }
 0x40f   : > { %v3013_v47 = vadd.f32 %v7165_v57, %v2515_v30  ;;  %v2528_v44 = vadd.f32 %v6906_v49, %v2030_v28  ;;  %v8467_v14 = vld [vmem:[#allocation35_spill] sm:$0xff]  ;;  %v8468_v57 = vld [vmem:[#allocation8_spill] sm:$0xff]  ;;  %v4011_v28 = vadd.f32 %v7708_v54, %v7451_v52 }
 0x410   : > { %v2527_v41 = vadd.f32 %v6904_v15, %v2029_v27  ;;  %v745_v10 = vadd.f32 %v8467_v14, %v8466_v20  ;;  %v8469_v30 = vld [vmem:[#allocation36_spill] sm:$0xff] }
 0x411   : > { %v3977_v50 = vpop.f32.mrf.mxu2  ;;  %v3511_v13 = vadd.f32 %v7437_v62, %v3013_v47  ;;  %v3026_v6 = vadd.f32 %v7186_v60, %v2528_v44 }
 0x412   : > { %v7890_v32 = vadd.f32 %v3977_v50, %v7691_v56  ;;  %v4176_v39 = vpop.f32.mrf.mxu0  ;;  %v7892_v53 = vpop.f32.mrf.mxu1  ;;  %v774_v56 = vadd.f32 %v8469_v30, %v8468_v57  ;;  %v3025_v40 = vadd.f32 %v7188_v29, %v2527_v41  ;;  %v1543_v19 = vadd.f32 %v8471_v38, %v745_v10 }
 0x413   : > { %v4006_v63 = vpop.f32.mrf.mxu3  ;;  %v4009_v15 = vadd.f32 %v7693_v36, %v3511_v13  ;;  %v7917_v47 = vpop.permute.xlu1 %4561  ;;  %v8473_v13 = vld [vmem:[#allocation38_spill] sm:$0xff] }
 0x414   : > { %v7898_v24 = vadd.f32 %v4006_v63, %v7698_v37  ;;  %v1544_v49 = vadd.f32 %v8470_v34, %v774_v56  ;;  %v3523_v62 = vadd.f32 %v7453_v0, %v3025_v40  ;;  %v3524_v37 = vadd.f32 %v7455_v22, %v3026_v6  ;;  %v8475_v40 = vld [vmem:[#allocation31_spill] sm:$0xff] }
 0x415   : > { %v4507_v27 = vadd.f32 %v4176_v39, %v4009_v15  ;;  %v2041_v60 = vadd.f32 %v6654_v59, %v1543_v19  ;;  %v8476_v19 = vld [vmem:[#allocation9_spill] sm:$0xff] }
 0x416   : > { %v2042_v50 = vadd.f32 %v6652_v42, %v1544_v49  ;;  %v4021_v29 = vadd.f32 %v7710_v45, %v3523_v62  ;;  %v4022_v36 = vadd.f32 %v7712_v16, %v3524_v37  ;;  %v8472_v16 = vld [vmem:[#allocation10_spill] sm:$0xff] }
 0x417   : > { %v2539_v52 = vadd.f32 %v6934_v55, %v2041_v60  ;;  %v4579_v45 = vadd.f32 %v7917_v47, %v4507_v27  ;;  %v777_v20 = vadd.f32 %v8473_v13, %v8472_v16  ;;  %v8478_v27 = vld [vmem:[#allocation57_spill] sm:$0xff] }
 0x418   : > { %v2540_v22 = vadd.f32 %v6932_v26, %v2042_v50  ;;  %v8485_v16 = vld [vmem:[#allocation13_spill] sm:$0xff] }
 0x419   : > { %v4234_v41 = vpop.f32.mrf.mxu2  ;;  %v3037_v10 = vadd.f32 %v7212_v8, %v2539_v52  ;;  %v1556_v26 = vadd.f32 %v6381_v17, %v777_v20  ;;  %v4627_v56 = vmax.f32 %v4579_v45, 0.0  ;;  %v7940_v8 = vpop.permute.xlu0 %4566  ;;  %v8477_v17 = vld [vmem:[#allocation37_spill] sm:$0xff] }
 0x41a   : > { %v7919_v44 = vadd.f32 %v4234_v41, %v4011_v28  ;;  %v4179_v0 = vpop.f32.mrf.mxu0  ;;  %v4208_v63 = vpop.f32.mrf.mxu1  ;;  %v3038_v14 = vadd.f32 %v7210_v33, %v2540_v22  ;;  %v748_v62 = vadd.f32 %v8477_v17, %v8476_v19  ;;  %v8481_v41 = vld [vmem:[#allocation39_spill] sm:$0xff]  ;;  %v8486_v13 = vld [vmem:[#allocation41_spill] sm:$0xff] }
 0x41b   : > { %v4519_v54 = vadd.f32 %v4179_v0, %v4021_v29  ;;  %v7923_v39 = vadd.f32 %v4208_v63, %v4022_v36  ;;  %v4263_v42 = vpop.f32.mrf.mxu3  ;;  %v3535_v55 = vadd.f32 %v7475_v3, %v3037_v10  ;;  %v2054_v34 = vadd.f32 %v6677_v25, %v1556_v26  ;;  %v8479_v25 = vld [vmem:[#allocation92_spill] sm:$0xff]  ;;  %v8480_v36 = vld [vmem:[#allocation11_spill] sm:$0xff] }
 0x41c   : > { %v4510_v59 = vadd.f32 %v4263_v42, %v7715_v12  ;;  %v3536_v30 = vadd.f32 %v7477_v46, %v3038_v14  ;;  %v8474_v12 = vld [vmem:[#allocation4_spill] sm:$0xff]  ;;  %v855_v0 = vadd.f32 %v8481_v41, %v8480_v36  ;;  %v858_v20 = vadd.f32 %v8486_v13, %v8485_v16  ;;  %v8487_v14 = vld [vmem:[#allocation29_spill] sm:$0xff]  ;;  %v8496_v19 = vld [vmem:[#allocation91_spill] sm:$0xff] }
 0x41d   : > { %v768_v15 = vadd.f32 %v8475_v40, %v8474_v12  ;;  %v4033_v49 = vadd.f32 %v7728_v2, %v3535_v55  ;;  %v2552_v60 = vadd.f32 %v8479_v25, %v2054_v34  ;;  %v8482_v63 = vld [vmem:[#allocation64_spill] sm:$0xff]  ;;  %v8489_v55 = vld [vmem:[#allocation14_spill] sm:$0xff]  ;;  %v8492_v12 = vld [vmem:[#allocation43_spill] sm:$0xff] }
 0x41e   : > { %v4582_v57 = vadd.f32 %v7917_v47, %v4510_v59  ;;  %v4034_v33 = vadd.f32 %v7730_v21, %v3536_v30  ;;  %v1555_v22 = vadd.f32 %v8482_v63, %v748_v62  ;;  %v8483_v42 = vld [vmem:[#allocation12_spill] sm:$0xff]  ;;  %v8490_v30 = vld [vmem:[#allocation42_spill] sm:$0xff]  ;;  %v8494_v34 = vld [vmem:[#allocation65_spill] sm:$0xff] }
 0x41f   : > { %v1520_v50 = vadd.f32 %v8478_v27, %v768_v15  ;;  %v8484_v59 = vld [vmem:[#allocation40_spill] sm:$0xff]  ;;  %v8497_v62 = vld [vmem:[#allocation131_spill] sm:$0xff]  ;;  %v8500_v25 = vld [vmem:[#allocation93_spill] sm:$0xff] }
 0x420   : > { %v4630_v6 = vmax.f32 %v4582_v57, 0.0  ;;  %v884_v45 = vadd.f32 %v8484_v59, %v8483_v42  ;;  %v8488_v57 = vld [vmem:[#allocation111_spill] sm:$0xff]  ;;  %v8499_v27 = vld [vmem:[#allocation44_spill] sm:$0xff]  ;;  %v8504_v13 = vld [vmem:[#allocation17_spill] sm:$0xff] }
 0x421   : > { %v4237_v38 = vpop.f32.mrf.mxu2  ;;  %v2018_v10 = vadd.f32 %v8487_v14, %v1520_v50  ;;  %v3050_v26 = vadd.f32 %v8488_v57, %v2552_v60  ;;  %v8501_v41 = vld [vmem:[#allocation32_spill] sm:$0xff]  ;;  %v8505_v14 = vld [vmem:[#allocation45_spill] sm:$0xff] }
 0x422   : > { %v7944_v3 = vmax.f32 %v4627_v56, %v4630_v6  ;;  %v7947_v46 = vadd.f32 %v4237_v38, %v7726_v51  ;;  %v4182_v37 = vpop.f32.mrf.mxu0  ;;  %v4211_v28 = vpop.f32.mrf.mxu1  ;;  %v4591_v51 = vadd.f32 %v7940_v8, %v4519_v54  ;;  %v887_v56 = vadd.f32 %v8490_v30, %v8489_v55  ;;  %v8491_v6 = vld [vmem:[#allocation15_spill] sm:$0xff]  ;;  %v8506_v57 = vld [vmem:[#allocation112_spill] sm:$0xff] }
 0x423   : > { %v4531_v2 = vadd.f32 %v4182_v37, %v4033_v49  ;;  %v7951_v29 = vadd.f32 %v4211_v28, %v4034_v33  ;;  %v4266_v21 = vpop.f32.mrf.mxu3  ;;  %v7968_v40 = vadd.f32 %v8492_v12, %v8491_v6  ;;  %v1524_v49 = vadd.f32 %v8494_v34, %v884_v45  ;;  %v8495_v33 = vld [vmem:[#allocation66_spill] sm:$0xff]  ;;  %v8498_v28 = vld [vmem:[#allocation16_spill] sm:$0xff] }
 0x424   : > { %v4522_v52 = vadd.f32 %v4266_v21, %v7733_v11  ;;  %v8493_v11 = vld [vmem:[#allocation56_spill] sm:$0xff]  ;;  %v1523_v38 = vadd.f32 %v8495_v33, %v855_v0  ;;  %v2516_v17 = vadd.f32 %v8496_v19, %v2018_v10  ;;  %v3548_v37 = vadd.f32 %v8497_v62, %v3050_v26  ;;  %v7983_v0 = vpop.permute.xlu2 %4571  ;;  %v8507_v12 = vld [vmem:[#allocation94_spill] sm:$0xff] }
 0x425   : > { %v2053_v15 = vadd.f32 %v8493_v11, %v1555_v22  ;;  %v890_v50 = vadd.f32 %v8499_v27, %v8498_v28  ;;  %v4639_v21 = vmax.f32 %v4591_v51, 0.0  ;;  %v2022_v63 = vadd.f32 %v8501_v41, %v1524_v49  ;;  %v8502_v22 = vld [vmem:[#allocation59_spill] sm:$0xff]  ;;  %v8511_v19 = vld [vmem:[#allocation46_spill] sm:$0xff] }
 0x426   : > { %v4594_v54 = vadd.f32 %v7940_v8, %v4522_v52  ;;  %v2021_v42 = vadd.f32 %v8502_v22, %v1523_v38  ;;  %v8503_v52 = vld [vmem:[#allocation110_spill] sm:$0xff]  ;;  %v4046_v45 = vadd.f32 %v7746_v58, %v3548_v37  ;;  %v864_v10 = vadd.f32 %v8505_v14, %v8504_v13  ;;  %v8509_v58 = vld [vmem:[#allocation129_spill] sm:$0xff]  ;;  %v8513_v27 = vld [vmem:[#allocation67_spill] sm:$0xff] }
 0x427   : > { %v2551_v60 = vadd.f32 %v8500_v25, %v2053_v15  ;;  %v3014_v59 = vadd.f32 %v8503_v52, %v2516_v17  ;;  %v2520_v11 = vadd.f32 %v8507_v12, %v2022_v63  ;;  %v8508_v15 = vld [vmem:[#allocation95_spill] sm:$0xff]  ;;  %v8510_v38 = vld [vmem:[#allocation18_spill] sm:$0xff]  ;;  %v4603_v28 = vadd.f32 %v7983_v0, %v4531_v2  ;;  %v8516_v22 = vld [vmem:[#allocation20_spill] sm:$0xff] }
 0x428   : > { %v4642_v36 = vmax.f32 %v4594_v54, 0.0  ;;  %v2519_v54 = vadd.f32 %v8508_v15, %v2021_v42  ;;  %v8000_v17 = vadd.f32 %v8511_v19, %v8510_v38  ;;  %v8512_v62 = vld [vmem:[#allocation130_spill] sm:$0xff]  ;;  %v1535_v25 = vadd.f32 %v8513_v27, %v858_v20  ;;  %v8517_v42 = vld [vmem:[#allocation47_spill] sm:$0xff]  ;;  %v8526_v38 = vld [vmem:[#allocation21_spill] sm:$0xff] }
 0x429   : > { %v4240_v16 = vpop.f32.mrf.mxu2  ;;  %v3049_v26 = vadd.f32 %v8506_v57, %v2551_v60  ;;  %v3512_v34 = vadd.f32 %v8509_v58, %v3014_v59  ;;  %v8514_v60 = vld [vmem:[#allocation113_spill] sm:$0xff]  ;;  %v8011_v52 = vadd.f32 %v8517_v42, %v8516_v22  ;;  %v8518_v59 = vld [vmem:[#allocation68_spill] sm:$0xff]  ;;  %v8520_v14 = vld [vmem:[#allocation2_spill] sm:$0xff]  ;;  %v4581_v42 = vadd.f32 %v7917_v47, %v7919_v44 }
 0x42a   : > { %v7988_v55 = vmax.f32 %v4639_v21, %v4642_v36  ;;  %v7991_v51 = vadd.f32 %v4240_v16, %v7744_v43  ;;  %v4185_v30 = vpop.f32.mrf.mxu0  ;;  %v4214_v6 = vpop.f32.mrf.mxu1  ;;  %v3018_v21 = vadd.f32 %v8514_v60, %v2520_v11  ;;  %v8515_v36 = vld [vmem:[#allocation114_spill] sm:$0xff]  ;;  %v8519_v16 = vld [vmem:[#allocation148_spill] sm:$0xff]  ;;  %v2033_v2 = vadd.f32 %v8520_v14, %v1535_v25  ;;  %v8527_v19 = vld [vmem:[#allocation49_spill] sm:$0xff] }
 0x42b   : > { %v7996_v49 = vadd.f32 %v4214_v6, %v4046_v45  ;;  %v4269_v33 = vpop.f32.mrf.mxu3  ;;  %v3547_v37 = vadd.f32 %v8512_v62, %v3049_v26  ;;  %v3017_v41 = vadd.f32 %v8515_v36, %v2519_v54  ;;  %v4010_v63 = vadd.f32 %v7695_v9, %v3512_v34  ;;  %v8521_v57 = vld [vmem:[#allocation132_spill] sm:$0xff]  ;;  %v8522_v26 = vld [vmem:[#allocation133_spill] sm:$0xff]  ;;  %v8523_v11 = vld [vmem:[#allocation78_spill] sm:$0xff] }
 0x42c   : > { %v4534_v43 = vadd.f32 %v4269_v33, %v7751_v35  ;;  %v1536_v45 = vadd.f32 %v8518_v59, %v887_v56  ;;  %v3516_v6 = vadd.f32 %v8522_v26, %v3018_v21  ;;  %v4651_v54 = vmax.f32 %v4603_v28, 0.0  ;;  %v8524_v34 = vld [vmem:[#allocation19_spill] sm:$0xff]  ;;  %v8525_v33 = vld [vmem:[#allocation48_spill] sm:$0xff]  ;;  %v8529_v25 = vld [vmem:[#allocation50_spill] sm:$0xff] }
 0x42d   : > { %v4045_v13 = vadd.f32 %v8519_v16, %v3547_v37  ;;  %v3515_v20 = vadd.f32 %v8521_v57, %v3017_v41  ;;  %v4508_v12 = vadd.f32 %v7892_v53, %v4010_v63  ;;  %v8023_v56 = vadd.f32 %v8525_v33, %v8524_v34  ;;  %v8528_v53 = vld [vmem:[#allocation22_spill] sm:$0xff]  ;;  %v8531_v21 = vld [vmem:[#allocation97_spill] sm:$0xff]  ;;  %v8532_v16 = vld [vmem:[#allocation115_spill] sm:$0xff] }
 0x42e   : > { %v4606_v35 = vadd.f32 %v7983_v0, %v4534_v43  ;;  %v2034_v9 = vadd.f32 %v8523_v11, %v1536_v45  ;;  %v8027_v62 = vadd.f32 %v8527_v19, %v8526_v38  ;;  %v4014_v43 = vadd.f32 %v7766_v1, %v3516_v6  ;;  %v8535_v26 = vld [vmem:[#allocation69_spill] sm:$0xff]  ;;  %v8536_v11 = vld [vmem:[#allocation70_spill] sm:$0xff]  ;;  %v8539_v38 = vld [vmem:[#allocation135_spill] sm:$0xff] }
 0x42f   : > { %v4543_v15 = vadd.f32 %v4185_v30, %v4045_v13  ;;  %v4013_v37 = vadd.f32 %v7764_v5, %v3515_v20  ;;  %v8035_v60 = vadd.f32 %v8529_v25, %v8528_v53  ;;  %v8530_v30 = vld [vmem:[#allocation96_spill] sm:$0xff]  ;;  %v2531_v36 = vadd.f32 %v8531_v21, %v2033_v2  ;;  %v8534_v20 = vld [vmem:[#allocation150_spill] sm:$0xff] }
 0x430   : > { %v4654_v58 = vmax.f32 %v4606_v35, 0.0  ;;  %v2532_v28 = vadd.f32 %v8530_v30, %v2034_v9  ;;  %v4580_v1 = vadd.f32 %v7917_v47, %v4508_v12  ;;  %v8533_v35 = vld [vmem:[#allocation116_spill] sm:$0xff]  ;;  %v1547_v6 = vadd.f32 %v8535_v26, %v7968_v40  ;;  %v8538_v34 = vld [vmem:[#allocation134_spill] sm:$0xff]  ;;  %v8540_v30 = vld [vmem:[#allocation79_spill] sm:$0xff] }
 0x431   : > { %v8031_v27 = vpop.f32.mrf.mxu2  ;;  %v3029_v13 = vadd.f32 %v8532_v16, %v2531_v36  ;;  %v4615_v57 = vadd.f32 %v7883_v4, %v4543_v15  ;;  %v1548_v9 = vadd.f32 %v8536_v11, %v890_v50  ;;  %v4629_v15 = vmax.f32 %v4581_v42, 0.0  ;;  %v8543_v42 = vld [vmem:[#allocation99_spill] sm:$0xff] }
 0x432   : > { %v8039_v41 = vmax.f32 %v4651_v54, %v4654_v58  ;;  %v4292_v63 = vpop.f32.mrf.mxu0  ;;  %v4321_v22 = vpop.f32.mrf.mxu1  ;;  %v3030_v14 = vadd.f32 %v8533_v35, %v2532_v28  ;;  %v8537_v58 = vld [vmem:[#allocation72_spill] sm:$0xff]  ;;  %v2045_v40 = vadd.f32 %v8540_v30, %v1547_v6  ;;  %v8544_v6 = vld [vmem:[#allocation117_spill] sm:$0xff] }
 0x433   : > { %v4272_v5 = vpop.f32.mrf.mxu3  ;;  %v4511_v59 = vadd.f32 %v4292_v63, %v4013_v37  ;;  %v4512_v45 = vadd.f32 %v4321_v22, %v4014_v43  ;;  %v1559_v12 = vadd.f32 %v8537_v58, %v864_v10  ;;  %v3527_v33 = vadd.f32 %v8538_v34, %v3029_v13  ;;  %v8541_v28 = vld [vmem:[#allocation80_spill] sm:$0xff]  ;;  %v8546_v58 = vld [vmem:[#allocation151_spill] sm:$0xff] }
 0x434   : > { %v4546_v2 = vadd.f32 %v4272_v5, %v8534_v20  ;;  %v3528_v19 = vadd.f32 %v8539_v38, %v3030_v14  ;;  %v4628_v43 = vmax.f32 %v4580_v1, 0.0  ;;  %v2046_v50 = vadd.f32 %v8541_v28, %v1548_v9  ;;  %v8545_v9 = vld [vmem:[#allocation118_spill] sm:$0xff]  ;;  %v8548_v38 = vld [vmem:[#allocation81_spill] sm:$0xff] }
 0x435   : > { %v4583_v44 = vadd.f32 %v7917_v47, %v4511_v59  ;;  %v4584_v54 = vadd.f32 %v7917_v47, %v4512_v45  ;;  %v4663_v21 = vmax.f32 %v4615_v57, 0.0  ;;  %v4025_v63 = vadd.f32 %v7782_v61, %v3527_v33  ;;  %v8542_v45 = vld [vmem:[#allocation98_spill] sm:$0xff] }
 0x436   : > { %v4618_v37 = vadd.f32 %v7883_v4, %v4546_v2  ;;  %v4026_v10 = vadd.f32 %v7784_v23, %v3528_v19  ;;  %v2544_v16 = vadd.f32 %v8542_v45, %v2046_v50  ;;  %v2543_v1 = vadd.f32 %v8543_v42, %v2045_v40 }
 0x437   : > { %v4631_v53 = vmax.f32 %v4583_v44, 0.0  ;;  %v4632_v25 = vmax.f32 %v4584_v54, 0.0  ;;  %v4593_v57 = vadd.f32 %v7940_v8, %v7947_v46  ;;  %v4592_v23 = vadd.f32 %v7940_v8, %v7923_v39  ;;  %v8549_v39 = vld [vmem:[#allocation136_spill] sm:$0xff] }
 0x438   : > { %v4666_v36 = vmax.f32 %v4618_v37, 0.0  ;;  %v3041_v11 = vadd.f32 %v8544_v6, %v2543_v1  ;;  %v3042_v44 = vadd.f32 %v8545_v9, %v2544_v16  ;;  %v2057_v19 = vadd.f32 %v8548_v38, %v1559_v12  ;;  %v8555_v6 = vld [vmem:[#allocation120_spill] sm:$0xff] }
 0x439   : > { %v4676_v22 = vmax.f32 %v4628_v43, %v4631_v53  ;;  %v8061_v5 = vmax.f32 %v4629_v15, %v4632_v25  ;;  %v4350_v59 = vpop.f32.mrf.mxu2  ;;  %v8550_v43 = vld [vmem:[#allocation137_spill] sm:$0xff]  ;;  %v4641_v40 = vmax.f32 %v4593_v57, 0.0  ;;  %v4640_v28 = vmax.f32 %v4592_v23, 0.0 }
 0x43a   : > { %v8065_v13 = vmax.f32 %v4663_v21, %v4666_v36  ;;  %v4513_v35 = vadd.f32 %v4350_v59, %v7780_v48  ;;  %v4295_v14 = vpop.f32.mrf.mxu0  ;;  %v4324_v20 = vpop.f32.mrf.mxu1  ;;  %v8547_v48 = vld [vmem:[#allocation71_spill] sm:$0xff]  ;;  %v3539_v15 = vadd.f32 %v8549_v39, %v3041_v11  ;;  %v3540_v53 = vadd.f32 %v8550_v43, %v3042_v44  ;;  %v8551_v36 = vld [vmem:[#allocation82_spill] sm:$0xff] }
 0x43b   : > { %v4523_v61 = vadd.f32 %v4295_v14, %v4025_v63  ;;  %v4524_v2 = vadd.f32 %v4324_v20, %v4026_v10  ;;  %v4379_v26 = vpop.f32.mrf.mxu3  ;;  %v1560_v33 = vadd.f32 %v8547_v48, %v8000_v17  ;;  %v8552_v17 = vld [vmem:[#allocation101_spill] sm:$0xff]  ;;  %v8553_v14 = vld [vmem:[#allocation100_spill] sm:$0xff] }
 0x43c   : > { %v4585_v54 = vadd.f32 %v7917_v47, %v4513_v35  ;;  %v4514_v34 = vadd.f32 %v4379_v26, %v8546_v58  ;;  %v2555_v10 = vadd.f32 %v8552_v17, %v2057_v19  ;;  %v4037_v45 = vadd.f32 %v7800_v7, %v3539_v15  ;;  %v8561_v15 = vld [vmem:[#allocation139_spill] sm:$0xff] }
 0x43d   : > { %v4595_v46 = vadd.f32 %v7940_v8, %v4523_v61  ;;  %v4596_v37 = vadd.f32 %v7940_v8, %v4524_v2  ;;  %v2058_v63 = vadd.f32 %v8551_v36, %v1560_v33  ;;  %v4038_v16 = vadd.f32 %v7802_v18, %v3540_v53  ;;  %v8554_v61 = vld [vmem:[#allocation152_spill] sm:$0xff]  ;;  %v8558_v33 = vld [vmem:[#allocation153_spill] sm:$0xff]  ;;  %v8563_v36 = vld [vmem:[#allocation83_spill] sm:$0xff] }
 0x43e   : > { %v4633_v25 = vmax.f32 %v4585_v54, 0.0  ;;  %v4586_v30 = vadd.f32 %v7917_v47, %v4514_v34  ;;  %v3053_v11 = vadd.f32 %v8555_v6, %v2555_v10  ;;  %v4605_v7 = vadd.f32 %v7983_v0, %v7991_v51  ;;  %v8556_v54 = vld [vmem:[#allocation73_spill] sm:$0xff] }
 0x43f   : > { %v4643_v50 = vmax.f32 %v4595_v46, 0.0  ;;  %v4644_v21 = vmax.f32 %v4596_v37, 0.0  ;;  %v2556_v20 = vadd.f32 %v8553_v14, %v2058_v63  ;;  %v1528_v58 = vadd.f32 %v8556_v54, %v8011_v52  ;;  %v8560_v46 = vld [vmem:[#allocation138_spill] sm:$0xff]  ;;  %v8564_v63 = vld [vmem:[#allocation84_spill] sm:$0xff] }
 0x440   : > { %v8087_v12 = vmax.f32 %v7944_v3, %v4633_v25  ;;  %v4634_v59 = vmax.f32 %v4586_v30, 0.0  ;;  %v4604_v3 = vadd.f32 %v7983_v0, %v7951_v29  ;;  %v8559_v29 = vld [vmem:[#allocation74_spill] sm:$0xff]  ;;  %v3551_v37 = vadd.f32 %v8560_v46, %v3053_v11  ;;  %v8573_v46 = vld [vmem:[#allocation75_spill] sm:$0xff] }
 0x441   : > { %v4679_v42 = vmax.f32 %v4640_v28, %v4643_v50  ;;  %v8091_v1 = vmax.f32 %v4641_v40, %v4644_v21  ;;  %v4353_v35 = vpop.f32.mrf.mxu2  ;;  %v1527_v19 = vadd.f32 %v8559_v29, %v8023_v56  ;;  %v4653_v30 = vmax.f32 %v4605_v7, 0.0  ;;  %v8562_v40 = vld [vmem:[#allocation149_spill] sm:$0xff]  ;;  %v8569_v11 = vld [vmem:[#allocation154_spill] sm:$0xff] }
 0x442   : > { %v8094_v57 = vmax.f32 %v4676_v22, %v4634_v59  ;;  %v4525_v23 = vadd.f32 %v4353_v35, %v8554_v61  ;;  %v4298_v2 = vpop.f32.mrf.mxu0  ;;  %v4327_v26 = vpop.f32.mrf.mxu1  ;;  %v8557_v22 = vld [vmem:[#allocation119_spill] sm:$0xff]  ;;  %v4652_v25 = vmax.f32 %v4604_v3, 0.0  ;;  %v4545_v28 = vadd.f32 %v8031_v27, %v8562_v40  ;;  %v8566_v35 = vld [vmem:[#allocation156_spill] sm:$0xff] }
 0x443   : > { %v4535_v18 = vadd.f32 %v4298_v2, %v4037_v45  ;;  %v4536_v9 = vadd.f32 %v4327_v26, %v4038_v16  ;;  %v4382_v44 = vpop.f32.mrf.mxu3  ;;  %v3054_v34 = vadd.f32 %v8557_v22, %v2556_v20  ;;  %v2025_v56 = vadd.f32 %v8563_v36, %v1527_v19  ;;  %v8565_v45 = vld [vmem:[#allocation155_spill] sm:$0xff]  ;;  %v8567_v2 = vld [vmem:[#allocation102_spill] sm:$0xff] }
 0x444   : > { %v4597_v48 = vadd.f32 %v7940_v8, %v4525_v23  ;;  %v4526_v38 = vadd.f32 %v4382_v44, %v8558_v33  ;;  %v2026_v17 = vadd.f32 %v8564_v63, %v1528_v58  ;;  %v4049_v16 = vadd.f32 %v8565_v45, %v3551_v37  ;;  %v8568_v3 = vld [vmem:[#allocation103_spill] sm:$0xff]  ;;  %v8571_v33 = vld [vmem:[#allocation122_spill] sm:$0xff] }
 0x445   : > { %v4607_v39 = vadd.f32 %v7983_v0, %v4535_v18  ;;  %v4608_v51 = vadd.f32 %v7983_v0, %v4536_v9  ;;  %v3552_v43 = vadd.f32 %v8561_v15, %v3054_v34  ;;  %v2523_v26 = vadd.f32 %v8568_v3, %v2025_v56  ;;  %v8570_v34 = vld [vmem:[#allocation121_spill] sm:$0xff]  ;;  %v8578_v63 = vld [vmem:[#allocation86_spill] sm:$0xff]  ;;  %v8579_v45 = vld [vmem:[#allocation159_spill] sm:$0xff] }
 0x446   : > { %v4645_v53 = vmax.f32 %v4597_v48, 0.0  ;;  %v4598_v52 = vadd.f32 %v7940_v8, %v4526_v38  ;;  %v2524_v27 = vadd.f32 %v8567_v2, %v2026_v17  ;;  %v4616_v9 = vadd.f32 %v7883_v4, %v7996_v49  ;;  %v8577_v56 = vld [vmem:[#allocation85_spill] sm:$0xff] }
 0x447   : > { %v4655_v50 = vmax.f32 %v4607_v39, 0.0  ;;  %v4656_v21 = vmax.f32 %v4608_v51, 0.0  ;;  %v4050_v14 = vadd.f32 %v8566_v35, %v3552_v43  ;;  %v4617_v44 = vadd.f32 %v7883_v4, %v4545_v28  ;;  %v8574_v39 = vld [vmem:[#allocation76_spill] sm:$0xff] }
 0x448   : > { %v8119_v10 = vmax.f32 %v7988_v55, %v4645_v53  ;;  %v4646_v59 = vmax.f32 %v4598_v52, 0.0  ;;  %v3022_v48 = vadd.f32 %v8570_v34, %v2524_v27  ;;  %v3021_v38 = vadd.f32 %v8571_v33, %v2523_v26  ;;  %v8575_v43 = vld [vmem:[#allocation140_spill] sm:$0xff]  ;;  %v8581_v26 = vld [vmem:[#allocation158_spill] sm:$0xff]  ;;  %v8584_v34 = vld [vmem:[#allocation23_spill] sm:$0xff] }
 0x449   : > { %v4682_v20 = vmax.f32 %v4652_v25, %v4655_v50  ;;  %v8123_v61 = vmax.f32 %v4653_v30, %v4656_v21  ;;  %v4356_v23 = vpop.f32.mrf.mxu2  ;;  %v1539_v37 = vadd.f32 %v8573_v46, %v8027_v62  ;;  %v1540_v51 = vadd.f32 %v8574_v39, %v8035_v60  ;;  %v8576_v25 = vld [vmem:[#allocation141_spill] sm:$0xff]  ;;  %v8580_v35 = vld [vmem:[#allocation160_spill] sm:$0xff] }
 0x44a   : > { %v8127_v6 = vmax.f32 %v4679_v42, %v4646_v59  ;;  %v4537_v7 = vadd.f32 %v4356_v23, %v8569_v11  ;;  %v4301_v18 = vpop.f32.mrf.mxu0  ;;  %v4330_v55 = vpop.f32.mrf.mxu1  ;;  %v8572_v42 = vld [vmem:[#allocation157_spill] sm:$0xff]  ;;  %v3519_v53 = vadd.f32 %v8575_v43, %v3021_v38  ;;  %v3520_v52 = vadd.f32 %v8576_v25, %v3022_v48  ;;  %v8585_v48 = vld [vmem:[#allocation51_spill] sm:$0xff]  ;;  %v8586_v38 = vld [vmem:[#allocation24_spill] sm:$0xff] }
 0x44b   : > { %v4547_v54 = vadd.f32 %v4301_v18, %v4049_v16  ;;  %v4548_v58 = vadd.f32 %v4330_v55, %v4050_v14  ;;  %v4385_v22 = vpop.f32.mrf.mxu3  ;;  %v4664_v28 = vmax.f32 %v4616_v9, 0.0  ;;  %v4665_v50 = vmax.f32 %v4617_v44, 0.0  ;;  %v8582_v55 = vld [vmem:[#allocation104_spill] sm:$0xff]  ;;  %v8583_v44 = vld [vmem:[#allocation105_spill] sm:$0xff] }
 0x44c   : > { %v4609_v29 = vadd.f32 %v7983_v0, %v4537_v7  ;;  %v4538_v19 = vadd.f32 %v4385_v22, %v8572_v42  ;;  %v2037_v62 = vadd.f32 %v8577_v56, %v1539_v37  ;;  %v2038_v17 = vadd.f32 %v8578_v63, %v1540_v51  ;;  %v8589_v37 = vld [vmem:[#allocation123_spill] sm:$0xff]  ;;  %v8590_v51 = vld [vmem:[#allocation124_spill] sm:$0xff] }
 0x44d   : > { %v4619_v49 = vadd.f32 %v7883_v4, %v4547_v54  ;;  %v4620_v15 = vadd.f32 %v7883_v4, %v4548_v58  ;;  %v4017_v16 = vadd.f32 %v8579_v45, %v3519_v53  ;;  %v4018_v14 = vadd.f32 %v8580_v35, %v3520_v52  ;;  %v8591_v53 = vld [vmem:[#allocation53_spill] sm:$0xff]  ;;  %v8596_v45 = vld [vmem:[#allocation88_spill] sm:$0xff] }
 0x44e   : > { %v4657_v30 = vmax.f32 %v4609_v29, 0.0  ;;  %v4610_v40 = vadd.f32 %v7983_v0, %v4538_v19  ;;  %v2535_v9 = vadd.f32 %v8582_v55, %v2037_v62  ;;  %v977_v33 = vadd.f32 %v8585_v48, %v8584_v34  ;;  %v8587_v29 = vld [vmem:[#allocation52_spill] sm:$0xff]  ;;  %v8588_v19 = vld [vmem:[#allocation161_spill] sm:$0xff]  ;;  %v8600_v34 = vld [vmem:[#allocation106_spill] sm:$0xff] }
 0x44f   : > { %v4667_v21 = vmax.f32 %v4619_v49, 0.0  ;;  %v4668_v36 = vmax.f32 %v4620_v15, 0.0  ;;  %v1006_v42 = vadd.f32 %v8587_v29, %v8586_v38  ;;  %v8592_v52 = vld [vmem:[#allocation77_spill] sm:$0xff]  ;;  %v8601_v48 = vld [vmem:[#allocation107_spill] sm:$0xff] }
 0x450   : > { %v8149_v60 = vmax.f32 %v8039_v41, %v4657_v30  ;;  %v4658_v59 = vmax.f32 %v4610_v40, 0.0  ;;  %v2536_v41 = vadd.f32 %v8583_v44, %v2038_v17  ;;  %v3033_v39 = vadd.f32 %v8589_v37, %v2535_v9  ;;  %v8595_v17 = vld [vmem:[#allocation87_spill] sm:$0xff] }
 0x451   : > { %v4685_v23 = vmax.f32 %v4664_v28, %v4667_v21  ;;  %v8153_v2 = vmax.f32 %v4665_v50, %v4668_v36  ;;  %v4359_v27 = vpop.f32.mrf.mxu2  ;;  %v1551_v25 = vadd.f32 %v8591_v53, %v977_v33  ;;  %v1552_v30 = vadd.f32 %v8592_v52, %v1006_v42  ;;  %v8593_v50 = vld [vmem:[#allocation142_spill] sm:$0xff]  ;;  %v8594_v36 = vld [vmem:[#allocation143_spill] sm:$0xff] }
 0x452   : > { %v8155_v3 = vmax.f32 %v4682_v20, %v4658_v59  ;;  %v4549_v11 = vadd.f32 %v4359_v27, %v8581_v26  ;;  %v4408_v7 = vpop.f32.mrf.mxu0  ;;  %v4437_v18 = vpop.f32.mrf.mxu1  ;;  %v3034_v49 = vadd.f32 %v8590_v51, %v2536_v41  ;;  %v3531_v56 = vadd.f32 %v8594_v36, %v3033_v39  ;;  %v8597_v27 = vld [vmem:[#allocation163_spill] sm:$0xff]  ;;  %v8599_v41 = vld [vmem:[#allocation162_spill] sm:$0xff]  ;;  %v8606_v39 = vld [vmem:[#allocation165_spill] sm:$0xff] }
 0x453   : > { %v4388_v54 = vpop.f32.mrf.mxu3  ;;  %v4515_v58 = vadd.f32 %v4408_v7, %v4017_v16  ;;  %v4516_v22 = vadd.f32 %v4437_v18, %v4018_v14  ;;  %v2050_v59 = vadd.f32 %v8595_v17, %v1552_v30  ;;  %v2049_v16 = vadd.f32 %v8596_v45, %v1551_v25  ;;  %v8605_v37 = vld [vmem:[#allocation55_spill] sm:$0xff]  ;;  %v8609_v30 = vld [vmem:[#allocation25_spill] sm:$0xff] }
 0x454   : > { %v4621_v20 = vadd.f32 %v7883_v4, %v4549_v11  ;;  %v4550_v46 = vadd.f32 %v4388_v54, %v8588_v19  ;;  %v3532_v21 = vadd.f32 %v8593_v50, %v3034_v49  ;;  %v4029_v26 = vadd.f32 %v8597_v27, %v3531_v56  ;;  %v8598_v11 = vld [vmem:[#allocation164_spill] sm:$0xff]  ;;  %v8603_v19 = vld [vmem:[#allocation54_spill] sm:$0xff]  ;;  %v8607_v49 = vld [vmem:[#allocation125_spill] sm:$0xff] }
 0x455   : > { %v4587_v15 = vadd.f32 %v7917_v47, %v4515_v58  ;;  %v4588_v43 = vadd.f32 %v7917_v47, %v4516_v22  ;;  %v2548_v33 = vadd.f32 %v8601_v48, %v2050_v59  ;;  %v8611_v56 = vld [vmem:[#allocation144_spill] sm:$0xff]  ;;  %v8614_v27 = vld [vmem:[#allocation90_spill] sm:$0xff] }
 0x456   : > { %v4669_v40 = vmax.f32 %v4621_v20, 0.0  ;;  %v4622_v28 = vadd.f32 %v7883_v4, %v4550_v46  ;;  %v4030_v7 = vadd.f32 %v8598_v11, %v3532_v21  ;;  %v8602_v20 = vld [vmem:[#allocation27_spill] sm:$0xff]  ;;  %v8604_v46 = vld [vmem:[#allocation26_spill] sm:$0xff] }
 0x457   : > { %v4635_v62 = vmax.f32 %v4587_v15, 0.0  ;;  %v4636_v63 = vmax.f32 %v4588_v43, 0.0  ;;  %v8608_v43 = vld [vmem:[#allocation126_spill] sm:$0xff] }
 0x458   : > { %v8178_v35 = vmax.f32 %v8065_v13, %v4669_v40  ;;  %v4670_v14 = vmax.f32 %v4622_v28, 0.0  ;;  %v2547_v13 = vadd.f32 %v8600_v34, %v2049_v16  ;;  %v3046_v53 = vadd.f32 %v8608_v43, %v2548_v33  ;;  %v8610_v28 = vld [vmem:[#allocation28_spill] sm:$0xff]  ;;  %v8613_v16 = vld [vmem:[#allocation89_spill] sm:$0xff] }
 0x459   : > { %v4689_v18 = vmax.f32 %v8061_v5, %v4635_v62  ;;  %v4466_v55 = vpop.f32.mrf.mxu2  ;;  %v8184_v9 = vmax.f32 %v8087_v12, %v4636_v63  ;;  %v1009_v5 = vadd.f32 %v8603_v19, %v8602_v20  ;;  %v980_v12 = vadd.f32 %v8605_v37, %v8604_v46  ;;  %v8612_v63 = vld [vmem:[#allocation145_spill] sm:$0xff] }
 0x45a   : > { %v8186_v44 = vmax.f32 %v4685_v23, %v4670_v14  ;;  %v4517_v54 = vadd.f32 %v4466_v55, %v8599_v41  ;;  %v4411_v58 = vpop.f32.mrf.mxu0  ;;  %v4440_v22 = vpop.f32.mrf.mxu1  ;;  %v3045_v15 = vadd.f32 %v8607_v49, %v2547_v13  ;;  %v3544_v62 = vadd.f32 %v8611_v56, %v3046_v53  ;;  %v8615_v55 = vld [vmem:[#allocation167_spill] sm:$0xff]  ;;  %v8617_v13 = vld [vmem:[#allocation166_spill] sm:$0xff]  ;;  %v8619_v19 = vld [vmem:[#allocation109_spill] sm:$0xff] }
 0x45b   : > { %v4527_v38 = vadd.f32 %v4411_v58, %v4029_v26  ;;  %v4528_v29 = vadd.f32 %v4440_v22, %v4030_v7  ;;  %v4495_v42 = vpop.f32.mrf.mxu3  ;;  %v1564_v40 = vadd.f32 %v8609_v30, %v1009_v5  ;;  %v1563_v50 = vadd.f32 %v8610_v28, %v980_v12  ;;  %v8624_v30 = vld [vmem:[#allocation147_spill] sm:$0xff]  ;;  %v8625_v56 = vld [vmem:[#allocation30_spill] sm:$0xff] }
 0x45c   : > { %v4589_v23 = vadd.f32 %v7917_v47, %v4517_v54  ;;  %v4518_v51 = vadd.f32 %v4495_v42, %v8606_v39  ;;  %v3543_v17 = vadd.f32 %v8612_v63, %v3045_v15  ;;  %v8616_v54 = vld [vmem:[#allocation168_spill] sm:$0xff]  ;;  %v8621_v39 = vld [vmem:[#allocation127_spill] sm:$0xff]  ;;  %v8626_v63 = vld [vmem:[#allocation170_spill] sm:$0xff] }
 0x45d   : > { %v4599_v25 = vadd.f32 %v7940_v8, %v4527_v38  ;;  %v4600_v52 = vadd.f32 %v7940_v8, %v4528_v29  ;;  %v2062_v14 = vadd.f32 %v8613_v16, %v1564_v40  ;;  %v2061_v26 = vadd.f32 %v8614_v27, %v1563_v50  ;;  %v8618_v42 = vld [vmem:[#allocation108_spill] sm:$0xff] }
 0x45e   : > { %v4637_v21 = vmax.f32 %v4589_v23, 0.0  ;;  %v4590_v36 = vadd.f32 %v7917_v47, %v4518_v51  ;;  %v4041_v41 = vadd.f32 %v8615_v55, %v3543_v17  ;;  %v4042_v58 = vadd.f32 %v8616_v54, %v3544_v62  ;;  %v8620_v23 = vld [vmem:[#allocation169_spill] sm:$0xff] }
 0x45f   : > { %v4647_v59 = vmax.f32 %v4599_v25, 0.0  ;;  %v4648_v45 = vmax.f32 %v4600_v52, 0.0  ;;  %v2560_v20 = vadd.f32 %v8618_v42, %v2062_v14  ;;  %v8623_v25 = vld [vmem:[#allocation146_spill] sm:$0xff]  ;;  %v8627_v14 = vld [vmem:[#allocation3_spill] sm:$0xff] }
 0x460   : > { %v4638_v11 = vmax.f32 %v4590_v36, 0.0  ;;  %v8209_v7 = vmax.f32 %v8094_v57, %v4637_v21  ;;  %v2559_v57 = vadd.f32 %v8619_v19, %v2061_v26 }
 0x461   : > { %v4692_v47 = vmax.f32 %v8091_v1, %v4647_v59  ;;  %v4469_v22 = vpop.f32.mrf.mxu2  ;;  %v4702_v34 = vmax.f32 %v8119_v10, %v4648_v45  ;;  %v3058_v51 = vadd.f32 %v8621_v39, %v2560_v20  ;;  %v8622_v10 = vld [vmem:[#allocation128_spill] sm:$0xff] }
 0x462   : > { %v4529_v48 = vadd.f32 %v4469_v22, %v8617_v13  ;;  %v4414_v33 = vpop.f32.mrf.mxu0  ;;  %v4443_v38 = vpop.f32.mrf.mxu1  ;;  %v8216_v29 = vmax.f32 %v4689_v18, %v4638_v11  ;;  %v3057_v49 = vadd.f32 %v8622_v10, %v2559_v57 }
 0x463   : > { %v4539_v5 = vadd.f32 %v4414_v33, %v4041_v41  ;;  %v4540_v46 = vadd.f32 %v4443_v38, %v4042_v58  ;;  %v4498_v37 = vpop.f32.mrf.mxu3  ;;  %v3556_v52 = vadd.f32 %v8623_v25, %v3058_v51 }
 0x464   : > { %v4601_v12 = vadd.f32 %v7940_v8, %v4529_v48  ;;  %v4530_v1 = vadd.f32 %v4498_v37, %v8620_v23  ;;  %v3555_v40 = vadd.f32 %v8624_v30, %v3057_v49 }
 0x465   : > { %v4611_v15 = vadd.f32 %v7983_v0, %v4539_v5  ;;  %v4612_v18 = vadd.f32 %v7983_v0, %v4540_v46  ;;  %v4054_v17 = vadd.f32 %v8626_v63, %v3556_v52 }
 0x466   : > { %v4649_v43 = vmax.f32 %v4601_v12, 0.0  ;;  %v4602_v53 = vadd.f32 %v7940_v8, %v4530_v1  ;;  %v4053_v62 = vadd.f32 %v8625_v56, %v3555_v40 }
 0x467   : > { %v4659_v28 = vmax.f32 %v4611_v15, 0.0  ;;  %v4660_v50 = vmax.f32 %v4612_v18, 0.0 }
 0x468   : > { %v4650_v21 = vmax.f32 %v4602_v53, 0.0  ;;  %v4703_v36 = vmax.f32 %v8127_v6, %v4649_v43 }
 0x469   : > { %v4695_v59 = vmax.f32 %v8123_v61, %v4659_v28  ;;  %v4472_v45 = vpop.f32.mrf.mxu2  ;;  %v4705_v16 = vmax.f32 %v8149_v60, %v4660_v50 }
 0x46a   : > { %v4541_v8 = vadd.f32 %v4472_v45, %v8627_v14  ;;  %v4417_v27 = vpop.f32.mrf.mxu0  ;;  %v4446_v26 = vpop.f32.mrf.mxu1  ;;  %v4704_v11 = vmax.f32 %v4692_v47, %v4650_v21 }
 0x46b   : > { %v4551_v55 = vadd.f32 %v4417_v27, %v4053_v62  ;;  %v4552_v41 = vadd.f32 %v4446_v26, %v4054_v17  ;;  %v4501_v54 = vpop.f32.mrf.mxu3 }
 0x46c   : > { %v4613_v58 = vadd.f32 %v7983_v0, %v4541_v8  ;;  %v4542_v6 = vadd.f32 %v4501_v54, %v7874_v31 }
 0x46d   : > { %v4623_v22 = vadd.f32 %v7883_v4, %v4551_v55  ;;  %v4624_v13 = vadd.f32 %v7883_v4, %v4552_v41 }
 0x46e   : > { %v4661_v61 = vmax.f32 %v4613_v58, 0.0  ;;  %v4614_v48 = vadd.f32 %v7983_v0, %v4542_v6 }
 0x46f   : > { %v4671_v60 = vmax.f32 %v4623_v22, 0.0  ;;  %v4672_v33 = vmax.f32 %v4624_v13, 0.0 }
 0x470   : > { %v4662_v38 = vmax.f32 %v4614_v48, 0.0  ;;  %v4706_v42 = vmax.f32 %v8155_v3, %v4661_v61 }
 0x471   : > { %v4698_v47 = vmax.f32 %v8153_v2, %v4671_v60  ;;  %v4708_v20 = vmax.f32 %v8178_v35, %v4672_v33  ;;  %v4475_v19 = vpop.f32.mrf.mxu2 }
 0x472   : > { %v4553_v57 = vadd.f32 %v4475_v19, %v7890_v32  ;;  %v4707_v31 = vmax.f32 %v4695_v59, %v4662_v38  ;;  %v4711_v32 = vld [vmem:[%s8264_s3] sm:$0x7] }
 0x473   : > { %v4504_v5 = vpop.f32.mrf.mxu3  ;;  %4731 = vmatpush.xpose.msrb.mxu0 %v4708_v20  ;;  %v4713_v35 = vperm.slane %v4711_v32, 0 }
 0x474   : > { %v4625_v46 = vadd.f32 %v7883_v4, %v4553_v57  ;;  %v4554_v37 = vadd.f32 %v4504_v5, %v7898_v24  ;;  %v4715_v24 = vperm.slane %v4711_v32, 2 }
 0x476   : > { %v4673_v0 = vmax.f32 %v4625_v46, 0.0  ;;  %v4626_v12 = vadd.f32 %v7883_v4, %v4554_v37  ;;  %v4714_v4 = vperm.slane %v4711_v32, 1 }
 0x477   : > { %4732 = vmatpush.xpose.msrb.mxu0 %v4705_v16 }
 0x478   : > { %v4709_v3 = vmax.f32 %v8186_v44, %v4673_v0  ;;  %v4674_v23 = vmax.f32 %v4626_v12, 0.0 }
 0x47a   : > { %v4710_v2 = vmax.f32 %v4698_v47, %v4674_v23  ;;  %4751 = vmatpush.xpose.msrb.mxu1 %v4709_v3 }
 0x47b   : > { %4733 = vmatpush.xpose.msrb.mxu0 %v4702_v34 }
 0x47c   : > { %4771 = vmatpush.xpose.msrb.mxu2 %v4710_v2 }
 0x47e   : > { %4752 = vmatpush.xpose.msrb.mxu1 %v4706_v42 }
 0x47f   : > { %4734 = vmatpush.xpose.msrb.mxu0 %v8184_v9 }
 0x480   : > { %4772 = vmatpush.xpose.msrb.mxu2 %v4707_v31 }
 0x482   : > { %4753 = vmatpush.xpose.msrb.mxu1 %v4703_v36  ;;  %4735 = vmatmul.f32.vlgmr.msrb.gmra.mxu0 %v4713_v35 }
 0x484   : > { %4773 = vmatpush.xpose.msrb.mxu2 %v4704_v11 }
 0x486   : > { %4754 = vmatpush.xpose.msrb.mxu1 %v8209_v7 }
 0x488   : > { %4774 = vmatpush.xpose.msrb.mxu2 %v8216_v29 }
 0x489   : > { %4755 = vmatmul.f32.vlgmr.msrb.gmra.mxu1 %v4714_v4 }
 0x48b   : > { %4775 = vmatmul.f32.vlgmr.msrb.gmra.mxu2 %v4715_v24 }
 0x4ff   : > { %v4736_v44 = vpop.f32.mrf.mxu0 }
 0x506   : > { %v4756_v34 = vpop.f32.mrf.mxu1 }
 0x507   : > { %v4757_v1 = vadd.f32 %v4756_v34, %v4736_v44 }
 0x50e   : > { %v4776_v9 = vpop.f32.mrf.mxu2 }
 0x50f   : > { %v4777_v39 = vadd.f32 %v4776_v9, %v4757_v1 }
 0x511   : > { %4780 = vst.msk [vmem:[%s193_s24] sm:$0x1] %vm4779_vm10, %v4777_v39 }
 0x512 PF: > { %s14_s15 = sadd.s32 1, %s5418_s15  }
 0x513   : > { %p11_p4 = scmp.ge.s32.totalorder %s14_s15, 4  }
 0x515   :  { %13 = sbr.rel (!%p11_p4) target bundleno = 1 (0x1), region = 93 }

</bundles_post_ra>
